<compile_context>
chip_gen: v7x
topology: tpu7x:2x2x1
jax: 0.10.0
libtpu: 0.0.40
codegen_flags: <defaults>
</compile_context>

<pallas_src>
import functools

import jax
import jax.numpy as jnp
from jax.experimental import pallas as pl
from jax.experimental.pallas import tpu as pltpu


def _round_up(v, m):
    return -(-int(v) // m) * m


def _resblock1_kernel(x_ref, xh_ref, w1_ref, b1_ref, w2_ref, b2_ref, *rest,
                      dilations, slope, seq_len, tile_t, halo, pad, use_gamma):
    """One (batch, time-tile) window per grid step.

    x_ref   : (1, tile_t, C)        main tile (auto-pipelined)
    xh_ref  : (B, T_total, C) HBM   zero-padded x, halo source (manual DMA)
    w1_ref  : (L, C, K*C) bf16      merged-tap dilated-conv weights
    b1_ref  : (L, C) f32
    w2_ref  : (L, C, K*C) bf16      merged-tap dilation-1 conv weights
    b2_ref  : (L, C) f32
    g_ref   : (L, C) f32            (only when use_gamma)
    o_ref   : (1, tile_t, C)
    pad_ref : (2*pad + W, C) bf16   conv-input slab; outer `pad` rows stay zero
    xw_ref  : (W, C) f32            residual over the halo'd window
    hbuf    : (2, halo, C)          halo DMA landing buffers
    sem     : DMA semaphores (2,)
    """
    if use_gamma:
        g_ref, o_ref, pad_ref, xw_ref, hbuf_ref, sem = rest
    else:
        g_ref = None
        o_ref, pad_ref, xw_ref, hbuf_ref, sem = rest

    f32 = jnp.float32
    b = pl.program_id(0)
    t = pl.program_id(1)
    C = x_ref.shape[-1]
    K = w1_ref.shape[-1] // C
    half = (K - 1) // 2
    W = tile_t + 2 * halo                         # compute-window rows

    # ---- fetch the two small receptive-field halos (window edges) -----------
    start_p = t * tile_t                          # window start in padded coords
    cp_l = pltpu.make_async_copy(
        xh_ref.at[b, pl.ds(start_p, halo), :], hbuf_ref.at[0], sem.at[0])
    cp_r = pltpu.make_async_copy(
        xh_ref.at[b, pl.ds(start_p + halo + tile_t, halo), :], hbuf_ref.at[1],
        sem.at[1])
    cp_l.start()
    cp_r.start()

    # ---- conv "same" zero padding: zero only the 2*pad outer rows -----------
    # (the interior is fully rewritten before every matmul; no full-slab zeroing)
    pad_ref[0:pad, :] = jnp.zeros((pad, C), pad_ref.dtype)
    pad_ref[pad + W:, :] = jnp.zeros((pad, C), pad_ref.dtype)

    # ---- rows outside the real sequence [0, seq_len) must act as zero padding
    rows = jax.lax.broadcasted_iota(jnp.int32, (W, 1), 0) + (t * tile_t - halo)
    mask = jnp.logical_and(rows >= 0, rows < seq_len).astype(f32)

    def masked_lrelu_bf16(v):
        # mask folds into the LReLU: lrelu(mask * v) == mask * lrelu(v)
        vm = v * mask
        return jnp.maximum(vm, slope * vm).astype(pad_ref.dtype)

    # ---- assemble the residual window [left halo | main tile | right halo] ---
    xw_ref[halo:halo + tile_t, :] = x_ref[0].astype(f32)
    cp_l.wait()
    cp_r.wait()
    xw_ref[0:halo, :] = hbuf_ref[0].astype(f32)
    xw_ref[halo + tile_t:, :] = hbuf_ref[1].astype(f32)

    x = xw_ref[...]                               # (W, C) f32 residual
    for l, d in enumerate(dilations):             # static unroll (3 layers)
        # conv1: LReLU -> dilated conv; single bf16 matmul, taps merged on N
        pad_ref[pad:pad + W, :] = masked_lrelu_bf16(x)
        s = jnp.dot(pad_ref[...], w1_ref[l], preferred_element_type=f32)
        y = b1_ref[l:l + 1, :].astype(f32)
        for k in range(K):
            off = pad + (k - half) * d
            y = y + s[off:off + W, k * C:(k + 1) * C]

        # conv2: LReLU -> dilation-1 conv
        pad_ref[pad:pad + W, :] = masked_lrelu_bf16(y)
        s = jnp.dot(pad_ref[...], w2_ref[l], preferred_element_type=f32)
        y2 = b2_ref[l:l + 1, :].astype(f32)
        for k in range(K):
            off = pad + (k - half)
            y2 = y2 + s[off:off + W, k * C:(k + 1) * C]

        if use_gamma:                             # static flag: no ones-multiply
            y2 = y2 * g_ref[l:l + 1, :].astype(f32)
        x = y2 + x                                # residual

    o_ref[0] = x[halo:halo + tile_t, :].astype(o_ref.dtype)


def resblock1(x, w1_taps, b1, w2_taps, b2, gammas=None, *,
              dilations=(1, 3, 5), lrelu_slope=0.1, tile_t=None):
    """x: (B, T, C) channels-last.  w*_taps: (L, K, C_in, C_out) with
    W[l, k, ci, co] = torch_weight[co, ci, k] and weight_norm already folded.
    b*: (L, C).  gammas: (L, C) or None (module default)."""
    B, T, C = x.shape
    L, K, Ci, Co = w1_taps.shape
    assert (Ci, Co) == (C, C) and w2_taps.shape == (L, K, C, C)
    assert L == len(dilations) and K % 2 == 1
    assert C % 128 == 0, "keep C lane-aligned (multiple of 128)"

    half = (K - 1) // 2
    pad = _round_up(max(int(d) for d in dilations) * half, 16)   # conv pad rows
    rf = sum((int(d) + 1) * half for d in dilations)             # fused receptive radius
    halo = _round_up(rf, 16)

    if tile_t is None:
        tile_t = min(2048, _round_up(T, 16))      # sweep ~1024-4096 for long T
    tile_t = max(16, _round_up(tile_t, 16))
    nT = -(-T // tile_t)
    T_main = nT * tile_t

    bf16, f32 = jnp.bfloat16, jnp.float32
    # merged taps: (L, K, Cin, Cout) -> (L, Cin, K*Cout); bf16 MXU operands
    w1m = jnp.transpose(w1_taps, (0, 2, 1, 3)).reshape(L, C, K * C).astype(bf16)
    w2m = jnp.transpose(w2_taps, (0, 2, 1, 3)).reshape(L, C, K * C).astype(bf16)
    b1 = b1.astype(f32)
    b2 = b2.astype(f32)
    use_gamma = gammas is not None

    # main-tiled view (tail-padded) + fully zero-padded halo source
    x_main = jnp.pad(x, ((0, 0), (0, T_main - T), (0, 0)))
    x_halo = jnp.pad(x, ((0, 0), (halo, halo + T_main - T), (0, 0)))

    kernel = functools.partial(
        _resblock1_kernel,
        dilations=tuple(int(d) for d in dilations), slope=float(lrelu_slope),
        seq_len=T, tile_t=tile_t, halo=halo, pad=pad, use_gamma=use_gamma)

    in_specs = [
        pl.BlockSpec((1, tile_t, C), lambda b, t: (b, t, 0)),
        pl.BlockSpec(memory_space=pl.ANY),                     # halo source (HBM)
        pl.BlockSpec((L, C, K * C), lambda b, t: (0, 0, 0)),   # VMEM-resident weights
        pl.BlockSpec((L, C), lambda b, t: (0, 0)),
        pl.BlockSpec((L, C, K * C), lambda b, t: (0, 0, 0)),
        pl.BlockSpec((L, C), lambda b, t: (0, 0)),
    ]
    operands = [x_main, x_halo, w1m, b1, w2m, b2]
    if use_gamma:
        in_specs.append(pl.BlockSpec((L, C), lambda b, t: (0, 0)))
        operands.append(gammas.astype(f32))

    W = tile_t + 2 * halo
    Wp = W + 2 * pad
    scratch_shapes = [
        pltpu.VMEM((Wp, C), bf16),                 # conv-input slab (bf16 MXU operand)
        pltpu.VMEM((W, C), f32),                   # residual window
        pltpu.VMEM((2, halo, C), x.dtype),         # halo DMA buffers
        pltpu.SemaphoreType.DMA((2,)),
    ]

    # ---- generation-aware VMEM budget (v5e/v6e: 128 MiB, v7x: 64 MiB) --------
    itemsize = jnp.dtype(x.dtype).itemsize
    blk_bytes = tile_t * C * itemsize
    weight_bytes = 2 * L * C * K * C * 2 + (2 + int(use_gamma)) * L * C * 4
    scratch_bytes = Wp * C * 2 + W * C * 4 + 2 * halo * C * itemsize
    live_tmp_bytes = Wp * K * C * 4 + 4 * W * C * 4   # matmul result + y/y2/x slabs
    need = (4 * blk_bytes                              # double-buffered in/out tiles
            + 2 * weight_bytes                         # double-buffered weights
            + scratch_bytes + live_tmp_bytes + (4 << 20))
    try:
        vmem_cap = int(pltpu.get_tpu_info().vmem_capacity_bytes)
    except Exception:
        vmem_cap = 64 * 2 ** 20                        # conservative (v7x physical)
    vmem_limit = int(min(int(0.85 * vmem_cap), max(32 * 2 ** 20, need)))

    # NOTE: pl.Buffered(1) on the constant-index weight specs would save ~0.6 MiB
    # on v7x; skipped for lowering-compat safety (weights are tiny anyway).
    out = pl.pallas_call(
        kernel,
        out_shape=jax.ShapeDtypeStruct((B, T_main, C), x.dtype),
        grid_spec=pltpu.PrefetchScalarGridSpec(
            num_scalar_prefetch=0,
            grid=(B, nT),
            in_specs=in_specs,
            out_specs=pl.BlockSpec((1, tile_t, C), lambda b, t: (b, t, 0)),
            scratch_shapes=scratch_shapes),
        compiler_params=pltpu.CompilerParams(
            dimension_semantics=("parallel", "parallel"),
            vmem_limit_bytes=vmem_limit),
    )(*operands)
    return out[:, :T, :]


# ---------------------------- pure-JAX reference ------------------------------

def _leaky_relu(v, slope):
    return jnp.where(v >= 0, v, slope * v)


def _conv1d_ref(x, w_taps, b, dilation):
    K = w_taps.shape[0]
    p = dilation * (K - 1) // 2
    y = jax.lax.conv_general_dilated(
        x, w_taps, window_strides=(1,), padding=[(p, p)],
        rhs_dilation=(dilation,), dimension_numbers=("NWC", "WIO", "NWC"),
        precision=jax.lax.Precision.HIGHEST)
    return y + b


def resblock1_ref(x, w1_taps, b1, w2_taps, b2, gammas, dilations=(1, 3, 5),
                  lrelu_slope=0.1):
    for l, d in enumerate(dilations):
        xt = _leaky_relu(x, lrelu_slope)
        xt = _conv1d_ref(xt, w1_taps[l], b1[l], int(d))
        xt = _leaky_relu(xt, lrelu_slope)
        xt = _conv1d_ref(xt, w2_taps[l], b2[l], 1)
        if gammas is not None:
            xt = xt * gammas[l]
        x = xt + x
    return x


if __name__ == "__main__":
    key = jax.random.PRNGKey(0)
    keys = jax.random.split(key, 20)
    kit = iter(keys)

    # Small but representative shapes: C=128 keeps the lane axis dense; T=200 with
    # tile_t=64 exercises interior tiles, both sequence-edge tiles and a ragged tail.
    B, T, C, K = 2, 200, 128, 3
    dilations = (1, 3, 5)
    lrelu_slope = 0.1

    x = jax.random.normal(next(kit), (B, T, C), dtype=jnp.float32)

    def make_weight_norm_conv1d(kv, kg, kb):
        # PyTorch weight layout (C_out, C_in, K); weight_norm: w = g * v / ||v||
        v = 0.05 * jax.random.normal(kv, (C, C, K), dtype=jnp.float32)
        g = jax.random.uniform(kg, (C, 1, 1), jnp.float32, minval=0.5, maxval=1.5)
        b = 0.05 * jax.random.normal(kb, (C,), dtype=jnp.float32)
        norm = jnp.sqrt(jnp.sum(v * v, axis=(1, 2), keepdims=True))
        w = g * v / norm
        w_taps = jnp.transpose(w, (2, 1, 0))       # (K, C_in, C_out)
        return w_taps, b

    w1_l, b1_l, w2_l, b2_l = [], [], [], []
    for _ in range(len(dilations)):
        wt, bb = make_weight_norm_conv1d(next(kit), next(kit), next(kit))
        w1_l.append(wt); b1_l.append(bb)
        wt, bb = make_weight_norm_conv1d(next(kit), next(kit), next(kit))
        w2_l.append(wt); b2_l.append(bb)
    w1_taps = jnp.stack(w1_l); b1 = jnp.stack(b1_l)
    w2_taps = jnp.stack(w2_l); b2 = jnp.stack(b2_l)

    def check(gammas):
        out = resblock1(x, w1_taps, b1, w2_taps, b2, gammas,
                        dilations=dilations, lrelu_slope=lrelu_slope, tile_t=64)
        out = jax.block_until_ready(out)
        ref = resblock1_ref(x, w1_taps, b1, w2_taps, b2, gammas,
                            dilations=dilations, lrelu_slope=lrelu_slope)
        assert out.shape == (B, T, C)
        max_err = float(jnp.max(jnp.abs(out - ref)))
        mean_err = float(jnp.mean(jnp.abs(out - ref)))
        scale = float(jnp.max(jnp.abs(ref)))
        # bf16 matmul operands with f32 accumulation: structural bugs (wrong tap
        # shift / halo / edge mask / weight layout) would give O(0.5..5) errors.
        assert max_err < 3e-2 * scale + 1e-3, (max_err, scale)
        assert mean_err < 5e-3 * scale + 1e-4, (mean_err, scale)

    check(None)                                              # module default (gamma=None)
    check(0.1 * jnp.ones((len(dilations), C), jnp.float32))  # layer-scale path
    print("KERNEL_OK")
</pallas_src>

<mosaic_0001>
module attributes {stable_mosaic.version = 11 : i64} {
  func.func @_resblock1_kernel(%arg0: i32, %arg1: i32, %arg2: memref<1x64x128xf32, #tpu.memory_space<vmem>>, %arg3: memref<2x288x128xf32, #tpu.memory_space<any>>, %arg4: memref<3x128x384xbf16, #tpu.memory_space<vmem>>, %arg5: memref<3x128xf32, #tpu.memory_space<vmem>>, %arg6: memref<3x128x384xbf16, #tpu.memory_space<vmem>>, %arg7: memref<3x128xf32, #tpu.memory_space<vmem>>, %arg8: memref<1x64x128xf32, #tpu.memory_space<vmem>>, %arg9: memref<128x128xbf16, #tpu.memory_space<vmem>>, %arg10: memref<96x128xf32, #tpu.memory_space<vmem>>, %arg11: memref<2x16x128xf32, #tpu.memory_space<vmem>>, %arg12: memref<2x!tpu.dma_semaphore, #tpu.memory_space<semaphore_mem>>) attributes {dimension_semantics = [#tpu.dimension_semantics<parallel>, #tpu.dimension_semantics<parallel>], iteration_bounds = array<i64: 2, 4>, scalar_prefetch = 0 : i64, scratch_operands = 4 : i64, tpu.core_type = #tpu.core_type<tc>, window_params = [{transform_indices = @transform_0, window_bounds = array<i64: 1, 64, 128>}, {}, {pipeline_mode = #tpu.pipeline_mode<synchronous>, transform_indices = @transform_2, window_bounds = array<i64: 3, 128, 384>}, {pipeline_mode = #tpu.pipeline_mode<synchronous>, transform_indices = @transform_3, window_bounds = array<i64: 3, 128>}, {pipeline_mode = #tpu.pipeline_mode<synchronous>, transform_indices = @transform_4, window_bounds = array<i64: 3, 128, 384>}, {pipeline_mode = #tpu.pipeline_mode<synchronous>, transform_indices = @transform_5, window_bounds = array<i64: 3, 128>}, {transform_indices = @transform_6, window_bounds = array<i64: 1, 64, 128>}]} {
    %c64_i32 = arith.constant 64 : i32
    %0 = arith.muli %arg1, %c64_i32 : i32
    %c16_i32 = arith.constant 16 : i32
    %1 = arith.addi %0, %c16_i32 : i32
    %c64_i32_0 = arith.constant 64 : i32
    %2 = arith.addi %1, %c64_i32_0 : i32
    %c0_i32 = arith.constant 0 : i32
    %c0_i32_1 = arith.constant 0 : i32
    %c0_i32_2 = arith.constant 0 : i32
    %3 = tpu.memref_slice %arg3[%arg0, %0, %c0_i32_2] : memref<2x288x128xf32, #tpu.memory_space<any>> -> memref<1x16x128xf32, #tpu.memory_space<any>>
    %4 = tpu.memref_squeeze %3 : memref<1x16x128xf32, #tpu.memory_space<any>> -> memref<16x128xf32, #tpu.memory_space<any>>
    %c0_i32_3 = arith.constant 0 : i32
    %c0_i32_4 = arith.constant 0 : i32
    %5 = tpu.memref_slice %arg11[%c0_i32, %c0_i32_3, %c0_i32_4] : memref<2x16x128xf32, #tpu.memory_space<vmem>> -> memref<1x16x128xf32, #tpu.memory_space<vmem>>
    %6 = tpu.memref_squeeze %5 : memref<1x16x128xf32, #tpu.memory_space<vmem>> -> memref<16x128xf32, #tpu.memory_space<vmem>>
    %7 = tpu.memref_slice %arg12[%c0_i32_1] : memref<2x!tpu.dma_semaphore, #tpu.memory_space<semaphore_mem>> -> memref<1x!tpu.dma_semaphore, #tpu.memory_space<semaphore_mem>>
    %8 = tpu.memref_squeeze %7 : memref<1x!tpu.dma_semaphore, #tpu.memory_space<semaphore_mem>> -> memref<!tpu.dma_semaphore, #tpu.memory_space<semaphore_mem>>
    tpu.enqueue_dma source(%4 : memref<16x128xf32, #tpu.memory_space<any>>) target(%6 : memref<16x128xf32, #tpu.memory_space<vmem>>) target_semaphore(%8 : memref<!tpu.dma_semaphore, #tpu.memory_space<semaphore_mem>>)
    %c1_i32 = arith.constant 1 : i32
    %c1_i32_5 = arith.constant 1 : i32
    %c0_i32_6 = arith.constant 0 : i32
    %9 = tpu.memref_slice %arg3[%arg0, %2, %c0_i32_6] : memref<2x288x128xf32, #tpu.memory_space<any>> -> memref<1x16x128xf32, #tpu.memory_space<any>>
    %10 = tpu.memref_squeeze %9 : memref<1x16x128xf32, #tpu.memory_space<any>> -> memref<16x128xf32, #tpu.memory_space<any>>
    %c0_i32_7 = arith.constant 0 : i32
    %c0_i32_8 = arith.constant 0 : i32
    %11 = tpu.memref_slice %arg11[%c1_i32, %c0_i32_7, %c0_i32_8] : memref<2x16x128xf32, #tpu.memory_space<vmem>> -> memref<1x16x128xf32, #tpu.memory_space<vmem>>
    %12 = tpu.memref_squeeze %11 : memref<1x16x128xf32, #tpu.memory_space<vmem>> -> memref<16x128xf32, #tpu.memory_space<vmem>>
    %13 = tpu.memref_slice %arg12[%c1_i32_5] : memref<2x!tpu.dma_semaphore, #tpu.memory_space<semaphore_mem>> -> memref<1x!tpu.dma_semaphore, #tpu.memory_space<semaphore_mem>>
    %14 = tpu.memref_squeeze %13 : memref<1x!tpu.dma_semaphore, #tpu.memory_space<semaphore_mem>> -> memref<!tpu.dma_semaphore, #tpu.memory_space<semaphore_mem>>
    tpu.enqueue_dma source(%10 : memref<16x128xf32, #tpu.memory_space<any>>) target(%12 : memref<16x128xf32, #tpu.memory_space<vmem>>) target_semaphore(%14 : memref<!tpu.dma_semaphore, #tpu.memory_space<semaphore_mem>>)
    %cst = arith.constant 0.000000e+00 : bf16
    %15 = vector.broadcast %cst : bf16 to vector<16x128xbf16>
    %c0 = arith.constant 0 : index
    %c0_9 = arith.constant 0 : index
    %16 = vector.load %arg9[%c0, %c0_9] : memref<128x128xbf16, #tpu.memory_space<vmem>>, vector<16x128xbf16>
    tpu.vector_store %arg9[%c0, %c0_9], %15 {strides = array<i32>} : memref<128x128xbf16, #tpu.memory_space<vmem>>, vector<16x128xbf16>,
    %cst_10 = arith.constant 0.000000e+00 : bf16
    %17 = vector.broadcast %cst_10 : bf16 to vector<16x128xbf16>
    %c112 = arith.constant 112 : index
    %c0_11 = arith.constant 0 : index
    %18 = vector.load %arg9[%c112, %c0_11] : memref<128x128xbf16, #tpu.memory_space<vmem>>, vector<16x128xbf16>
    tpu.vector_store %arg9[%c112, %c0_11], %17 {strides = array<i32>} : memref<128x128xbf16, #tpu.memory_space<vmem>>, vector<16x128xbf16>,
    %19 = tpu.iota {dimensions = array<i32: 0>} : vector<96x1xi32>
    %c64_i32_12 = arith.constant 64 : i32
    %20 = arith.muli %arg1, %c64_i32_12 : i32
    %c16_i32_13 = arith.constant 16 : i32
    %21 = arith.subi %20, %c16_i32_13 : i32
    %22 = vector.broadcast %21 : i32 to vector<96x1xi32>
    %23 = arith.addi %19, %22 : vector<96x1xi32>
    %c0_i32_14 = arith.constant 0 : i32
    %24 = vector.broadcast %c0_i32_14 : i32 to vector<96x1xi32>
    %25 = arith.cmpi sge, %23, %24 : vector<96x1xi32>
    %c200_i32 = arith.constant 200 : i32
    %26 = vector.broadcast %c200_i32 : i32 to vector<96x1xi32>
    %27 = arith.cmpi slt, %23, %26 : vector<96x1xi32>
    %28 = arith.andi %25, %27 : vector<96x1xi1>
    %29 = arith.extui %28 : vector<96x1xi1> to vector<96x1xi32>
    %30 = arith.sitofp %29 : vector<96x1xi32> to vector<96x1xf32>
    %c0_15 = arith.constant 0 : index
    %c0_16 = arith.constant 0 : index
    %c0_17 = arith.constant 0 : index
    %31 = vector.load %arg2[%c0_15, %c0_16, %c0_17] : memref<1x64x128xf32, #tpu.memory_space<vmem>>, vector<1x64x128xf32>
    %32 = vector.shape_cast %31 : vector<1x64x128xf32> to vector<64x128xf32>
    %c16 = arith.constant 16 : index
    %c0_18 = arith.constant 0 : index
    %33 = vector.load %arg10[%c16, %c0_18] : memref<96x128xf32, #tpu.memory_space<vmem>>, vector<64x128xf32>
    tpu.vector_store %arg10[%c16, %c0_18], %32 {strides = array<i32>} : memref<96x128xf32, #tpu.memory_space<vmem>>, vector<64x128xf32>,
    %c0_i32_19 = arith.constant 0 : i32
    %c0_i32_20 = arith.constant 0 : i32
    %c0_i32_21 = arith.constant 0 : i32
    %34 = tpu.memref_slice %arg3[%arg0, %0, %c0_i32_21] : memref<2x288x128xf32, #tpu.memory_space<any>> -> memref<1x16x128xf32, #tpu.memory_space<any>>
    %35 = tpu.memref_squeeze %34 : memref<1x16x128xf32, #tpu.memory_space<any>> -> memref<16x128xf32, #tpu.memory_space<any>>
    %c0_i32_22 = arith.constant 0 : i32
    %c0_i32_23 = arith.constant 0 : i32
    %36 = tpu.memref_slice %arg11[%c0_i32_19, %c0_i32_22, %c0_i32_23] : memref<2x16x128xf32, #tpu.memory_space<vmem>> -> memref<1x16x128xf32, #tpu.memory_space<vmem>>
    %37 = tpu.memref_squeeze %36 : memref<1x16x128xf32, #tpu.memory_space<vmem>> -> memref<16x128xf32, #tpu.memory_space<vmem>>
    %38 = tpu.memref_slice %arg12[%c0_i32_20] : memref<2x!tpu.dma_semaphore, #tpu.memory_space<semaphore_mem>> -> memref<1x!tpu.dma_semaphore, #tpu.memory_space<semaphore_mem>>
    %39 = tpu.memref_squeeze %38 : memref<1x!tpu.dma_semaphore, #tpu.memory_space<semaphore_mem>> -> memref<!tpu.dma_semaphore, #tpu.memory_space<semaphore_mem>>
    tpu.wait_dma2 semaphore(%39 : memref<!tpu.dma_semaphore, #tpu.memory_space<semaphore_mem>>) src(%35 : memref<16x128xf32, #tpu.memory_space<any>>) dst(%37 : memref<16x128xf32, #tpu.memory_space<vmem>>)
    %c1_i32_24 = arith.constant 1 : i32
    %c1_i32_25 = arith.constant 1 : i32
    %c0_i32_26 = arith.constant 0 : i32
    %40 = tpu.memref_slice %arg3[%arg0, %2, %c0_i32_26] : memref<2x288x128xf32, #tpu.memory_space<any>> -> memref<1x16x128xf32, #tpu.memory_space<any>>
    %41 = tpu.memref_squeeze %40 : memref<1x16x128xf32, #tpu.memory_space<any>> -> memref<16x128xf32, #tpu.memory_space<any>>
    %c0_i32_27 = arith.constant 0 : i32
    %c0_i32_28 = arith.constant 0 : i32
    %42 = tpu.memref_slice %arg11[%c1_i32_24, %c0_i32_27, %c0_i32_28] : memref<2x16x128xf32, #tpu.memory_space<vmem>> -> memref<1x16x128xf32, #tpu.memory_space<vmem>>
    %43 = tpu.memref_squeeze %42 : memref<1x16x128xf32, #tpu.memory_space<vmem>> -> memref<16x128xf32, #tpu.memory_space<vmem>>
    %44 = tpu.memref_slice %arg12[%c1_i32_25] : memref<2x!tpu.dma_semaphore, #tpu.memory_space<semaphore_mem>> -> memref<1x!tpu.dma_semaphore, #tpu.memory_space<semaphore_mem>>
    %45 = tpu.memref_squeeze %44 : memref<1x!tpu.dma_semaphore, #tpu.memory_space<semaphore_mem>> -> memref<!tpu.dma_semaphore, #tpu.memory_space<semaphore_mem>>
    tpu.wait_dma2 semaphore(%45 : memref<!tpu.dma_semaphore, #tpu.memory_space<semaphore_mem>>) src(%41 : memref<16x128xf32, #tpu.memory_space<any>>) dst(%43 : memref<16x128xf32, #tpu.memory_space<vmem>>)
    %c0_29 = arith.constant 0 : index
    %c0_30 = arith.constant 0 : index
    %c0_31 = arith.constant 0 : index
    %46 = vector.load %arg11[%c0_29, %c0_30, %c0_31] : memref<2x16x128xf32, #tpu.memory_space<vmem>>, vector<1x16x128xf32>
    %47 = vector.shape_cast %46 : vector<1x16x128xf32> to vector<16x128xf32>
    %c0_32 = arith.constant 0 : index
    %c0_33 = arith.constant 0 : index
    %48 = vector.load %arg10[%c0_32, %c0_33] : memref<96x128xf32, #tpu.memory_space<vmem>>, vector<16x128xf32>
    tpu.vector_store %arg10[%c0_32, %c0_33], %47 {strides = array<i32>} : memref<96x128xf32, #tpu.memory_space<vmem>>, vector<16x128xf32>,
    %c1 = arith.constant 1 : index
    %c0_34 = arith.constant 0 : index
    %c0_35 = arith.constant 0 : index
    %49 = vector.load %arg11[%c1, %c0_34, %c0_35] : memref<2x16x128xf32, #tpu.memory_space<vmem>>, vector<1x16x128xf32>
    %50 = vector.shape_cast %49 : vector<1x16x128xf32> to vector<16x128xf32>
    %c80 = arith.constant 80 : index
    %c0_36 = arith.constant 0 : index
    %51 = vector.load %arg10[%c80, %c0_36] : memref<96x128xf32, #tpu.memory_space<vmem>>, vector<16x128xf32>
    tpu.vector_store %arg10[%c80, %c0_36], %50 {strides = array<i32>} : memref<96x128xf32, #tpu.memory_space<vmem>>, vector<16x128xf32>,
    %c0_37 = arith.constant 0 : index
    %c0_38 = arith.constant 0 : index
    %52 = vector.load %arg10[%c0_37, %c0_38] : memref<96x128xf32, #tpu.memory_space<vmem>>, vector<96x128xf32>
    %53 = vector.broadcast %30 : vector<96x1xf32> to vector<96x128xf32>
    %54 = arith.mulf %52, %53 : vector<96x128xf32>
    %cst_39 = arith.constant 1.000000e-01 : f32
    %55 = vector.broadcast %cst_39 : f32 to vector<96x128xf32>
    %56 = arith.mulf %55, %54 : vector<96x128xf32>
    %57 = arith.maximumf %54, %56 : vector<96x128xf32>
    %58 = arith.truncf %57 : vector<96x128xf32> to vector<96x128xbf16>
    %c16_40 = arith.constant 16 : index
    %c0_41 = arith.constant 0 : index
    %59 = vector.load %arg9[%c16_40, %c0_41] : memref<128x128xbf16, #tpu.memory_space<vmem>>, vector<96x128xbf16>
    tpu.vector_store %arg9[%c16_40, %c0_41], %58 {strides = array<i32>} : memref<128x128xbf16, #tpu.memory_space<vmem>>, vector<96x128xbf16>,
    %c0_42 = arith.constant 0 : index
    %c0_43 = arith.constant 0 : index
    %60 = vector.load %arg9[%c0_42, %c0_43] : memref<128x128xbf16, #tpu.memory_space<vmem>>, vector<128x128xbf16>
    %c0_44 = arith.constant 0 : index
    %c0_45 = arith.constant 0 : index
    %c0_46 = arith.constant 0 : index
    %61 = vector.load %arg4[%c0_44, %c0_45, %c0_46] : memref<3x128x384xbf16, #tpu.memory_space<vmem>>, vector<1x128x384xbf16>
    %62 = vector.shape_cast %61 : vector<1x128x384xbf16> to vector<128x384xbf16>
    %cst_47 = arith.constant dense<0.000000e+00> : vector<128x384xf32>
    %63 = tpu.matmul %60, %62, %cst_47 {dimension_numbers = #tpu.dot_dimension_numbers<[1], [0], [0], [1], [0, 0, 1, 1], [], []>} : vector<128x128xbf16>, vector<128x384xbf16>, vector<128x384xf32> -> vector<128x384xf32>
    %c0_48 = arith.constant 0 : index
    %c0_49 = arith.constant 0 : index
    %64 = vector.load %arg5[%c0_48, %c0_49] : memref<3x128xf32, #tpu.memory_space<vmem>>, vector<1x128xf32>
    %65 = vector.extract_strided_slice %63 {offsets = [15, 0], sizes = [96, 128], strides = [1, 1]} : vector<128x384xf32> to vector<96x128xf32>
    %66 = vector.broadcast %64 : vector<1x128xf32> to vector<96x128xf32>
    %67 = arith.addf %66, %65 : vector<96x128xf32>
    %68 = vector.extract_strided_slice %63 {offsets = [16, 128], sizes = [96, 128], strides = [1, 1]} : vector<128x384xf32> to vector<96x128xf32>
    %69 = arith.addf %67, %68 : vector<96x128xf32>
    %70 = vector.extract_strided_slice %63 {offsets = [17, 256], sizes = [96, 128], strides = [1, 1]} : vector<128x384xf32> to vector<96x128xf32>
    %71 = arith.addf %69, %70 : vector<96x128xf32>
    %72 = vector.broadcast %30 : vector<96x1xf32> to vector<96x128xf32>
    %73 = arith.mulf %71, %72 : vector<96x128xf32>
    %cst_50 = arith.constant 1.000000e-01 : f32
    %74 = vector.broadcast %cst_50 : f32 to vector<96x128xf32>
    %75 = arith.mulf %74, %73 : vector<96x128xf32>
    %76 = arith.maximumf %73, %75 : vector<96x128xf32>
    %77 = arith.truncf %76 : vector<96x128xf32> to vector<96x128xbf16>
    %c16_51 = arith.constant 16 : index
    %c0_52 = arith.constant 0 : index
    %78 = vector.load %arg9[%c16_51, %c0_52] : memref<128x128xbf16, #tpu.memory_space<vmem>>, vector<96x128xbf16>
    tpu.vector_store %arg9[%c16_51, %c0_52], %77 {strides = array<i32>} : memref<128x128xbf16, #tpu.memory_space<vmem>>, vector<96x128xbf16>,
    %c0_53 = arith.constant 0 : index
    %c0_54 = arith.constant 0 : index
    %79 = vector.load %arg9[%c0_53, %c0_54] : memref<128x128xbf16, #tpu.memory_space<vmem>>, vector<128x128xbf16>
    %c0_55 = arith.constant 0 : index
    %c0_56 = arith.constant 0 : index
    %c0_57 = arith.constant 0 : index
    %80 = vector.load %arg6[%c0_55, %c0_56, %c0_57] : memref<3x128x384xbf16, #tpu.memory_space<vmem>>, vector<1x128x384xbf16>
    %81 = vector.shape_cast %80 : vector<1x128x384xbf16> to vector<128x384xbf16>
    %cst_58 = arith.constant dense<0.000000e+00> : vector<128x384xf32>
    %82 = tpu.matmul %79, %81, %cst_58 {dimension_numbers = #tpu.dot_dimension_numbers<[1], [0], [0], [1], [0, 0, 1, 1], [], []>} : vector<128x128xbf16>, vector<128x384xbf16>, vector<128x384xf32> -> vector<128x384xf32>
    %c0_59 = arith.constant 0 : index
    %c0_60 = arith.constant 0 : index
    %83 = vector.load %arg7[%c0_59, %c0_60] : memref<3x128xf32, #tpu.memory_space<vmem>>, vector<1x128xf32>
    %84 = vector.extract_strided_slice %82 {offsets = [15, 0], sizes = [96, 128], strides = [1, 1]} : vector<128x384xf32> to vector<96x128xf32>
    %85 = vector.broadcast %83 : vector<1x128xf32> to vector<96x128xf32>
    %86 = arith.addf %85, %84 : vector<96x128xf32>
    %87 = vector.extract_strided_slice %82 {offsets = [16, 128], sizes = [96, 128], strides = [1, 1]} : vector<128x384xf32> to vector<96x128xf32>
    %88 = arith.addf %86, %87 : vector<96x128xf32>
    %89 = vector.extract_strided_slice %82 {offsets = [17, 256], sizes = [96, 128], strides = [1, 1]} : vector<128x384xf32> to vector<96x128xf32>
    %90 = arith.addf %88, %89 : vector<96x128xf32>
    %91 = arith.addf %90, %52 : vector<96x128xf32>
    %92 = vector.broadcast %30 : vector<96x1xf32> to vector<96x128xf32>
    %93 = arith.mulf %91, %92 : vector<96x128xf32>
    %cst_61 = arith.constant 1.000000e-01 : f32
    %94 = vector.broadcast %cst_61 : f32 to vector<96x128xf32>
    %95 = arith.mulf %94, %93 : vector<96x128xf32>
    %96 = arith.maximumf %93, %95 : vector<96x128xf32>
    %97 = arith.truncf %96 : vector<96x128xf32> to vector<96x128xbf16>
    %c16_62 = arith.constant 16 : index
    %c0_63 = arith.constant 0 : index
    %98 = vector.load %arg9[%c16_62, %c0_63] : memref<128x128xbf16, #tpu.memory_space<vmem>>, vector<96x128xbf16>
    tpu.vector_store %arg9[%c16_62, %c0_63], %97 {strides = array<i32>} : memref<128x128xbf16, #tpu.memory_space<vmem>>, vector<96x128xbf16>,
    %c0_64 = arith.constant 0 : index
    %c0_65 = arith.constant 0 : index
    %99 = vector.load %arg9[%c0_64, %c0_65] : memref<128x128xbf16, #tpu.memory_space<vmem>>, vector<128x128xbf16>
    %c1_66 = arith.constant 1 : index
    %c0_67 = arith.constant 0 : index
    %c0_68 = arith.constant 0 : index
    %100 = vector.load %arg4[%c1_66, %c0_67, %c0_68] : memref<3x128x384xbf16, #tpu.memory_space<vmem>>, vector<1x128x384xbf16>
    %101 = vector.shape_cast %100 : vector<1x128x384xbf16> to vector<128x384xbf16>
    %cst_69 = arith.constant dense<0.000000e+00> : vector<128x384xf32>
    %102 = tpu.matmul %99, %101, %cst_69 {dimension_numbers = #tpu.dot_dimension_numbers<[1], [0], [0], [1], [0, 0, 1, 1], [], []>} : vector<128x128xbf16>, vector<128x384xbf16>, vector<128x384xf32> -> vector<128x384xf32>
    %c1_70 = arith.constant 1 : index
    %c0_71 = arith.constant 0 : index
    %103 = vector.load %arg5[%c1_70, %c0_71] : memref<3x128xf32, #tpu.memory_space<vmem>>, vector<1x128xf32>
    %104 = vector.extract_strided_slice %102 {offsets = [13, 0], sizes = [96, 128], strides = [1, 1]} : vector<128x384xf32> to vector<96x128xf32>
    %105 = vector.broadcast %103 : vector<1x128xf32> to vector<96x128xf32>
    %106 = arith.addf %105, %104 : vector<96x128xf32>
    %107 = vector.extract_strided_slice %102 {offsets = [16, 128], sizes = [96, 128], strides = [1, 1]} : vector<128x384xf32> to vector<96x128xf32>
    %108 = arith.addf %106, %107 : vector<96x128xf32>
    %109 = vector.extract_strided_slice %102 {offsets = [19, 256], sizes = [96, 128], strides = [1, 1]} : vector<128x384xf32> to vector<96x128xf32>
    %110 = arith.addf %108, %109 : vector<96x128xf32>
    %111 = vector.broadcast %30 : vector<96x1xf32> to vector<96x128xf32>
    %112 = arith.mulf %110, %111 : vector<96x128xf32>
    %cst_72 = arith.constant 1.000000e-01 : f32
    %113 = vector.broadcast %cst_72 : f32 to vector<96x128xf32>
    %114 = arith.mulf %113, %112 : vector<96x128xf32>
    %115 = arith.maximumf %112, %114 : vector<96x128xf32>
    %116 = arith.truncf %115 : vector<96x128xf32> to vector<96x128xbf16>
    %c16_73 = arith.constant 16 : index
    %c0_74 = arith.constant 0 : index
    %117 = vector.load %arg9[%c16_73, %c0_74] : memref<128x128xbf16, #tpu.memory_space<vmem>>, vector<96x128xbf16>
    tpu.vector_store %arg9[%c16_73, %c0_74], %116 {strides = array<i32>} : memref<128x128xbf16, #tpu.memory_space<vmem>>, vector<96x128xbf16>,
    %c0_75 = arith.constant 0 : index
    %c0_76 = arith.constant 0 : index
    %118 = vector.load %arg9[%c0_75, %c0_76] : memref<128x128xbf16, #tpu.memory_space<vmem>>, vector<128x128xbf16>
    %c1_77 = arith.constant 1 : index
    %c0_78 = arith.constant 0 : index
    %c0_79 = arith.constant 0 : index
    %119 = vector.load %arg6[%c1_77, %c0_78, %c0_79] : memref<3x128x384xbf16, #tpu.memory_space<vmem>>, vector<1x128x384xbf16>
    %120 = vector.shape_cast %119 : vector<1x128x384xbf16> to vector<128x384xbf16>
    %cst_80 = arith.constant dense<0.000000e+00> : vector<128x384xf32>
    %121 = tpu.matmul %118, %120, %cst_80 {dimension_numbers = #tpu.dot_dimension_numbers<[1], [0], [0], [1], [0, 0, 1, 1], [], []>} : vector<128x128xbf16>, vector<128x384xbf16>, vector<128x384xf32> -> vector<128x384xf32>
    %c1_81 = arith.constant 1 : index
    %c0_82 = arith.constant 0 : index
    %122 = vector.load %arg7[%c1_81, %c0_82] : memref<3x128xf32, #tpu.memory_space<vmem>>, vector<1x128xf32>
    %123 = vector.extract_strided_slice %121 {offsets = [15, 0], sizes = [96, 128], strides = [1, 1]} : vector<128x384xf32> to vector<96x128xf32>
    %124 = vector.broadcast %122 : vector<1x128xf32> to vector<96x128xf32>
    %125 = arith.addf %124, %123 : vector<96x128xf32>
    %126 = vector.extract_strided_slice %121 {offsets = [16, 128], sizes = [96, 128], strides = [1, 1]} : vector<128x384xf32> to vector<96x128xf32>
    %127 = arith.addf %125, %126 : vector<96x128xf32>
    %128 = vector.extract_strided_slice %121 {offsets = [17, 256], sizes = [96, 128], strides = [1, 1]} : vector<128x384xf32> to vector<96x128xf32>
    %129 = arith.addf %127, %128 : vector<96x128xf32>
    %130 = arith.addf %129, %91 : vector<96x128xf32>
    %131 = vector.broadcast %30 : vector<96x1xf32> to vector<96x128xf32>
    %132 = arith.mulf %130, %131 : vector<96x128xf32>
    %cst_83 = arith.constant 1.000000e-01 : f32
    %133 = vector.broadcast %cst_83 : f32 to vector<96x128xf32>
    %134 = arith.mulf %133, %132 : vector<96x128xf32>
    %135 = arith.maximumf %132, %134 : vector<96x128xf32>
    %136 = arith.truncf %135 : vector<96x128xf32> to vector<96x128xbf16>
    %c16_84 = arith.constant 16 : index
    %c0_85 = arith.constant 0 : index
    %137 = vector.load %arg9[%c16_84, %c0_85] : memref<128x128xbf16, #tpu.memory_space<vmem>>, vector<96x128xbf16>
    tpu.vector_store %arg9[%c16_84, %c0_85], %136 {strides = array<i32>} : memref<128x128xbf16, #tpu.memory_space<vmem>>, vector<96x128xbf16>,
    %c0_86 = arith.constant 0 : index
    %c0_87 = arith.constant 0 : index
    %138 = vector.load %arg9[%c0_86, %c0_87] : memref<128x128xbf16, #tpu.memory_space<vmem>>, vector<128x128xbf16>
    %c2 = arith.constant 2 : index
    %c0_88 = arith.constant 0 : index
    %c0_89 = arith.constant 0 : index
    %139 = vector.load %arg4[%c2, %c0_88, %c0_89] : memref<3x128x384xbf16, #tpu.memory_space<vmem>>, vector<1x128x384xbf16>
    %140 = vector.shape_cast %139 : vector<1x128x384xbf16> to vector<128x384xbf16>
    %cst_90 = arith.constant dense<0.000000e+00> : vector<128x384xf32>
    %141 = tpu.matmul %138, %140, %cst_90 {dimension_numbers = #tpu.dot_dimension_numbers<[1], [0], [0], [1], [0, 0, 1, 1], [], []>} : vector<128x128xbf16>, vector<128x384xbf16>, vector<128x384xf32> -> vector<128x384xf32>
    %c2_91 = arith.constant 2 : index
    %c0_92 = arith.constant 0 : index
    %142 = vector.load %arg5[%c2_91, %c0_92] : memref<3x128xf32, #tpu.memory_space<vmem>>, vector<1x128xf32>
    %143 = vector.extract_strided_slice %141 {offsets = [11, 0], sizes = [96, 128], strides = [1, 1]} : vector<128x384xf32> to vector<96x128xf32>
    %144 = vector.broadcast %142 : vector<1x128xf32> to vector<96x128xf32>
    %145 = arith.addf %144, %143 : vector<96x128xf32>
    %146 = vector.extract_strided_slice %141 {offsets = [16, 128], sizes = [96, 128], strides = [1, 1]} : vector<128x384xf32> to vector<96x128xf32>
    %147 = arith.addf %145, %146 : vector<96x128xf32>
    %148 = vector.extract_strided_slice %141 {offsets = [21, 256], sizes = [96, 128], strides = [1, 1]} : vector<128x384xf32> to vector<96x128xf32>
    %149 = arith.addf %147, %148 : vector<96x128xf32>
    %150 = vector.broadcast %30 : vector<96x1xf32> to vector<96x128xf32>
    %151 = arith.mulf %149, %150 : vector<96x128xf32>
    %cst_93 = arith.constant 1.000000e-01 : f32
    %152 = vector.broadcast %cst_93 : f32 to vector<96x128xf32>
    %153 = arith.mulf %152, %151 : vector<96x128xf32>
    %154 = arith.maximumf %151, %153 : vector<96x128xf32>
    %155 = arith.truncf %154 : vector<96x128xf32> to vector<96x128xbf16>
    %c16_94 = arith.constant 16 : index
    %c0_95 = arith.constant 0 : index
    %156 = vector.load %arg9[%c16_94, %c0_95] : memref<128x128xbf16, #tpu.memory_space<vmem>>, vector<96x128xbf16>
    tpu.vector_store %arg9[%c16_94, %c0_95], %155 {strides = array<i32>} : memref<128x128xbf16, #tpu.memory_space<vmem>>, vector<96x128xbf16>,
    %c0_96 = arith.constant 0 : index
    %c0_97 = arith.constant 0 : index
    %157 = vector.load %arg9[%c0_96, %c0_97] : memref<128x128xbf16, #tpu.memory_space<vmem>>, vector<128x128xbf16>
    %c2_98 = arith.constant 2 : index
    %c0_99 = arith.constant 0 : index
    %c0_100 = arith.constant 0 : index
    %158 = vector.load %arg6[%c2_98, %c0_99, %c0_100] : memref<3x128x384xbf16, #tpu.memory_space<vmem>>, vector<1x128x384xbf16>
    %159 = vector.shape_cast %158 : vector<1x128x384xbf16> to vector<128x384xbf16>
    %cst_101 = arith.constant dense<0.000000e+00> : vector<128x384xf32>
    %160 = tpu.matmul %157, %159, %cst_101 {dimension_numbers = #tpu.dot_dimension_numbers<[1], [0], [0], [1], [0, 0, 1, 1], [], []>} : vector<128x128xbf16>, vector<128x384xbf16>, vector<128x384xf32> -> vector<128x384xf32>
    %c2_102 = arith.constant 2 : index
    %c0_103 = arith.constant 0 : index
    %161 = vector.load %arg7[%c2_102, %c0_103] : memref<3x128xf32, #tpu.memory_space<vmem>>, vector<1x128xf32>
    %162 = vector.extract_strided_slice %160 {offsets = [15, 0], sizes = [96, 128], strides = [1, 1]} : vector<128x384xf32> to vector<96x128xf32>
    %163 = vector.broadcast %161 : vector<1x128xf32> to vector<96x128xf32>
    %164 = arith.addf %163, %162 : vector<96x128xf32>
    %165 = vector.extract_strided_slice %160 {offsets = [16, 128], sizes = [96, 128], strides = [1, 1]} : vector<128x384xf32> to vector<96x128xf32>
    %166 = arith.addf %164, %165 : vector<96x128xf32>
    %167 = vector.extract_strided_slice %160 {offsets = [17, 256], sizes = [96, 128], strides = [1, 1]} : vector<128x384xf32> to vector<96x128xf32>
    %168 = arith.addf %166, %167 : vector<96x128xf32>
    %169 = arith.addf %168, %130 : vector<96x128xf32>
    %170 = vector.extract_strided_slice %169 {offsets = [16, 0], sizes = [64, 128], strides = [1, 1]} : vector<96x128xf32> to vector<64x128xf32>
    %c0_104 = arith.constant 0 : index
    %c0_105 = arith.constant 0 : index
    %c0_106 = arith.constant 0 : index
    %171 = vector.load %arg8[%c0_104, %c0_105, %c0_106] : memref<1x64x128xf32, #tpu.memory_space<vmem>>, vector<1x64x128xf32>
    %172 = vector.shape_cast %171 : vector<1x64x128xf32> to vector<64x128xf32>
    %173 = vector.shape_cast %170 : vector<64x128xf32> to vector<1x64x128xf32>
    tpu.vector_store %arg8[%c0_104, %c0_105, %c0_106], %173 {strides = array<i32>} : memref<1x64x128xf32, #tpu.memory_space<vmem>>, vector<1x64x128xf32>,
    return
  }
  func.func @transform_0(%arg0: i32, %arg1: i32) -> (i32, i32, i32) {
    %c0_i32 = arith.constant 0 : i32
    %c0_i32_0 = arith.constant 0 : i32
    return %arg0, %arg1, %c0_i32 : i32, i32, i32
  }
  func.func @transform_2(%arg0: i32, %arg1: i32) -> (i32, i32, i32) {
    %c0_i32 = arith.constant 0 : i32
    %c0_i32_0 = arith.constant 0 : i32
    %c0_i32_1 = arith.constant 0 : i32
    %c0_i32_2 = arith.constant 0 : i32
    return %c0_i32, %c0_i32_0, %c0_i32_1 : i32, i32, i32
  }
  func.func @transform_3(%arg0: i32, %arg1: i32) -> (i32, i32) {
    %c0_i32 = arith.constant 0 : i32
    %c0_i32_0 = arith.constant 0 : i32
    %c0_i32_1 = arith.constant 0 : i32
    return %c0_i32, %c0_i32_0 : i32, i32
  }
  func.func @transform_4(%arg0: i32, %arg1: i32) -> (i32, i32, i32) {
    %c0_i32 = arith.constant 0 : i32
    %c0_i32_0 = arith.constant 0 : i32
    %c0_i32_1 = arith.constant 0 : i32
    %c0_i32_2 = arith.constant 0 : i32
    return %c0_i32, %c0_i32_0, %c0_i32_1 : i32, i32, i32
  }
  func.func @transform_5(%arg0: i32, %arg1: i32) -> (i32, i32) {
    %c0_i32 = arith.constant 0 : i32
    %c0_i32_0 = arith.constant 0 : i32
    %c0_i32_1 = arith.constant 0 : i32
    return %c0_i32, %c0_i32_0 : i32, i32
  }
  func.func @transform_6(%arg0: i32, %arg1: i32) -> (i32, i32, i32) {
    %c0_i32 = arith.constant 0 : i32
    %c0_i32_0 = arith.constant 0 : i32
    return %arg0, %arg1, %c0_i32 : i32, i32, i32
  }
}

</mosaic_0001>

<bundles_post_ra>
// kernel: tpu_custom_call.1
= control target key start
LH: loop header
LB: loop body
LE: loop exit
PB: predicated region body
PF: predicated region fallthrough
CT: control target
= control target key end

     0   :  { %s6755_s0 = inlined_call_operand.hbm [shape: f32[2,256,128], index: 0, kind: input, shape index: {}]   ;;  %s6756_s1 = inlined_call_operand.hbm [shape: f32[2,288,128], index: 1, kind: input, shape index: {}]   ;;  %s6757_s2 = inlined_call_operand.hbm [shape: bf16[3,128,384], index: 2, kind: input, shape index: {}]   ;;  %s6758_s3 = inlined_call_operand.vmem [shape: f32[3,128], index: 3, kind: input, shape index: {}]   ;;  %s6759_s4 = inlined_call_operand.hbm [shape: bf16[3,128,384], index: 4, kind: input, shape index: {}]   ;;  %s6760_s5 = inlined_call_operand.vmem [shape: f32[3,128], index: 5, kind: input, shape index: {}]   ;;  %s6761_s6 = inlined_call_operand.hbm [shape: f32[2,256,128], index: 6, kind: output, shape index: {}]  }
   0x1   :  { %6793 = sst [smem:[#allocation43_spill]] %s6757_s2 }
   0x2   :  { %6794 = sst [smem:[#allocation44_spill]] %s6759_s4 }
   0x3   :  { %6795 = sst [smem:[#allocation45_spill]] %s6760_s5 }
   0x4   :  { %6796 = sst [smem:[#allocation46_spill]] %s6761_s6 }
   0x5   :  { %11 = vsyncpa [#allocation7], 0 }
   0x6   :  { %13 = vsyncpa [#allocation7 + $0x1], 0 }
   0x7   :  { %14 = vsyncpa [#allocation10], 0 }
   0x8   :  { %15 = vsyncpa [#allocation8], 0 }
   0x9   :  { %17 = vsyncpa [#allocation8 + $0x1], 0  ;;  %s5575_s21 = smov 0   ;;  %s5577_s22 = smov 0  }
   0xa   :  { %s5579_s23 = smov 0   ;;  %s5581_s24 = smov 0  }
   0xb   :  { %s5583_s25 = smov 0   ;;  %s5585_s26 = smov 0  }
   0xc   :  { %s5587_s27 = smov 0   ;;  %s5589_s28 = smov 0  }
   0xd LB: > { %6797 = sst [smem:[#allocation24_spill]] %s5496_s21  ;;  %s4500_s29 = sadd.s32 4294967295, %s5524_s28   ;;  %s5524_s28 = sphi %s5589_s28, %s23_s28   ;;  %s5520_s27 = sphi %s5587_s27, %s6871_s27   ;;  %s5516_s26 = sphi %s5585_s26, %s6870_s26   ;;  %s5512_s25 = sphi %s5583_s25, %s6869_s25   ;;  %s5508_s24 = sphi %s5581_s24, %s6868_s24   ;;  %s5504_s23 = sphi %s5579_s23, %s6867_s23   ;;  %s5500_s22 = sphi %s5577_s22, %s6866_s22   ;;  %s5496_s21 = sphi %s5575_s21, %s6865_s21  }
   0xe   : > { %s4501_s30 = sadd.s32 4294967294, %s5524_s28   ;;  %p57_p0 = scmp.ne.s32.totalorder %s5500_s22, %s5496_s21 }
   0xf   : > { %p5619_p1 = scmp.eq.s32.totalorder %s4500_s29, 0  ;;  %p5623_p2 = scmp.eq.s32.totalorder %s4500_s29, 7 }
  0x10   : > { %p173_p3 = scmp.eq.s32.totalorder %s4501_s30, 7  ;;  %p4502_p5 = scmp.ge.s32.totalorder %s5524_s28, 1 }
  0x11   : > { %s6798_s7 = scalar_select %p5619_p1, 1, 0 }
  0x12   : > { %s6799_s8 = scalar_select %p5623_p2, 1, 0 }
  0x13   : > { %p5629_p4 = por %p5619_p1, %p57_p0  ;;  %p5634_p6 = por %p173_p3, %p57_p0 }
  0x14   : > { %p180_p7 = scmp.lt.s32.totalorder %s5524_s28, 9  ;;  %s5526_s12 = smov [#allocation9]  }
  0x15   : > { %s6800_s9 = scalar_select %p5629_p4, 1, 0 }
  0x16   : > { %s6801_s10 = scalar_select %p5634_p6, 1, 0 }
  0x17   : > { %p5639_p8 = pnand %p4502_p5, %p180_p7  ;;  %s192_s13 = sshll.u32 %s5526_s12, 4  ;;  %s193_s13 = int_to_ptr.vmem [resolvable:$true] %s192_s13 }
  0x18   : > { %6802 = sst [smem:[#allocation25_spill]] %s6801_s10  ;;  %s5527_s15 = smov [#allocation11]  }
  0x19   : > { %s6803_s11 = scalar_select %p5639_p8, 1, 0 }
  0x1a   : > { %p4990_p9 = pneg %p5639_p8  ;;  %s208_s16 = sshll.u32 %s5527_s15, 4  ;;  %s5651_s16 = int_to_ptr.vmem [resolvable:$true] %s208_s16 }
  0x1b   : > { %s6805_s2 = sld [smem:[#allocation43_spill]] }
  0x1c   : > { %p5647_p10 = pnand %p4990_p9, %p5619_p1 }
  0x1e   : > { %p5285_p12 = pneg %p5647_p10 }
  0x21   : > { %s5283_s19 = scalar_lea.hbm %s6805_s2, 9216 }
  0x22   : > { %p5284_p11 = scmp.ne.s32.totalorder %s6805_s2, %s5283_s19  ;;  %p5290_p3 = scmp.lt.u32.totalorder %s5283_s19, %s6805_s2 }
  0x24   : > { %p5286_p13 = pnand %p5285_p12, %p5284_p11 }
  0x26   : > { %p5287_p0 = pneg %p5286_p13 }
  0x28   : > { %p5292_p5 = pnand %p5290_p3, %p5287_p0 }
  0x2a   : > { %5295 = shalt.err (!%p5292_p5)
}
  0x2b   : > { %s5296_s15 = scalar_lea.vmem %s193_s13, 9216  ;;  %p5304_p1 = scmp.lt.s32.totalorder %s193_s13, %s193_s13 }
  0x2c   : > { %p5297_p7 = scmp.ne.s32.totalorder %s193_s13, %s5296_s15  ;;  %p5305_p4 = scmp.lt.s32.totalorder %s5296_s15, %s5296_s15 }
  0x2e   : > { %p5299_p9 = pnand %p5297_p7, %p5285_p12  ;;  %p5306_p8 = por %p5305_p4, %p5304_p1 }
  0x30   : > { %p5300_p6 = pneg %p5299_p9 }
  0x32   : > { %p5307_p2 = pnand %p5306_p8, %p5300_p6 }
  0x34   : > { %5310 = shalt.err (!%p5307_p2)
}
  0x35   : > { %s5528_s17 = smov 192   ;;  %s5529_s18 = smov 12  }
  0x36   : > { %4993 = dma.hbm_to_vmem [thread:$0]  (!%p5647_p10), %s6805_s2, 9216, %s193_s13, [#allocation10], %s5528_s17, %s5528_s17, %s5529_s18  }
  0x37   : > { %s6806_s4 = sld [smem:[#allocation44_spill]] }
  0x3d   : > { %s5311_s12 = scalar_lea.hbm %s6806_s4, 9216 }
  0x3e   : > { %p5312_p11 = scmp.ne.s32.totalorder %s6806_s4, %s5311_s12  ;;  %p5318_p4 = scmp.lt.u32.totalorder %s5311_s12, %s6806_s4 }
  0x40   : > { %p5314_p1 = pnand %p5312_p11, %p5285_p12 }
  0x42   : > { %p5315_p2 = pneg %p5314_p1 }
  0x44   : > { %p5320_p6 = pnand %p5318_p4, %p5315_p2 }
  0x46   : > { %5323 = shalt.err (!%p5320_p6)
}
  0x47   : > { %s5324_s13 = scalar_lea.vmem %s5651_s16, 9216  ;;  %p5332_p3 = scmp.lt.s32.totalorder %s5651_s16, %s5651_s16 }
  0x48   : > { %p5325_p8 = scmp.ne.s32.totalorder %s5651_s16, %s5324_s13  ;;  %p5333_p5 = scmp.lt.s32.totalorder %s5324_s13, %s5324_s13 }
  0x4a   : > { %p5327_p13 = pnand %p5325_p8, %p5285_p12  ;;  %p5334_p7 = por %p5333_p5, %p5332_p3 }
  0x4c   : > { %p5328_p0 = pneg %p5327_p13 }
  0x4e   : > { %p5335_p9 = pnand %p5334_p7, %p5328_p0 }
  0x50   : > { %5338 = shalt.err (!%p5335_p9)
}
  0x51   : > { %4996 = dma.hbm_to_vmem [thread:$0]  (!%p5647_p10), %s6806_s4, 9216, %s5651_s16, [#allocation10], %s5528_s17, %s5528_s17, %s5529_s18  }
  0x52   : > { %s32_s10 = sadd.s32 1, %s5516_s26  ;;  %s35_s19 = sadd.s32 1, %s5520_s27 }
  0x53   : > { %p33_p12 = scmp.ge.s32.totalorder %s32_s10, 4  ;;  %s44_s14 = sadd.s32 1, %s5504_s23 }
  0x54   : > { %p51_p11 = scmp.ne.s32.totalorder %s5504_s23, %s5500_s22  ;;  %p52_p1 = scmp.eq.s32.totalorder %s5524_s28, 0 }
  0x55   : > { %s6873_s10 = smov (%p33_p12, %s32_s10), 0  ;;  %s6875_s19 = smov (!%p33_p12, %s35_s19), %s5520_s27 }
  0x56   : > { %6807 = sst [smem:[#allocation26_spill]] %s6873_s10  ;;  %s40_s20 = ssub.s32 %s5516_s26, %s6873_s10 }
  0x57   : > { %p5711_p2 = por %p52_p1, %p51_p11  ;;  %p37_p10 = scmp.ge.s32.totalorder %s6875_s19, 2 }
  0x58   : > { %p6809_p4 = scmp.ne.s32.totalorder %s6799_s8, 0  ;;  %p5007_p8 = scmp.lt.s32.totalorder %s5524_s28, 8 }
  0x59   : > { %s225_s17 = sand.u32 1, %s5504_s23   ;;  %s6877_s19 = smov (%p37_p10, %s6875_s19), 0 }
  0x5a   : > { %p5717_p6 = por %p6809_p4, %p51_p11  ;;  %s4506_s18 = sshll.u32 %s225_s17, 6 }
  0x5b   : > { %s39_s30 = ssub.s32 %s5520_s27, %s6877_s19  ;;  %s4507_s15 = sshll.u32 %s5516_s26, 3 }
  0x5c   : > { %s6810_s16 = scalar_select %p5717_p6, 1, 0 }
  0x5d   : > { %s41_s12 = sor.u32 %s40_s20, %s39_s30  ;;  %s4508_s13 = sshll.u32 %s5520_s27, 5 }
  0x5e   : > { %6811 = sst [smem:[#allocation27_spill]] %s6810_s16  ;;  %p42_p13 = scmp.eq.s32.totalorder %s41_s12, 0 }
  0x5f   : > { %s235_s6 = sadd.s32 %s4508_s13, %s4507_s15  ;;  %s229_s21 = scalar_lea.vmem [#allocation6], %s4506_s18 }
  0x60   : > { %s238_s8 = sshll.u32 %s229_s21, 4  ;;  %s4509_s4 = sshll.u32 %s235_s6, 7  ;;  %s5732_s8 = int_to_ptr.vmem [resolvable:$true] %s238_s8 }
  0x61   : > { %s5730_s2 = scalar_select %p42_p13, %s5504_s23, %s44_s14  }
  0x62   : > { %s5737_s5 = scalar_lea.hbm %s6755_s0, %s4509_s4  ;;  %p5743_p0 = pnand %p5007_p8, %p5711_p2 }
  0x63   : > { %s5747_s14 = scalar_lea.sflag [#allocation7], %s225_s17  ;;  %s5339_s18 = scalar_lea.hbm %s5737_s5, 1024 }
  0x64   : > { %p5340_p3 = scmp.ne.s32.totalorder %s5737_s5, %s5339_s18  ;;  %p5341_p5 = pneg %p5743_p0 }
  0x65   : > { %s5344_s29 = scalar_lea.hbm %s6755_s0, 8192  ;;  %p5345_p12 = scmp.lt.u32.totalorder %s5737_s5, %s6755_s0 }
  0x66   : > { %p5342_p7 = pnand %p5341_p5, %p5340_p3  ;;  %p5346_p11 = scmp.lt.u32.totalorder %s5344_s29, %s5339_s18 }
  0x67   : > { %p5348_p2 = scmp.lt.u32.totalorder %s5339_s18, %s5737_s5 }
  0x68   : > { %p5343_p9 = pneg %p5342_p7  ;;  %p5347_p1 = por %p5346_p11, %p5345_p12 }
  0x6a   : > { %p5349_p10 = por %p5348_p2, %p5347_p1 }
  0x6c   : > { %p5350_p4 = pnand %p5349_p10, %p5343_p9 }
  0x6e   : > { %5353 = shalt.err (!%p5350_p4)
}
  0x6f   : > { %s5354_s17 = scalar_lea.vmem %s5732_s8, 1024  ;;  %s5530_s12 = smov [#allocation6]  }
  0x70   : > { %p5355_p8 = scmp.ne.s32.totalorder %s5732_s8, %s5354_s17  ;;  %s5359_s15 = sshll.u32 %s5530_s12, 4  ;;  %s5360_s15 = int_to_ptr.vmem [resolvable:$false] %s5359_s15 }
  0x71   : > { %s5361_s13 = scalar_lea.vmem %s5360_s15, 2048  ;;  %p5362_p7 = scmp.lt.s32.totalorder %s5732_s8, %s5360_s15 }
  0x72   : > { %p5357_p13 = pnand %p5355_p8, %p5341_p5  ;;  %p5363_p12 = scmp.lt.s32.totalorder %s5361_s13, %s5354_s17 }
  0x74   : > { %p5358_p3 = pneg %p5357_p13  ;;  %p5364_p11 = por %p5363_p12, %p5362_p7 }
  0x76   : > { %p5365_p1 = pnand %p5364_p11, %p5358_p3 }
  0x78   : > { %5368 = shalt.err (!%p5365_p1)
}
  0x79   : > { %s5531_s6 = smov 128   ;;  %s5532_s21 = smov 8  }
  0x7a   : > { %5000 = dma.hbm_to_vmem [thread:$0]  (!%p5743_p0), %s5737_s5, 1024, %s5732_s8, %s5747_s14, %s5531_s6, %s5531_s6, %s5532_s21  }
  0x7b   : > { %p6813_p5 = scmp.ne.s32.totalorder %s6803_s11, 0 }
  0x7d   : > { %250 = sbr.rel (%p6813_p5) target bundleno = 1782 (0x6f6), region = 40 }
  0x84   : > { %s5778_s18 = sand.u32 1, %s5500_s22   ;;  %p6814_p9 = scmp.ne.s32.totalorder %s6800_s9, 0 }
  0x85   : > { %s4511_s4 = sshll.u32 %s5778_s18, 6  ;;  %s253_s10 = scalar_lea.sflag [#allocation7], %s5778_s18 }
  0x86   : > { %s5784_s29 = scalar_lea.vmem [#allocation6], %s4511_s4 }
  0x87   : > { %5479 = dma.done.wait (%p6814_p9), %s253_s10, 1024  }
  0x88   : > { %5481 = vsyncadd (%p6814_p9), %s253_s10, 4294966272  ;;  %p6815_p0 = scmp.ne.s32.totalorder %s6798_s7, 0 }
  0x8a   : > { %5483 = dma.done.wait (%p6815_p0), [#allocation10], 18432  }
  0x8b   : > { %5485 = vsyncadd (%p6815_p0), [#allocation10], 4294948864  ;;  %s4515_s5 = sshll.u32 %s5508_s24, 6  ;;  %v329_v0 = vlaneseq  ;;  %s296_s11 = smul.u32 288, %s5512_s25 }
  0x8c   : > { %s5533_s8 = smov [#allocation4]   ;;  %s4519_s14 = sadd.s32 4294967280, %s4515_s5 }
  0x8d   : > { %s307_s20 = sshll.u32 %s5533_s8, 4  ;;  %v5796_v1 = vshrl.u32 %v329_v0, 7  ;;  %s297_s16 = sadd.s32 %s4515_s5, %s296_s11  ;;  %v5800_v2 = vstv %s4519_s14  ;;  %s5798_s20 = int_to_ptr.vmem [resolvable:$true] %s307_s20 }
  0x8e   : > { %s4516_s9 = sshll.u32 %s297_s16, 4  ;;  %s5534_s12 = smov [#allocation4 + $0x10]  }
  0x8f   : > { %v331_v3 = vadd.s32 8, %v5796_v1  ;;  %v332_v4 = vadd.s32 16, %v5796_v1  ;;  %s5807_s17 = scalar_lea.hbm %s6756_s1, %s4516_s9  ;;  %v333_v5 = vadd.s32 24, %v5796_v1  ;;  %s323_s15 = sshll.u32 %s5534_s12, 4  ;;  %s324_s15 = int_to_ptr.vmem [resolvable:$true] %s323_s15 }
  0x90   : > { %s5369_s13 = scalar_lea.hbm %s5807_s17, 256  ;;  %s5371_s10 = scalar_lea.hbm %s6756_s1, 9216 }
  0x91   : > { %p5370_p2 = scmp.ne.s32.totalorder %s5807_s17, %s5369_s13  ;;  %p5372_p10 = scmp.lt.u32.totalorder %s5807_s17, %s6756_s1 }
  0x92   : > { %p5373_p4 = scmp.lt.u32.totalorder %s5371_s10, %s5369_s13  ;;  %p5375_p13 = scmp.lt.u32.totalorder %s5369_s13, %s5807_s17 }
  0x94   : > { %p5374_p8 = por %p5373_p4, %p5372_p10 }
  0x96   : > { %p5376_p3 = por %p5375_p13, %p5374_p8 }
  0x98   : > { %p5377_p7 = pnand %p5376_p3, %p5370_p2 }
  0x9a   : > { %5380 = shalt.err (!%p5377_p7)  }
  0x9b   : > { %s5381_s16 = scalar_lea.vmem %s5798_s20, 256  ;;  %s5385_s9 = scalar_lea.vmem %s5798_s20, 512 }
  0x9c   : > { %p5382_p12 = scmp.ne.s32.totalorder %s5798_s20, %s5381_s16  ;;  %p5386_p11 = scmp.lt.s32.totalorder %s5798_s20, %s5798_s20 }
  0x9d   : > { %p5387_p1 = scmp.lt.s32.totalorder %s5385_s9, %s5381_s16 }
  0x9f   : > { %p5388_p5 = por %p5387_p1, %p5386_p11 }
  0xa1   : > { %p5389_p9 = pnand %p5388_p5, %p5382_p12 }
  0xa3   : > { %5392 = shalt.err (!%p5389_p9)  }
  0xa4   : > { %310 = dma.hbm_to_vmem [thread:$0]  %s5807_s17, 256, %s5798_s20, [#allocation5]  ;;  %v334_v6 = vadd.s32 32, %v5796_v1  ;;  %v344_v7 = vadd.s32 %v5800_v2, %v5796_v1  ;;  %v5837_v8 = vld [vmem:[%s5784_s29] sm:$0xff]  ;;  %v5840_v9 = vld [vmem:[%s5784_s29 + $0x8] sm:$0xff]  ;;  %v5843_v10 = vld [vmem:[%s5784_s29 + $0x10] sm:$0xff]  ;;  %v345_v13 = vadd.s32 %v5800_v2, %v331_v3  ;;  %v346_v18 = vadd.s32 %v5800_v2, %v332_v4 }
  0xa5   : > { %s4435_s7 = scalar_lea.hbm %s5807_s17, 1280  ;;  %v335_v11 = vadd.s32 40, %v5796_v1  ;;  %v336_v12 = vadd.s32 48, %v5796_v1  ;;  %v5850_v14 = vld [vmem:[%s5784_s29 + $0x18] sm:$0xff]  ;;  %v5853_v15 = vld [vmem:[%s5784_s29 + $0x20] sm:$0xff]  ;;  %v5856_v16 = vld [vmem:[%s5784_s29 + $0x28] sm:$0xff] }
  0xa6   : > { %v337_v17 = vadd.s32 56, %v5796_v1  ;;  %s5417_s30 = scalar_lea.hbm %s5807_s17, 1536  ;;  %p5396_p2 = scmp.lt.u32.totalorder %s4435_s7, %s6756_s1 }
  0xa7   : > { %p5394_p0 = scmp.ne.s32.totalorder %s4435_s7, %s5417_s30  ;;  %p5397_p10 = scmp.lt.u32.totalorder %s5371_s10, %s5417_s30 }
  0xa8   : > { %p5399_p8 = scmp.lt.u32.totalorder %s5417_s30, %s4435_s7 }
  0xa9   : > { %p5398_p4 = por %p5397_p10, %p5396_p2 }
  0xab   : > { %p5400_p13 = por %p5399_p8, %p5398_p4 }
  0xad   : > { %p5401_p3 = pnand %p5400_p13, %p5394_p0 }
  0xaf   : > { %5404 = shalt.err (!%p5401_p3)  }
  0xb0   : > { %s5405_s5 = scalar_lea.vmem %s324_s15, 256  ;;  %p5410_p12 = scmp.lt.s32.totalorder %s324_s15, %s5798_s20 }
  0xb1   : > { %p5406_p7 = scmp.ne.s32.totalorder %s324_s15, %s5405_s5  ;;  %p5411_p11 = scmp.lt.s32.totalorder %s5385_s9, %s5405_s5 }
  0xb3   : > { %p5412_p1 = por %p5411_p11, %p5410_p12 }
  0xb5   : > { %p5413_p5 = pnand %p5412_p1, %p5406_p7 }
  0xb7   : > { %5416 = shalt.err (!%p5413_p5)  }
  0xb8   : > { %326 = dma.hbm_to_vmem [thread:$0]  %s4435_s7, 256, %s324_s15, [#allocation5 + $0x1]  ;;  %v5872_v19 = vld [vmem:[%s5784_s29 + $0x30] sm:$0xff]  ;;  %v5875_v20 = vld [vmem:[%s5784_s29 + $0x38] sm:$0xff]  ;;  %v347_v21 = vadd.s32 %v5800_v2, %v333_v5  ;;  %v338_v22 = vadd.s32 64, %v5796_v1  ;;  %v339_v23 = vadd.s32 72, %v5796_v1  ;;  %v348_v24 = vadd.s32 %v5800_v2, %v334_v6 }
  0xb9   : > { %vm356_vm0 = vcmp.ge.s32.totalorder %v344_v7, 0  ;;  %v340_v25 = vadd.s32 80, %v5796_v1  ;;  %v341_v26 = vadd.s32 88, %v5796_v1  ;;  %v349_v27 = vadd.s32 %v5800_v2, %v335_v11  ;;  %s5925_s29 = scalar_lea.vmem [#allocation12], %s4511_s4 }
  0xba   : > { %vm357_vm1 = vcmp.ge.s32.totalorder %v345_v13, 0  ;;  %v350_v28 = vadd.s32 %v5800_v2, %v336_v12  ;;  %v351_v29 = vadd.s32 %v5800_v2, %v337_v17  ;;  %vm358_vm2 = vcmp.ge.s32.totalorder %v346_v18, 0 }
  0xbb   : > { %vm368_vm3 = vcmp.lt.s32.totalorder %v344_v7, 200  ;;  %vm369_vm5 = vcmp.lt.s32.totalorder %v345_v13, 200  ;;  %vm370_vm6 = vcmp.lt.s32.totalorder %v346_v18, 200  ;;  %vm371_vm7 = vcmp.lt.s32.totalorder %v347_v21, 200 }
  0xbc   : > { %vm380_vm8 = vmand %vm356_vm0, %vm368_vm3  ;;  %v352_v30 = vadd.s32 %v5800_v2, %v338_v22  ;;  %v353_v31 = vadd.s32 %v5800_v2, %v339_v23  ;;  %vm360_vm9 = vcmp.ge.s32.totalorder %v348_v24, 0  ;;  %vm372_vm10 = vcmp.lt.s32.totalorder %v348_v24, 200 }
  0xbd   : > { %vm381_vm11 = vmand %vm357_vm1, %vm369_vm5  ;;  %v354_v32 = vadd.s32 %v5800_v2, %v340_v25  ;;  %vm373_vm13 = vcmp.lt.s32.totalorder %v349_v27, 200  ;;  %v5535_v33 = vmov 0.0   ;;  %vm374_vm4 = vcmp.lt.s32.totalorder %v350_v28, 200 }
  0xbe   : > { %vm382_vm14 = vmand %vm358_vm2, %vm370_vm6  ;;  %v5890_v34 = vsel %vm380_vm8, 1.0, %v5535_v33  ;;  %vm6816_vm0 = vcmp.ge.s32.totalorder %v347_v21, 0  ;;  %v5894_v35 = vsel %vm381_vm11, 1.0, %v5535_v33  ;;  %v355_v37 = vadd.s32 %v5800_v2, %v341_v26 }
  0xbf   : > { %vm383_vm3 = vmand %vm6816_vm0, %vm371_vm7  ;;  %v5896_v36 = vsel %vm382_vm14, 1.0, %v5535_v33  ;;  %vm363_vm1 = vcmp.ge.s32.totalorder %v351_v29, 0  ;;  %vm375_vm5 = vcmp.lt.s32.totalorder %v351_v29, 200  ;;  %vm364_vm2 = vcmp.ge.s32.totalorder %v352_v30, 0 }
  0xc0   : > { %6817 = vst [vmem:[#allocation28_spill] sm:$0xff] %v5896_v36  ;;  %vm384_vm12 = vmand %vm360_vm9, %vm372_vm10  ;;  %v5901_v38 = vsel %vm383_vm3, 1.0, %v5535_v33  ;;  %vm376_vm6 = vcmp.lt.s32.totalorder %v352_v30, 200  ;;  %vm6818_vm8 = vcmp.ge.s32.totalorder %v349_v27, 0  ;;  %vm365_vm7 = vcmp.ge.s32.totalorder %v353_v31, 0 }
  0xc1   : > { %vm385_vm15 = vmand %vm6818_vm8, %vm373_vm13  ;;  %v5905_v39 = vsel %vm384_vm12, 1.0, %v5535_v33  ;;  %vm377_vm11 = vcmp.lt.s32.totalorder %v353_v31, 200  ;;  %vm6820_vm14 = vcmp.ge.s32.totalorder %v350_v28, 0  ;;  %vm366_vm9 = vcmp.ge.s32.totalorder %v354_v32, 0 }
  0xc2   : > { %6819 = vst [vmem:[#allocation29_spill] sm:$0xff] %v5905_v39  ;;  %vm386_vm0 = vmand %vm6820_vm14, %vm374_vm4  ;;  %v5909_v40 = vsel %vm385_vm15, 1.0, %v5535_v33  ;;  %vm378_vm10 = vcmp.lt.s32.totalorder %v354_v32, 200  ;;  %vm367_vm8 = vcmp.ge.s32.totalorder %v355_v37, 0  ;;  %vm379_vm13 = vcmp.lt.s32.totalorder %v355_v37, 200 }
  0xc3   : > { %6821 = vst [vmem:[#allocation30_spill] sm:$0xff] %v5909_v40  ;;  %vm387_vm3 = vmand %vm363_vm1, %vm375_vm5  ;;  %v5911_v41 = vsel %vm386_vm0, 1.0, %v5535_v33 }
  0xc4   : > { %6822 = vst [vmem:[#allocation31_spill] sm:$0xff] %v5911_v41  ;;  %vm388_vm12 = vmand %vm364_vm2, %vm376_vm6  ;;  %v5913_v42 = vsel %vm387_vm3, 1.0, %v5535_v33 }
  0xc5   : > { %6823 = vst [vmem:[#allocation32_spill] sm:$0xff] %v5913_v42  ;;  %vm389_vm4 = vmand %vm365_vm7, %vm377_vm11  ;;  %v5915_v43 = vsel %vm388_vm12, 1.0, %v5535_v33 }
  0xc6   : > { %6824 = vst [vmem:[#allocation33_spill] sm:$0xff] %v5915_v43  ;;  %vm390_vm14 = vmand %vm366_vm9, %vm378_vm10  ;;  %v5917_v44 = vsel %vm389_vm4, 1.0, %v5535_v33 }
  0xc7   : > { %vm391_vm15 = vmand %vm367_vm8, %vm379_vm13  ;;  %v5919_v45 = vsel %vm390_vm14, 1.0, %v5535_v33 }
  0xc8   : > { %v5921_v46 = vsel %vm391_vm15, 1.0, %v5535_v33 }
  0xc9   : > { %6825 = vst [vmem:[#allocation34_spill] sm:$0xff] %v5921_v46 }
  0xca   : > { %5486 = dma.done.wait [#allocation5], 256 }
  0xcb   : > { %5487 = vsyncadd [#allocation5], 4294967040 }
  0xcc   : > { %5488 = dma.done.wait [#allocation5 + $0x1], 256 }
  0xcd   : > { %5489 = vsyncadd [#allocation5 + $0x1], 4294967040  ;;  %v6773_v47 = vmov 0   ;;  %v5087_v48 = vld [vmem:[#allocation9 + $0x4] ss:$12 sps:$4 sm:$0xff]   ;;  %v459_v2 = vmul.f32 %v5896_v36, %v5837_v8  ;;  %v438_v5 = vld [vmem:[#allocation4 + $0x8] sm:$0xff]  ;;  %v460_v13 = vmul.f32 %v5901_v38, %v5840_v9  ;;  %v461_v21 = vmul.f32 %v5905_v39, %v5843_v10 }
  0xce   : > { %705 = vmatprep.mubr.bf16.mxu0 %v6773_v47  ;;  %4802 = vmatprep.mubr.bf16.mxu1 %v6773_v47  ;;  %v5089_v49 = vld [vmem:[#allocation9] ss:$12 sps:$4 sm:$0xff]   ;;  %v5090_v50 = vld [vmem:[#allocation9 + $0x1c] ss:$12 sps:$4 sm:$0xff]   ;;  %v5092_v51 = vld [vmem:[#allocation9 + $0x18] ss:$12 sps:$4 sm:$0xff]   ;;  %v458_v7 = vmul.f32 %v5894_v35, %v438_v5  ;;  %v462_v23 = vmul.f32 %v5909_v40, %v5850_v14  ;;  %v463_v27 = vmul.f32 %v5911_v41, %v5853_v15 }
  0xcf   : > { %673 = vmatprep.subr.bf16.mxu0 %v5087_v48  ;;  %v5093_v52 = vld [vmem:[#allocation9 + $0x8] ss:$12 sps:$4 sm:$0xff]   ;;  %v5097_v54 = vld [vmem:[#allocation9 + $0x20] ss:$12 sps:$4 sm:$0xff]   ;;  %v5096_v55 = vld [vmem:[#allocation9 + $0x30] ss:$12 sps:$4 sm:$0xff]   ;;  %v464_v29 = vmul.f32 %v5913_v42, %v5856_v16 }
  0xd0   : > { %674 = vmatpush1.bf16.msra.mxu0 %v5089_v49  ;;  %v5094_v53 = vld [vmem:[#allocation9 + $0x34] ss:$12 sps:$4 sm:$0xff]   ;;  %4786 = vmatprep.subr.bf16.mxu1 %v5093_v52  ;;  %v5098_v56 = vld [vmem:[#allocation9 + $0x4c] ss:$12 sps:$4 sm:$0xff]   ;;  %v5105_v59 = vld [vmem:[#allocation9 + $0x50] ss:$12 sps:$4 sm:$0xff]  }
  0xd1   : > { %675 = vmatprep.subr.bf16.mxu0 %v5090_v50  ;;  %4787 = vmatpush3.bf16.msra.mxu1 %v5093_v52  ;;  %v5101_v57 = vld [vmem:[#allocation9 + $0x38] ss:$12 sps:$4 sm:$0xff]   ;;  %v5100_v58 = vld [vmem:[#allocation9 + $0x48] ss:$12 sps:$4 sm:$0xff]   ;;  %v5104_v61 = vld [vmem:[#allocation9 + $0x60] ss:$12 sps:$4 sm:$0xff]  }
  0xd2   : > { %4788 = vmatprep.subr.bf16.mxu1 %v5097_v54  ;;  %v5102_v60 = vld [vmem:[#allocation9 + $0x64] ss:$12 sps:$4 sm:$0xff]   ;;  %v5109_v62 = vld [vmem:[#allocation9 + $0x68] ss:$12 sps:$4 sm:$0xff]   ;;  %v5113_v4 = vld [vmem:[#allocation9 + $0x80] ss:$12 sps:$4 sm:$0xff]  }
  0xd3   : > { %v5106_v63 = vld [vmem:[#allocation9 + $0x7c] ss:$12 sps:$4 sm:$0xff]   ;;  %v5108_v0 = vld [vmem:[#allocation9 + $0x78] ss:$12 sps:$4 sm:$0xff]   ;;  %v5110_v3 = vld [vmem:[#allocation9 + $0x94] ss:$12 sps:$4 sm:$0xff]  }
  0xd4   : > { %676 = vmatpush1.bf16.msra.mxu0 %v5092_v51  ;;  %v437_v1 = vld [vmem:[#allocation4] sm:$0xff]  ;;  %v5112_v11 = vld [vmem:[#allocation9 + $0x90] ss:$12 sps:$4 sm:$0xff]   ;;  %v5114_v12 = vld [vmem:[#allocation9 + $0xac] ss:$12 sps:$4 sm:$0xff]   ;;  %vm966_vm1 = vcmask 1045504  }
  0xd5   : > { %677 = vmatprep.subr.bf16.mxu0 %v5094_v53  ;;  %4789 = vmatpush3.bf16.msra.mxu1 %v5097_v54  ;;  %v457_v6 = vmul.f32 %v5890_v34, %v437_v1  ;;  %v471_v17 = vmul.f32 0.1, %v459_v2  ;;  %v5117_v18 = vld [vmem:[#allocation9 + $0x98] ss:$12 sps:$4 sm:$0xff]   ;;  %v5116_v24 = vld [vmem:[#allocation9 + $0xa8] ss:$12 sps:$4 sm:$0xff]   ;;  %v465_v54 = vmul.f32 %v5915_v43, %v5872_v19 }
  0xd6   : > { %4790 = vmatprep.subr.bf16.mxu1 %v5101_v57  ;;  %v5118_v25 = vld [vmem:[#allocation9 + $0xb0] ss:$12 sps:$4 sm:$0xff]   ;;  %v470_v26 = vmul.f32 0.1, %v458_v7  ;;  %v472_v28 = vmul.f32 0.1, %v460_v13 }
  0xd7   : > { %v469_v22 = vmul.f32 0.1, %v457_v6  ;;  %v5119_v30 = vld [vmem:[#allocation11 + $0x8] ss:$12 sps:$4 sm:$0xff]   ;;  %v473_v31 = vmul.f32 0.1, %v461_v21  ;;  %v483_v49 = vmax.f32 %v459_v2, %v471_v17 }
  0xd8   : > { %678 = vmatpush1.bf16.msra.mxu0 %v5096_v55  ;;  %v474_v32 = vmul.f32 0.1, %v462_v23  ;;  %v482_v37 = vmax.f32 %v458_v7, %v470_v26  ;;  %v475_v48 = vmul.f32 0.1, %v463_v27  ;;  %v484_v50 = vmax.f32 %v460_v13, %v472_v28  ;;  %v441_v52 = vld [vmem:[#allocation4 + $0x10] sm:$0xff]  ;;  %v442_v55 = vld [vmem:[#allocation4 + $0x18] sm:$0xff] }
  0xd9   : > { %679 = vmatprep.subr.bf16.mxu0 %v5098_v56  ;;  %4791 = vmatpush3.bf16.msra.mxu1 %v5101_v57  ;;  %v481_v33 = vmax.f32 %v457_v6, %v469_v22  ;;  %v476_v51 = vmul.f32 0.1, %v464_v29  ;;  %v5120_v53 = vld [vmem:[#allocation11 + $0x20] ss:$12 sps:$4 sm:$0xff]   ;;  %v466_v57 = vmul.f32 %v5917_v44, %v5875_v20  ;;  %vm903_vm5 = vcmask 1046528   ;;  %s6831_s10 = sld [smem:[#allocation45_spill]] }
  0xda   : > { %4792 = vmatprep.subr.bf16.mxu1 %v5105_v59  ;;  %v487_v1 = vmax.f32 %v463_v27, %v475_v48  ;;  %v5121_v22 = vld [vmem:[#allocation11] ss:$12 sps:$4 sm:$0xff]   ;;  %v5128_v27 = vld [vmem:[#allocation11 + $0x30] ss:$12 sps:$4 sm:$0xff]   ;;  %v5141_v48 = vld [vmem:[#allocation11 + $0x68] ss:$12 sps:$4 sm:$0xff]  }
  0xdb   : > { %v493_v56 = vpack.c.bf16 %v482_v37, %v481_v33  ;;  %v488_v2 = vmax.f32 %v464_v29, %v476_v51  ;;  %v5130_v26 = vld [vmem:[#allocation11 + $0x34] ss:$12 sps:$4 sm:$0xff]   ;;  %v5133_v28 = vld [vmem:[#allocation11 + $0x4c] ss:$12 sps:$4 sm:$0xff]   ;;  %v5140_v33 = vld [vmem:[#allocation11 + $0x7c] ss:$12 sps:$4 sm:$0xff]  }
  0xdc   : > { %680 = vmatpush1.bf16.msra.mxu0 %v5100_v58  ;;  %v494_v58 = vpack.c.bf16 %v484_v50, %v483_v49  ;;  %v5131_v29 = vld [vmem:[#allocation11 + $0x48] ss:$12 sps:$4 sm:$0xff]   ;;  %v5138_v37 = vld [vmem:[#allocation11 + $0x78] ss:$12 sps:$4 sm:$0xff]   ;;  %v5142_v50 = vld [vmem:[#allocation11 + $0x90] ss:$12 sps:$4 sm:$0xff]  }
  0xdd   : > { %681 = vmatprep.subr.bf16.mxu0 %v5102_v60  ;;  %4793 = vmatpush3.bf16.msra.mxu1 %v5105_v59  ;;  %v477_v59 = vmul.f32 0.1, %v465_v54  ;;  %v467_v60 = vmul.f32 %v5919_v45, %v441_v52  ;;  %v496_v6 = vpack.c.bf16 %v488_v2, %v487_v1  ;;  %v5144_v49 = vld [vmem:[#allocation11 + $0x94] ss:$12 sps:$4 sm:$0xff]   ;;  %v5147_v51 = vld [vmem:[#allocation11 + $0xac] ss:$12 sps:$4 sm:$0xff]  }
  0xde   : > { %4794 = vmatprep.subr.bf16.mxu1 %v5109_v62  ;;  %v5148_v52 = vld [vmem:[#allocation11 + $0x80] ss:$12 sps:$4 sm:$0xff]   ;;  %vm1112_vm2 = vsmask.f32 4352  ;;  %vm2341_vm6 = vcmask 1041408   ;;  %vm2278_vm7 = vcmask 1044480  }
  0xdf   : > { %v489_v7 = vmax.f32 %v465_v54, %v477_v59  ;;  %v5149_v54 = vld [vmem:[#allocation11 + $0x98] ss:$12 sps:$4 sm:$0xff]   ;;  %vm2475_vm11 = vsmask.f32 5376  ;;  %vm3594_vm0 = vcmask 1042432   ;;  %s4683_s13 = sshll.u32 %s5508_s24, 3 }
  0xe0   : > { %682 = vmatpush1.bf16.msra.mxu0 %v5104_v61  ;;  %v485_v61 = vmax.f32 %v461_v21, %v473_v31  ;;  %v5123_v21 = vld [vmem:[#allocation11 + $0x4] ss:$12 sps:$4 sm:$0xff]   ;;  %v5135_v31 = vld [vmem:[#allocation11 + $0x60] ss:$12 sps:$4 sm:$0xff]   ;;  %vm3790_vm9 = vsmask.f32 6400 }
  0xe1   : > { %683 = vmatprep.subr.bf16.mxu0 %v5106_v63  ;;  %4795 = vmatpush3.bf16.msra.mxu1 %v5109_v62  ;;  %v486_v62 = vmax.f32 %v462_v23, %v474_v32  ;;  %v478_v63 = vmul.f32 0.1, %v466_v57  ;;  %v5124_v23 = vld [vmem:[#allocation11 + $0x18] ss:$12 sps:$4 sm:$0xff]   ;;  %v5134_v32 = vld [vmem:[#allocation11 + $0x50] ss:$12 sps:$4 sm:$0xff]  }
  0xe2   : > { %4796 = vmatprep.subr.bf16.mxu1 %v5113_v4  ;;  %s4684_s6 = sshll.u32 %s5512_s25, 5  ;;  %s4367_s25 = sshll.u32 %s5925_s29, 4  ;;  %s6694_s25 = int_to_ptr.vmem [resolvable:$true] %s4367_s25 }
  0xe3   : > { %s4364_s21 = sadd.s32 %s4684_s6, %s4683_s13  ;;  %s6860_s17 = sld [smem:[#allocation46_spill]] }
  0xe4   : > { %684 = vmatpush1.bf16.msra.mxu0 %v5108_v0  ;;  %v468_v0 = vmul.f32 %v5921_v46, %v442_v55  ;;  %v5150_v55 = vld [vmem:[#allocation11 + $0xb0] ss:$12 sps:$4 sm:$0xff]   ;;  %s4685_s5 = sshll.u32 %s4364_s21, 7  ;;  %s4352_s11 = scalar_lea.sflag [#allocation8], %s5778_s18 }
  0xe5   : > { %685 = vmatprep.subr.bf16.mxu0 %v5110_v3  ;;  %4797 = vmatpush3.bf16.msra.mxu1 %v5113_v4  ;;  %v479_v3 = vmul.f32 0.1, %v467_v60  ;;  %v495_v4 = vpack.c.bf16 %v486_v62, %v485_v61  ;;  %s5418_s8 = scalar_lea.vmem %s6694_s25, 1024  ;;  %s5537_s14 = smov [#allocation12]  }
  0xe6   : > { %4798 = vmatprep.subr.bf16.mxu1 %v5117_v18  ;;  %v480_v5 = vmul.f32 0.1, %v468_v0  ;;  %p5419_p9 = scmp.ne.s32.totalorder %s6694_s25, %s5418_s8  ;;  %s5422_s16 = sshll.u32 %s5537_s14, 4  ;;  %s5423_s16 = int_to_ptr.vmem [resolvable:$false] %s5422_s16 }
  0xe7   : > { %s5424_s9 = scalar_lea.vmem %s5423_s16, 2048  ;;  %p5425_p10 = scmp.lt.s32.totalorder %s6694_s25, %s5423_s16 }
  0xe8   : > { %686 = vmatpush1.bf16.msra.mxu0 %v5112_v11  ;;  %v490_v11 = vmax.f32 %v466_v57, %v478_v63  ;;  %v492_v13 = vmax.f32 %v468_v0, %v480_v5  ;;  %v5152_v57 = vld [vmem:[#allocation9 + $0xe0] ss:$12 sps:$4 sm:$0xff]   ;;  %p5420_p0 = pnand %p5419_p9, %p5717_p6  ;;  %p5426_p4 = scmp.lt.s32.totalorder %s5424_s9, %s5418_s8 }
  0xe9   : > { %687 = vmatprep.subr.bf16.mxu0 %v5114_v12  ;;  %4799 = vmatpush3.bf16.msra.mxu1 %v5117_v18  ;;  %v491_v12 = vmax.f32 %v467_v60, %v479_v3  ;;  %s6700_s15 = scalar_lea.hbm %s6860_s17, %s4685_s5 }
  0xea   : > { %4800 = vmatprep.subr.bf16.mxu1 %v5118_v25  ;;  %v497_v17 = vpack.c.bf16 %v490_v11, %v489_v7  ;;  %p5421_p2 = pneg %p5420_p0  ;;  %p5427_p8 = por %p5426_p4, %p5425_p10 }
  0xeb   : > { %v498_v18 = vpack.c.bf16 %v492_v13, %v491_v12 }
  0xec   : > { %688 = vmatpush1.bf16.msra.mxu0 %v5116_v24  ;;  %v5126_v24 = vld [vmem:[#allocation11 + $0x1c] ss:$12 sps:$4 sm:$0xff]   ;;  %p5428_p13 = pnand %p5427_p8, %p5421_p2 }
  0xed   : > { %4818 = vmatprep.subr.bf16.mxu0 %v5119_v30  ;;  %4801 = vmatpush3.bf16.msra.mxu1 %v5118_v25  ;;  %v5127_v25 = vld [vmem:[#allocation11 + $0x38] ss:$12 sps:$4 sm:$0xff]  }
  0xee   : > { %1355 = vmatprep.subr.bf16.mxu1 %v5123_v21 }
  0xef   : > { %706 = vmatmul.mubr.bf16.vlgmr.msra.gmra.mrb[0].mxu0 %v6773_v47 }
  0xf0   : > { %712 = vmatprep.mubr.bf16.mxu0 %v6773_v47  ;;  %4819 = vmatpush3.bf16.msra.mxu0 %v5119_v30  ;;  %v5137_v30 = vld [vmem:[#allocation11 + $0x64] ss:$12 sps:$4 sm:$0xff]  }
  0xf1   : > { %4820 = vmatprep.subr.bf16.mxu0 %v5120_v53  ;;  %4803 = vmatmul.mubr.bf16.vlgmr.msra.gmra.mrb[0].mxu1 %v493_v56 }
  0xf2   : > { %4806 = vmatprep.mubr.bf16.mxu1 %v494_v58  ;;  %1356 = vmatpush1.bf16.msra.mxu1 %v5121_v22 }
  0xf3   : > { %1357 = vmatprep.subr.bf16.mxu1 %v5126_v24  ;;  %v1031_v24 = vrot.slane %v5894_v35, 1 }
  0xf4   : > { %4821 = vmatpush3.bf16.msra.mxu0 %v5120_v53  ;;  %v5145_v53 = vld [vmem:[#allocation11 + $0xa8] ss:$12 sps:$4 sm:$0xff]  }
  0xf5   : > { %4822 = vmatprep.subr.bf16.mxu0 %v5127_v25 }
  0xf6   : > { %1358 = vmatpush1.bf16.msra.mxu1 %v5124_v23 }
  0xf7   : > { %713 = vmatmul.mubr.bf16.gmra.mrb[4].mxu0 %v493_v56  ;;  %1359 = vmatprep.subr.bf16.mxu1 %v5130_v26  ;;  %v5151_v56 = vld [vmem:[#allocation9 + $0xc8] ss:$12 sps:$4 sm:$0xff]  }
  0xf8   : > { %722 = vmatprep.mubr.bf16.mxu0 %v6773_v47  ;;  %4823 = vmatpush3.bf16.msra.mxu0 %v5127_v25 }
  0xf9   : > { %4807 = vmatmul.mubr.bf16.gmra.mrb[4].mxu1 %v495_v4  ;;  %4824 = vmatprep.subr.bf16.mxu0 %v5134_v32 }
  0xfa   : > { %4810 = vmatprep.mubr.bf16.mxu1 %v496_v6  ;;  %1360 = vmatpush1.bf16.msra.mxu1 %v5128_v27 }
  0xfb   : > { %1361 = vmatprep.subr.bf16.mxu1 %v5133_v28 }
  0xfc   : > { %4825 = vmatpush3.bf16.msra.mxu0 %v5134_v32 }
  0xfd   : > { %4826 = vmatprep.subr.bf16.mxu0 %v5141_v48 }
  0xfe   : > { %1362 = vmatpush1.bf16.msra.mxu1 %v5131_v29 }
  0xff   : > { %723 = vmatmul.mubr.bf16.gmra.mrb[8].mxu0 %v494_v58  ;;  %1363 = vmatprep.subr.bf16.mxu1 %v5137_v30 }
 0x100   : > { %732 = vmatprep.mubr.bf16.mxu0 %v6773_v47  ;;  %4827 = vmatpush3.bf16.msra.mxu0 %v5141_v48 }
 0x101   : > { %4811 = vmatmul.mubr.bf16.gmra.mrb[8].mxu1 %v497_v17  ;;  %4828 = vmatprep.subr.bf16.mxu0 %v5148_v52 }
 0x102   : > { %4814 = vmatprep.mubr.bf16.mxu1 %v498_v18  ;;  %1364 = vmatpush1.bf16.msra.mxu1 %v5135_v31 }
 0x103   : > { %1365 = vmatprep.subr.bf16.mxu1 %v5140_v33 }
 0x104   : > { %4829 = vmatpush3.bf16.msra.mxu0 %v5148_v52 }
 0x105   : > { %4830 = vmatprep.subr.bf16.mxu0 %v5149_v54 }
 0x106   : > { %1366 = vmatpush1.bf16.msra.mxu1 %v5138_v37 }
 0x107   : > { %733 = vmatmul.mubr.bf16.gmra.mrb[12].mxu0 %v495_v4  ;;  %1367 = vmatprep.subr.bf16.mxu1 %v5144_v49  ;;  %v5966_v4 = vld [vmem:[%s6758_s3] ss:$0 sm:$0xff] }
 0x108   : > { %742 = vmatprep.mubr.bf16.mxu0 %v6773_v47  ;;  %4831 = vmatpush3.bf16.msra.mxu0 %v5149_v54 }
 0x109   : > { %4815 = vmatmul.mubr.bf16.gmra.mrb[12].mxu1 %v6773_v47  ;;  %4832 = vmatprep.subr.bf16.mxu0 %v5150_v55 }
 0x10a   : > { %1387 = vmatprep.mubr.bf16.mxu1 %v6773_v47  ;;  %1368 = vmatpush1.bf16.msra.mxu1 %v5142_v50 }
 0x10b   : > { %1369 = vmatprep.subr.bf16.mxu1 %v5147_v51 }
 0x10c   : > { %4833 = vmatpush3.bf16.msra.mxu0 %v5150_v55 }
 0x10e   : > { %1370 = vmatpush1.bf16.msra.mxu1 %v5145_v53 }
 0x10f   : > { %743 = vmatmul.mubr.bf16.gmra.mrb[16].mxu0 %v496_v6  ;;  %4850 = vmatprep.subr.bf16.mxu1 %v5151_v56 }
 0x110   : > { %752 = vmatprep.mubr.bf16.mxu0 %v6773_v47 }
 0x111   : > { %1388 = vmatmul.mubr.bf16.vlgmr.msra.gmra.mrb[16].mxu1 %v6773_v47 }
 0x112   : > { %1394 = vmatprep.mubr.bf16.mxu1 %v6773_v47  ;;  %4851 = vmatpush3.bf16.msra.mxu1 %v5151_v56 }
 0x113   : > { %4852 = vmatprep.subr.bf16.mxu1 %v5152_v57 }
 0x116   : > { %4853 = vmatpush3.bf16.msra.mxu1 %v5152_v57 }
 0x117   : > { %753 = vmatmul.mubr.bf16.gmra.mrb[20].mxu0 %v497_v17 }
 0x118   : > { %762 = vmatprep.mubr.bf16.mxu0 %v6773_v47 }
 0x11f   : > { %763 = vmatmul.mubr.bf16.gmra.mrb[24].mxu0 %v498_v18  ;;  %v5971_v18 = vrot.slane %v5890_v34, 1 }
 0x120   : > { %772 = vmatprep.mubr.bf16.mxu0 %v6773_v47 }
 0x121   : > { %6826 = vst [vmem:[#allocation35_spill] sm:$0xff] %v5971_v18  ;;  %v5980_v51 = vsel %vm903_vm5, %v5971_v18, %v1031_v24 }
 0x122   : > { %6827 = vst [vmem:[#allocation36_spill] sm:$0xff] %v5980_v51 }
 0x127   : > { %773 = vmatmul.mubr.bf16.gmra.mrb[28].mxu0 %v6773_v47 }
 0x128   : > { %4834 = vmatprep.mubr.bf16.mxu0 %v6773_v47 }
 0x1c2   : > { %v707_v58 = vpop.f32.mrb[0].mxu0 }
 0x1c3   : > { %v708_v59 = vpop.f32.mrb[1].mxu0 }
 0x1c4   : > { %v709_v60 = vpop.f32.mrb[2].mxu0  ;;  %v4804_v62 = vpop.f32.mrb[0].mxu1 }
 0x1c5   : > { %v711_v61 = vpop.f32.mrb[3].mxu0  ;;  %v813_v63 = vpop.f32.mrb[1].mxu1  ;;  %v967_v1 = vrot.slane %v4804_v62, 2  ;;  %v878_v11 = vadd.f32 %v5966_v4, %v709_v60  ;;  %v1033_v60 = vrot.slane %v5896_v36, 1 }
 0x1c6   : > { %v4805_v0 = vpop.f32.mrb[2].mxu1 }
 0x1c7   : > { %v968_v2 = vrot.slane %v4805_v0, 2  ;;  %v815_v3 = vpop.f32.mrb[3].mxu1 }
 0x1c9   : > { %v969_v6 = vsel %vm966_vm1, %v967_v1, %v968_v2 }
 0x1ca   : > { %v714_v5 = vpop.f32.mrb[4].mxu0 }
 0x1cb   : > { %v716_v7 = vpop.f32.mrb[5].mxu0  ;;  %v879_v27 = vadd.f32 %v5966_v4, %v714_v5  ;;  %v1035_v5 = vrot.slane %v5901_v38, 1 }
 0x1cc   : > { %v904_v12 = vrot.slane %v716_v7, 1  ;;  %v718_v13 = vpop.f32.mrb[6].mxu0  ;;  %v4808_v21 = vpop.f32.mrb[4].mxu1 }
 0x1cd   : > { %v720_v17 = vpop.f32.mrb[7].mxu0  ;;  %v974_v25 = vrot.slane %v4808_v21, 2  ;;  %v827_v26 = vpop.f32.mrb[5].mxu1  ;;  %v880_v62 = vadd.f32 %v5966_v4, %v718_v13  ;;  %v5994_v13 = vsel %vm903_vm5, %v1031_v24, %v1033_v60 }
 0x1ce   : > { %v940_v22 = vadd.f32 %v904_v12, %v878_v11  ;;  %v905_v23 = vrot.slane %v720_v17, 1  ;;  %v970_v28 = vrot.slane %v827_v26, 2  ;;  %v4809_v29 = vpop.f32.mrb[6].mxu1 }
 0x1cf   : > { %v976_v32 = vrot.slane %v4809_v29, 2  ;;  %v830_v33 = vpop.f32.mrb[7].mxu1 }
 0x1d0   : > { %v906_v30 = vsel %vm903_vm5, %v904_v12, %v905_v23  ;;  %v1005_v31 = vadd.f32 %v967_v1, %v940_v22  ;;  %v971_v48 = vsel %vm966_vm1, %v968_v2, %v970_v28  ;;  %v972_v49 = vrot.slane %v830_v33, 2 }
 0x1d1   : > { %v941_v37 = vadd.f32 %v906_v30, %v879_v27  ;;  %v5983_v53 = vsel %vm966_vm1, %v974_v25, %v976_v32  ;;  %v6001_v33 = vsel %vm903_vm5, %v1033_v60, %v1035_v5 }
 0x1d2   : > { %v1066_v50 = vmul.f32 %v5971_v18, %v1005_v31  ;;  %v724_v52 = vpop.f32.mrb[8].mxu0  ;;  %v973_v56 = vsel %vm966_vm1, %v970_v28, %v972_v49  ;;  %v975_v57 = vsel %vm966_vm1, %v972_v49, %v974_v25  ;;  %v1037_v49 = vrot.slane %v5905_v39, 1 }
 0x1d3   : > { %v1006_v54 = vadd.f32 %v969_v6, %v941_v37  ;;  %v726_v55 = vpop.f32.mrb[9].mxu0  ;;  %v881_v12 = vadd.f32 %v5966_v4, %v724_v52 }
 0x1d4   : > { %v1079_v58 = vmul.f32 0.1, %v1066_v50  ;;  %v907_v59 = vrot.slane %v726_v55, 1  ;;  %v728_v61 = vpop.f32.mrb[10].mxu0  ;;  %v4812_v1 = vpop.f32.mrb[8].mxu1 }
 0x1d5   : > { %v1067_v63 = vmul.f32 %v5980_v51, %v1006_v54  ;;  %v730_v0 = vpop.f32.mrb[11].mxu0  ;;  %v982_v6 = vrot.slane %v4812_v1, 2  ;;  %v843_v7 = vpop.f32.mrb[9].mxu1 }
 0x1d6   : > { %v908_v2 = vsel %vm903_vm5, %v905_v23, %v907_v59  ;;  %v909_v3 = vrot.slane %v730_v0, 1  ;;  %v978_v21 = vrot.slane %v843_v7, 2  ;;  %v4813_v22 = vpop.f32.mrb[10].mxu1  ;;  %v1092_v25 = vmax.f32 %v1066_v50, %v1079_v58 }
 0x1d7   : > { %v1080_v11 = vmul.f32 0.1, %v1067_v63  ;;  %v942_v17 = vadd.f32 %v908_v2, %v880_v62  ;;  %v984_v27 = vrot.slane %v4813_v22, 2  ;;  %v846_v28 = vpop.f32.mrb[11].mxu1 }
 0x1d8   : > { %v910_v26 = vsel %vm903_vm5, %v907_v59, %v909_v3  ;;  %v5998_v31 = vsel %vm966_vm1, %v976_v32, %v978_v21  ;;  %v980_v24 = vrot.slane %v846_v28, 2 }
 0x1d9   : > { %v1093_v23 = vmax.f32 %v1067_v63, %v1080_v11  ;;  %v1007_v29 = vadd.f32 %v971_v48, %v942_v17  ;;  %v943_v30 = vadd.f32 %v910_v26, %v881_v12  ;;  %v6005_v50 = vsel %vm966_vm1, %v982_v6, %v984_v27 }
 0x1da   : > { %v734_v37 = vpop.f32.mrb[12].mxu0  ;;  %v6009_v32 = vsel %vm966_vm1, %v978_v21, %v980_v24  ;;  %v6012_v60 = vsel %vm966_vm1, %v980_v24, %v982_v6  ;;  %v882_v63 = vadd.f32 %v5966_v4, %v728_v61  ;;  %v1039_v12 = vrot.slane %v5909_v40, 1 }
 0x1db   : > { %v1068_v52 = vmul.f32 %v5994_v13, %v1007_v29  ;;  %v1008_v54 = vadd.f32 %v973_v56, %v943_v30  ;;  %v736_v55 = vpop.f32.mrb[13].mxu0  ;;  %v1105_v58 = vpack.c.bf16 %v1093_v23, %v1092_v25  ;;  %v6018_v56 = vsel %vm903_vm5, %v1035_v5, %v1037_v49 }
 0x1dc   : > { %v911_v48 = vrot.slane %v736_v55, 1  ;;  %v738_v59 = vpop.f32.mrb[14].mxu0  ;;  %v4816_v2 = vpop.f32.mrb[12].mxu1  ;;  %6828 = vst [vmem:[#allocation37_spill] sm:$0xff] %v6018_v56  ;;  %v883_v6 = vadd.f32 %v5966_v4, %v734_v37  ;;  %v6027_v55 = vsel %vm903_vm5, %v1037_v49, %v1039_v12  ;;  %v1041_v37 = vrot.slane %v5911_v41, 1 }
 0x1dd   : > { %v1081_v62 = vmul.f32 0.1, %v1068_v52  ;;  %v1069_v0 = vmul.f32 %v6001_v33, %v1008_v54  ;;  %v740_v1 = vpop.f32.mrb[15].mxu0  ;;  %v859_v17 = vpop.f32.mrb[13].mxu1  ;;  %v990_v23 = vrot.slane %v4816_v2, 2  ;;  %v1114_v29 = vshrl.u32 %v1105_v58, 16 }
 0x1de   : > { %v912_v7 = vsel %vm903_vm5, %v909_v3, %v911_v48  ;;  %v913_v11 = vrot.slane %v740_v1, 1  ;;  %v986_v25 = vrot.slane %v859_v17, 2  ;;  %v4817_v26 = vpop.f32.mrb[14].mxu1  ;;  %6829 = vst [vmem:[#allocation38_spill] sm:$0xff] %v6027_v55  ;;  %v884_v2 = vadd.f32 %v5966_v4, %v738_v59 }
 0x1df   : > { %v1082_v21 = vmul.f32 0.1, %v1069_v0  ;;  %v944_v22 = vadd.f32 %v912_v7, %v882_v63  ;;  %v1094_v61 = vmax.f32 %v1068_v52, %v1081_v62  ;;  %v862_v30 = vpop.f32.mrb[15].mxu1  ;;  %v1117_v63 = vshll.u32 %v1105_v58, 16 }
 0x1e0   : > { %v914_v28 = vsel %vm903_vm5, %v911_v48, %v913_v11  ;;  %v6024_v54 = vsel %vm966_vm1, %v984_v27, %v986_v25  ;;  %v988_v7 = vrot.slane %v862_v30, 2  ;;  %v1116_v26 = vrot.slane %v1114_v29, 3 }
 0x1e1   : > { %v1095_v3 = vmax.f32 %v1069_v0, %v1082_v21  ;;  %v1009_v24 = vadd.f32 %v975_v57, %v944_v22  ;;  %v945_v5 = vadd.f32 %v914_v28, %v883_v6  ;;  %v1043_v0 = vrot.slane %v5913_v42, 1 }
 0x1e2   : > { %v744_v1 = vpop.f32.mrb[16].mxu0  ;;  %v6035_v49 = vsel %vm966_vm1, %v986_v25, %v988_v7  ;;  %v6038_v21 = vsel %vm966_vm1, %v988_v7, %v990_v23 }
 0x1e3   : > { %v1070_v52 = vmul.f32 %v6018_v56, %v1009_v24  ;;  %v1010_v48 = vadd.f32 %v5983_v53, %v945_v5  ;;  %v746_v62 = vpop.f32.mrb[17].mxu0  ;;  %v1106_v57 = vpack.c.bf16 %v1095_v3, %v1094_v61  ;;  %v1119_v61 = vrot.slane %v1117_v63, 4 }
 0x1e4   : > { %v915_v27 = vrot.slane %v746_v62, 1  ;;  %v748_v17 = vpop.f32.mrb[18].mxu0  ;;  %v885_v24 = vadd.f32 %v5966_v4, %v744_v1  ;;  %v6044_v62 = vsel %vm903_vm5, %v1039_v12, %v1041_v37  ;;  %v6049_v63 = vsel %vm903_vm5, %v1041_v37, %v1043_v0 }
 0x1e5   : > { %v1083_v58 = vmul.f32 0.1, %v1070_v52  ;;  %v1071_v6 = vmul.f32 %v6027_v55, %v1010_v48  ;;  %v750_v22 = vpop.f32.mrb[19].mxu0  ;;  %v1122_v53 = vshrl.u32 %v1106_v57, 16  ;;  %v1125_v3 = vshll.u32 %v1106_v57, 16 }
 0x1e6   : > { %v916_v28 = vsel %vm903_vm5, %v913_v11, %v915_v27  ;;  %v917_v30 = vrot.slane %v750_v22, 1  ;;  %v1120_v22 = vor.u32 %v1119_v61, %v1116_v26 }
 0x1e7   : > { %v1084_v59 = vmul.f32 0.1, %v1071_v6  ;;  %v946_v5 = vadd.f32 %v916_v28, %v884_v2  ;;  %v1124_v25 = vrot.slane %v1122_v53, 3  ;;  %v1127_v7 = vrot.slane %v1125_v3, 4 }
 0x1e8   : > { %v918_v23 = vsel %vm903_vm5, %v915_v27, %v917_v30  ;;  %v1096_v48 = vmax.f32 %v1070_v52, %v1083_v58  ;;  %v1045_v3 = vrot.slane %v5915_v43, 1 }
 0x1e9   : > { %v1097_v29 = vmax.f32 %v1071_v6, %v1084_v59  ;;  %v1011_v47 = vadd.f32 %v5998_v31, %v946_v5  ;;  %v947_v11 = vadd.f32 %v918_v23, %v885_v24  ;;  %v1128_v1 = vor.u32 %v1127_v7, %v1124_v25 }
 0x1ea   : > { %v754_v57 = vpop.f32.mrb[20].mxu0  ;;  %v886_v6 = vadd.f32 %v5966_v4, %v748_v17  ;;  %v1047_v59 = vrot.slane %v5917_v44, 1  ;;  %v6830_v24 = vmov 0   ;;  %v6062_v17 = vsel %vm903_vm5, %v1043_v0, %v1045_v3 }
 0x1eb   : > { %v1072_v2 = vmul.f32 %v6044_v62, %v1011_v47  ;;  %v1012_v12 = vadd.f32 %v6009_v32, %v947_v11  ;;  %v756_v53 = vpop.f32.mrb[21].mxu0  ;;  %v1107_v28 = vpack.c.bf16 %v1097_v29, %v1096_v48  ;;  %v1129_v58 = vsel %vm1112_vm2, %v1120_v22, %v1128_v1 }
 0x1ec   : > { %v919_v27 = vrot.slane %v756_v53, 1  ;;  %v758_v52 = vpop.f32.mrb[22].mxu0  ;;  %1395 = vmatmul.mubr.bf16.gmra.mrb[20].mxu1 %v1129_v58  ;;  %4835 = vmatmul.mubr.bf16.vlgmr.msra.gmra.mrb[32].mxu0 %v1129_v58  ;;  %v887_v23 = vadd.f32 %v5966_v4, %v754_v57  ;;  %v6067_v58 = vsel %vm903_vm5, %v1045_v3, %v1047_v59 }
 0x1ed   : > { %v1085_v31 = vmul.f32 0.1, %v1072_v2  ;;  %v1073_v37 = vmul.f32 %v6049_v63, %v1012_v12  ;;  %v760_v26 = vpop.f32.mrb[23].mxu0  ;;  %v1131_v61 = vshrl.u32 %v1107_v28, 16  ;;  %1404 = vmatprep.mubr.bf16.mxu1 %v6830_v24  ;;  %v1134_v5 = vshll.u32 %v1107_v28, 16 }
 0x1ee   : > { %v920_v47 = vsel %vm903_vm5, %v917_v30, %v919_v27  ;;  %v921_v32 = vrot.slane %v760_v26, 1 }
 0x1ef   : > { %v1086_v25 = vmul.f32 0.1, %v1073_v37  ;;  %v948_v7 = vadd.f32 %v920_v47, %v886_v6  ;;  %v1133_v48 = vrot.slane %v1131_v61, 3  ;;  %v1136_v11 = vrot.slane %v1134_v5, 4 }
 0x1f0   : > { %v922_v29 = vsel %vm903_vm5, %v919_v27, %v921_v32  ;;  %v1098_v22 = vmax.f32 %v1072_v2, %v1085_v31  ;;  %v888_v47 = vadd.f32 %v5966_v4, %v758_v52  ;;  %v1049_v2 = vrot.slane %v5919_v45, 1 }
 0x1f1   : > { %v1099_v12 = vmax.f32 %v1073_v37, %v1086_v25  ;;  %v1013_v30 = vadd.f32 %v6012_v60, %v948_v7  ;;  %v949_v53 = vadd.f32 %v922_v29, %v887_v23  ;;  %v1137_v26 = vor.u32 %v1136_v11, %v1133_v48 }
 0x1f2   : > { %v764_v28 = vpop.f32.mrb[24].mxu0  ;;  %v6078_v52 = vrot.slane %v5921_v46, 1 }
 0x1f3   : > { %v1074_v57 = vmul.f32 %v6062_v17, %v1013_v30  ;;  %v1014_v6 = vadd.f32 %v6005_v50, %v949_v53  ;;  %v766_v61 = vpop.f32.mrb[25].mxu0  ;;  %v1108_v0 = vpack.c.bf16 %v1099_v12, %v1098_v22  ;;  %v1138_v60 = vsel %vm1112_vm2, %v1128_v1, %v1137_v26 }
 0x1f4   : > { %v923_v27 = vrot.slane %v766_v61, 1  ;;  %v768_v31 = vpop.f32.mrb[26].mxu0  ;;  %1405 = vmatmul.mubr.bf16.gmra.mrb[24].mxu1 %v1138_v60  ;;  %4838 = vmatprep.mubr.bf16.mxu0 %v1138_v60  ;;  %v889_v1 = vadd.f32 %v5966_v4, %v764_v28  ;;  %v6083_v12 = vsel %vm903_vm5, %v1047_v59, %v1049_v2 }
 0x1f5   : > { %v1087_v37 = vmul.f32 0.1, %v1074_v57  ;;  %v1075_v3 = vmul.f32 %v6067_v58, %v1014_v6  ;;  %v890_v5 = vadd.f32 %v5966_v4, %v768_v31  ;;  %v770_v25 = vpop.f32.mrb[27].mxu0  ;;  %v1140_v23 = vshrl.u32 %v1108_v0, 16  ;;  %1414 = vmatprep.mubr.bf16.mxu1 %v6830_v24 }
 0x1f6   : > { %v924_v50 = vsel %vm903_vm5, %v921_v32, %v923_v27  ;;  %v925_v7 = vrot.slane %v770_v25, 1  ;;  %v1143_v48 = vshll.u32 %v1108_v0, 16  ;;  %v6090_v0 = vsel %vm903_vm5, %v1049_v2, %v6078_v52 }
 0x1f7   : > { %v1088_v29 = vmul.f32 0.1, %v1075_v3  ;;  %v950_v11 = vadd.f32 %v924_v50, %v888_v47  ;;  %v1142_v22 = vrot.slane %v1140_v23, 3  ;;  %v1100_v32 = vmax.f32 %v1074_v57, %v1087_v37 }
 0x1f8   : > { %v926_v30 = vsel %vm903_vm5, %v923_v27, %v925_v7  ;;  %v952_v53 = vadd.f32 %v925_v7, %v890_v5  ;;  %v1145_v6 = vrot.slane %v1143_v48, 4 }
 0x1f9   : > { %v1101_v61 = vmax.f32 %v1075_v3, %v1088_v29  ;;  %v1015_v31 = vadd.f32 %v6024_v54, %v950_v11  ;;  %v951_v60 = vadd.f32 %v926_v30, %v889_v1 }
 0x1fa   : > { %v1017_v25 = vadd.f32 %v6038_v21, %v952_v53  ;;  %v1146_v4 = vor.u32 %v1145_v6, %v1142_v22  ;;  %v774_v28 = vpop.f32.mrb[28].mxu0 }
 0x1fb   : > { %v1076_v59 = vmul.f32 %v6083_v12, %v1015_v31  ;;  %v1016_v47 = vadd.f32 %v6035_v49, %v951_v60  ;;  %v1109_v27 = vpack.c.bf16 %v1101_v61, %v1100_v32  ;;  %v775_v5 = vpop.f32.mrb[29].mxu0 }
 0x1fc   : > { %v1078_v57 = vmul.f32 %v6078_v52, %v1017_v25  ;;  %v1147_v37 = vsel %vm1112_vm2, %v1137_v26, %v1146_v4  ;;  %v776_v54 = vpop.f32.mrb[30].mxu0 }
 0x1fd   : > { %v1089_v3 = vmul.f32 0.1, %v1076_v59  ;;  %v1077_v21 = vmul.f32 %v6090_v0, %v1016_v47  ;;  %1415 = vmatmul.mubr.bf16.gmra.mrb[28].mxu1 %v1147_v37  ;;  %4839 = vmatmul.mubr.bf16.gmra.mrb[36].mxu0 %v1147_v37  ;;  %v1149_v2 = vshrl.u32 %v1109_v27, 16  ;;  %v1152_v23 = vshll.u32 %v1109_v27, 16  ;;  %v777_v50 = vpop.f32.mrb[31].mxu0 }
 0x1fe   : > { %v1091_v7 = vmul.f32 0.1, %v1078_v57  ;;  %1424 = vmatprep.mubr.bf16.mxu1 %v6830_v24  ;;  %v5159_v50 = vld [vmem:[#allocation9 + $0xdc] ss:$12 sps:$4 sm:$0xff]  }
 0x1ff   : > { %v1090_v48 = vmul.f32 0.1, %v1077_v21  ;;  %v1151_v49 = vrot.slane %v1149_v2, 3  ;;  %v1154_v29 = vrot.slane %v1152_v23, 4  ;;  %v1102_v11 = vmax.f32 %v1076_v59, %v1089_v3  ;;  %v5156_v2 = vld [vmem:[#allocation9 + $0xc4] ss:$12 sps:$4 sm:$0xff]  }
 0x200   : > { %v1104_v1 = vmax.f32 %v1078_v57, %v1091_v7  ;;  %v5154_v23 = vld [vmem:[#allocation9 + $0xc0] ss:$12 sps:$4 sm:$0xff]   ;;  %2048 = vmatprep.subr.bf16.mxu0 %v5156_v2  ;;  %v5157_v7 = vld [vmem:[#allocation9 + $0xd8] ss:$12 sps:$4 sm:$0xff]  }
 0x201   : > { %v1103_v22 = vmax.f32 %v1077_v21, %v1090_v48  ;;  %v1155_v30 = vor.u32 %v1154_v29, %v1151_v49  ;;  %2049 = vmatpush1.bf16.msra.mxu0 %v5154_v23  ;;  %v5163_v48 = vld [vmem:[#allocation9 + $0xf4] ss:$12 sps:$4 sm:$0xff]   ;;  %v5161_v49 = vld [vmem:[#allocation9 + $0xf0] ss:$12 sps:$4 sm:$0xff]   ;;  %v5166_v29 = vld [vmem:[#allocation9 + $0x10c] ss:$12 sps:$4 sm:$0xff]  }
 0x202   : > { %v1111_v26 = vpack.c.bf16 %v1104_v1, %v1104_v1  ;;  %2050 = vmatprep.subr.bf16.mxu0 %v5159_v50  ;;  %v5164_v1 = vld [vmem:[#allocation9 + $0x108] ss:$12 sps:$4 sm:$0xff]  }
 0x203   : > { %v1156_v53 = vsel %vm1112_vm2, %v1146_v4, %v1155_v30  ;;  %v1110_v6 = vpack.c.bf16 %v1103_v22, %v1102_v11  ;;  %v1389_v4 = vpop.f32.mrb[16].mxu1  ;;  %v5153_v11 = vld [vmem:[#allocation9 + $0xf8] ss:$12 sps:$4 sm:$0xff]   ;;  %v5160_v22 = vld [vmem:[#allocation9 + $0x110] ss:$12 sps:$4 sm:$0xff]  }
 0x204   : > { %4842 = vmatprep.mubr.bf16.mxu0 %v1156_v53  ;;  %v1167_v32 = vshrl.u32 %v1111_v26, 16  ;;  %v1170_v61 = vshll.u32 %v1111_v26, 16  ;;  %v1390_v54 = vpop.f32.mrb[17].mxu1  ;;  %4854 = vmatprep.subr.bf16.mxu1 %v5153_v11  ;;  %v5168_v26 = vld [vmem:[#allocation9 + $0x120] ss:$12 sps:$4 sm:$0xff]  }
 0x205   : > { %1425 = vmatmul.mubr.bf16.gmra.mrb[32].mxu1 %v1156_v53  ;;  %v1158_v31 = vshrl.u32 %v1110_v6, 16  ;;  %v1161_v60 = vshll.u32 %v1110_v6, 16  ;;  %v6108_v3 = vpop.f32.mrb[18].mxu1  ;;  %2051 = vmatpush1.bf16.msra.mxu0 %v5157_v7  ;;  %v5173_v53 = vld [vmem:[#allocation9 + $0x13c] ss:$12 sps:$4 sm:$0xff]  }
 0x206   : > { %1434 = vmatprep.mubr.bf16.mxu1 %v6830_v24  ;;  %v1169_v25 = vrot.slane %v1167_v32, 3  ;;  %v1172_v28 = vrot.slane %v1170_v61, 4  ;;  %v1393_v21 = vpop.f32.mrb[19].mxu1  ;;  %2052 = vmatprep.subr.bf16.mxu0 %v5163_v48  ;;  %v5171_v6 = vld [vmem:[#allocation9 + $0x138] ss:$12 sps:$4 sm:$0xff]  }
 0x207   : > { %v1160_v47 = vrot.slane %v1158_v31, 3  ;;  %v1163_v27 = vrot.slane %v1161_v60, 4  ;;  %4855 = vmatpush3.bf16.msra.mxu1 %v5153_v11  ;;  %v5167_v32 = vld [vmem:[#allocation9 + $0x128] ss:$12 sps:$4 sm:$0xff]   ;;  %v5175_v31 = vld [vmem:[#allocation9 + $0x150] ss:$12 sps:$4 sm:$0xff]  }
 0x208   : > { %v1173_v5 = vor.u32 %v1172_v28, %v1169_v25  ;;  %4856 = vmatprep.subr.bf16.mxu1 %v5160_v22  ;;  %v5177_v61 = vld [vmem:[#allocation9 + $0x154] ss:$12 sps:$4 sm:$0xff]   ;;  %v5180_v25 = vld [vmem:[#allocation9 + $0x16c] ss:$12 sps:$4 sm:$0xff]  }
 0x209   : > { %v1164_v59 = vor.u32 %v1163_v27, %v1160_v47  ;;  %2053 = vmatpush1.bf16.msra.mxu0 %v5161_v49  ;;  %v5174_v60 = vld [vmem:[#allocation9 + $0x140] ss:$12 sps:$4 sm:$0xff]   ;;  %v5178_v28 = vld [vmem:[#allocation9 + $0x168] ss:$12 sps:$4 sm:$0xff]   ;;  %v5181_v47 = vld [vmem:[#allocation9 + $0x158] ss:$12 sps:$4 sm:$0xff]  }
 0x20a   : > { %2054 = vmatprep.subr.bf16.mxu0 %v5166_v29  ;;  %v5182_v27 = vld [vmem:[#allocation9 + $0x170] ss:$12 sps:$4 sm:$0xff]  }
 0x20b   : > { %v1165_v57 = vsel %vm1112_vm2, %v1155_v30, %v1164_v59  ;;  %v1174_v37 = vsel %vm1112_vm2, %v1164_v59, %v1173_v5  ;;  %v5170_v30 = vld [vmem:[#allocation9 + $0x124] ss:$12 sps:$4 sm:$0xff]   ;;  %4857 = vmatpush3.bf16.msra.mxu1 %v5160_v22  ;;  %v5183_v5 = vld [vmem:[#allocation11 + $0xc8] ss:$12 sps:$4 sm:$0xff]  }
 0x20c   : > { %4843 = vmatmul.mubr.bf16.gmra.mrb[40].mxu0 %v1165_v57  ;;  %4858 = vmatprep.subr.bf16.mxu1 %v5167_v32  ;;  %v5186_v59 = vld [vmem:[#allocation11 + $0xc4] ss:$12 sps:$4 sm:$0xff]   ;;  %v5279_v22 = vld [vmem:[#allocation4 + $0x8] sm:$0xff] }
 0x20d   : > { %1435 = vmatmul.mubr.bf16.gmra.mrb[36].mxu1 %v1165_v57  ;;  %4846 = vmatprep.mubr.bf16.mxu0 %v1174_v37  ;;  %v5187_v57 = vld [vmem:[#allocation11 + $0xe0] ss:$12 sps:$4 sm:$0xff]  }
 0x20e   : > { %1444 = vmatprep.mubr.bf16.mxu1 %v6830_v24  ;;  %2055 = vmatpush1.bf16.msra.mxu0 %v5164_v1 }
 0x20f   : > { %2056 = vmatprep.subr.bf16.mxu0 %v5170_v30  ;;  %4859 = vmatpush3.bf16.msra.mxu1 %v5167_v32  ;;  %v1711_v30 = vrot.slane %v5279_v22, 1 }
 0x210   : > { %4860 = vmatprep.subr.bf16.mxu1 %v5174_v60 }
 0x212   : > { %2057 = vmatpush1.bf16.msra.mxu0 %v5168_v26 }
 0x213   : > { %2058 = vmatprep.subr.bf16.mxu0 %v5173_v53  ;;  %4861 = vmatpush3.bf16.msra.mxu1 %v5174_v60 }
 0x214   : > { %4847 = vmatmul.mubr.bf16.gmra.mrb[44].mxu0 %v6830_v24  ;;  %4862 = vmatprep.subr.bf16.mxu1 %v5181_v47 }
 0x215   : > { %1445 = vmatmul.mubr.bf16.gmra.mrb[40].mxu1 %v1174_v37  ;;  %2080 = vmatprep.mubr.bf16.mxu0 %v6830_v24  ;;  %v6115_v37 = vld [vmem:[%s6831_s10] ss:$0 sm:$0xff] }
 0x216   : > { %1454 = vmatprep.mubr.bf16.mxu1 %v6830_v24  ;;  %2059 = vmatpush1.bf16.msra.mxu0 %v5171_v6  ;;  %v1560_v23 = vadd.f32 %v6115_v37, %v6108_v3 }
 0x217   : > { %2060 = vmatprep.subr.bf16.mxu0 %v5177_v61  ;;  %4863 = vmatpush3.bf16.msra.mxu1 %v5181_v47 }
 0x218   : > { %4864 = vmatprep.subr.bf16.mxu1 %v5182_v27 }
 0x21a   : > { %2061 = vmatpush1.bf16.msra.mxu0 %v5175_v31  ;;  %v5280_v31 = vld [vmem:[#allocation4] sm:$0xff] }
 0x21b   : > { %2062 = vmatprep.subr.bf16.mxu0 %v5180_v25  ;;  %4865 = vmatpush3.bf16.msra.mxu1 %v5182_v27  ;;  %v1710_v3 = vrot.slane %v5280_v31, 1 }
 0x21c   : > { %2719 = vmatprep.subr.bf16.mxu1 %v5186_v59 }
 0x21d   : > { %1455 = vmatmul.mubr.bf16.gmra.mrb[44].mxu1 %v6830_v24 }
 0x21e   : > { %4866 = vmatprep.mubr.bf16.mxu1 %v6830_v24  ;;  %2063 = vmatpush1.bf16.msra.mxu0 %v5178_v28  ;;  %v1712_v28 = vsel %vm903_vm5, %v1710_v3, %v1711_v30 }
 0x21f   : > { %4882 = vmatprep.subr.bf16.mxu0 %v5183_v5 }
 0x221   : > { %2081 = vmatmul.mubr.bf16.vlgmr.msra.gmra.mrb[48].mxu0 %v6830_v24 }
 0x222   : > { %2087 = vmatprep.mubr.bf16.mxu0 %v6830_v24  ;;  %4883 = vmatpush3.bf16.msra.mxu0 %v5183_v5 }
 0x223   : > { %4884 = vmatprep.subr.bf16.mxu0 %v5187_v57 }
 0x226   : > { %4885 = vmatpush3.bf16.msra.mxu0 %v5187_v57 }
 0x2bf   : > { %v1396_v4 = vpop.f32.mrb[20].mxu1  ;;  %v4836_v54 = vpop.f32.mrb[32].mxu0 }
 0x2c0   : > { %v1398_v21 = vpop.f32.mrb[21].mxu1  ;;  %v1495_v2 = vpop.f32.mrb[33].mxu0  ;;  %v1647_v49 = vrot.slane %v4836_v54, 2  ;;  %v1561_v6 = vadd.f32 %v6115_v37, %v1396_v4 }
 0x2c1   : > { %v1585_v50 = vrot.slane %v1398_v21, 1  ;;  %v1400_v7 = vpop.f32.mrb[22].mxu1  ;;  %v6119_v48 = vpop.f32.mrb[34].mxu0 }
 0x2c2   : > { %v1648_v29 = vrot.slane %v6119_v48, 2  ;;  %v1402_v1 = vpop.f32.mrb[23].mxu1  ;;  %v1497_v11 = vpop.f32.mrb[35].mxu0  ;;  %v1562_v21 = vadd.f32 %v6115_v37, %v1400_v7 }
 0x2c3   : > { %v1621_v26 = vadd.f32 %v1585_v50, %v1560_v23  ;;  %v1586_v53 = vrot.slane %v1402_v1, 1 }
 0x2c4   : > { %v1649_v32 = vsel %vm966_vm1, %v1647_v49, %v1648_v29 }
 0x2c5   : > { %v1685_v61 = vadd.f32 %v1647_v49, %v1621_v26  ;;  %v1587_v60 = vsel %vm903_vm5, %v1585_v50, %v1586_v53  ;;  %v1713_v50 = vrot.slane %v5837_v8, 1  ;;  %v1717_v49 = vrot.slane %v5843_v10, 1  ;;  %v6142_v8 = vld [vmem:[#allocation4 + $0x10] sm:$0xff] }
 0x2c6   : > { %v1622_v25 = vadd.f32 %v1587_v60, %v1561_v6  ;;  %v1715_v26 = vrot.slane %v5840_v9, 1 }
 0x2c7   : > { %v1406_v47 = vpop.f32.mrb[24].mxu1  ;;  %v6126_v59 = vadd.f32 %v1710_v3, %v1685_v61  ;;  %v1714_v60 = vsel %vm903_vm5, %v1711_v30, %v1713_v50 }
 0x2c8   : > { %v1686_v27 = vadd.f32 %v1649_v32, %v1622_v25  ;;  %v1408_v5 = vpop.f32.mrb[25].mxu1  ;;  %v1563_v11 = vadd.f32 %v6115_v37, %v1406_v47  ;;  %v1716_v9 = vsel %vm903_vm5, %v1713_v50, %v1715_v26  ;;  %v1718_v47 = vsel %vm903_vm5, %v1715_v26, %v1717_v49 }
 0x2c9   : > { %6832 = vst [vmem:[#allocation39_spill] sm:$0xff] %v6126_v59  ;;  %v1588_v57 = vrot.slane %v1408_v5, 1  ;;  %v1410_v54 = vpop.f32.mrb[26].mxu1  ;;  %v1759_v7 = vmul.f32 %v6126_v59, %v5971_v18 }
 0x2ca   : > { %v6129_v4 = vadd.f32 %v1712_v28, %v1686_v27  ;;  %v1412_v2 = vpop.f32.mrb[27].mxu1  ;;  %v1721_v27 = vrot.slane %v5853_v15, 1  ;;  %v1564_v30 = vadd.f32 %v6115_v37, %v1410_v54 }
 0x2cb   : > { %v1589_v23 = vsel %vm903_vm5, %v1586_v53, %v1588_v57  ;;  %v1590_v48 = vrot.slane %v1412_v2, 1  ;;  %v1719_v53 = vrot.slane %v5850_v14, 1  ;;  %v1723_v14 = vrot.slane %v5856_v16, 1 }
 0x2cc   : > { %6833 = vst [vmem:[#allocation40_spill] sm:$0xff] %v6129_v4  ;;  %v1760_v1 = vmul.f32 %v6129_v4, %v5980_v51  ;;  %v1623_v22 = vadd.f32 %v1589_v23, %v1562_v21  ;;  %v1772_v5 = vmul.f32 0.1, %v1759_v7 }
 0x2cd   : > { %v1591_v6 = vsel %vm903_vm5, %v1588_v57, %v1590_v48 }
 0x2ce   : > { %v1773_v32 = vmul.f32 0.1, %v1760_v1  ;;  %v1624_v61 = vadd.f32 %v1591_v6, %v1563_v11  ;;  %v1720_v11 = vsel %vm903_vm5, %v1717_v49, %v1719_v53  ;;  %v1785_v49 = vmax.f32 %v1759_v7, %v1772_v5 }
 0x2d0   : > { %v1416_v31 = vpop.f32.mrb[28].mxu1  ;;  %v4840_v3 = vpop.f32.mrb[36].mxu0  ;;  %v1786_v26 = vmax.f32 %v1760_v1, %v1773_v32 }
 0x2d1   : > { %v1418_v25 = vpop.f32.mrb[29].mxu1  ;;  %v1509_v28 = vpop.f32.mrb[37].mxu0  ;;  %v1654_v6 = vrot.slane %v4840_v3, 2 }
 0x2d2   : > { %v1592_v57 = vrot.slane %v1418_v25, 1  ;;  %v1650_v21 = vrot.slane %v1509_v28, 2  ;;  %v1420_v2 = vpop.f32.mrb[30].mxu1  ;;  %v6150_v23 = vpop.f32.mrb[38].mxu0  ;;  %v1565_v28 = vadd.f32 %v6115_v37, %v1416_v31  ;;  %v6167_v31 = vsel %vm903_vm5, %v1719_v53, %v1721_v27 }
 0x2d3   : > { %v6781_v10 = vrot.slane %v6150_v23, 2  ;;  %v1422_v50 = vpop.f32.mrb[31].mxu1  ;;  %v1512_v51 = vpop.f32.mrb[39].mxu0  ;;  %v1798_v7 = vpack.c.bf16 %v1786_v26, %v1785_v49  ;;  %v6179_v53 = vsel %vm903_vm5, %v1721_v27, %v1723_v14 }
 0x2d4   : > { %v1593_v15 = vsel %vm903_vm5, %v1590_v48, %v1592_v57  ;;  %v1651_v16 = vsel %vm966_vm1, %v1648_v29, %v1650_v21  ;;  %v1594_v4 = vrot.slane %v1422_v50, 1  ;;  %v1652_v25 = vrot.slane %v1512_v51, 2 }
 0x2d5   : > { %v1625_v18 = vadd.f32 %v1593_v15, %v1564_v30  ;;  %v1687_v59 = vadd.f32 %v1651_v16, %v1623_v22  ;;  %v1657_v54 = vsel %vm966_vm1, %v1654_v6, %v6781_v10  ;;  %v1725_v22 = vrot.slane %v5872_v19, 1  ;;  %v6181_v19 = vld [vmem:[#allocation4 + $0x18] sm:$0xff] }
 0x2d6   : > { %v1595_v3 = vsel %vm903_vm5, %v1592_v57, %v1594_v4  ;;  %v1653_v46 = vsel %vm966_vm1, %v1650_v21, %v1652_v25  ;;  %v1655_v1 = vsel %vm966_vm1, %v1652_v25, %v1654_v6  ;;  %v1727_v30 = vrot.slane %v5875_v20, 1 }
 0x2d7   : > { %v6164_v48 = vadd.f32 %v1714_v60, %v1687_v59  ;;  %v1626_v29 = vadd.f32 %v1595_v3, %v1565_v28  ;;  %v1688_v32 = vadd.f32 %v1653_v46, %v1624_v61  ;;  %v1689_v51 = vadd.f32 %v1655_v1, %v1625_v18 }
 0x2d8   : > { %v1426_v50 = vpop.f32.mrb[32].mxu1  ;;  %v1566_v46 = vadd.f32 %v6115_v37, %v1420_v2  ;;  %v1806_v27 = vshrl.u32 %v1798_v7, 16  ;;  %v1809_v25 = vshll.u32 %v1798_v7, 16  ;;  %v6836_v20 = vrot.slane %v6142_v8, 1 }
 0x2d9   : > { %v1761_v5 = vmul.f32 %v6164_v48, %v5994_v13  ;;  %v1690_v57 = vadd.f32 %v1657_v54, %v1626_v29  ;;  %v6173_v21 = vadd.f32 %v1716_v9, %v1688_v32  ;;  %v6175_v59 = vadd.f32 %v1718_v47, %v1689_v51  ;;  %v1428_v60 = vpop.f32.mrb[33].mxu1 }
 0x2da   : > { %v1596_v18 = vrot.slane %v1428_v60, 1  ;;  %v1430_v61 = vpop.f32.mrb[34].mxu1  ;;  %v1567_v49 = vadd.f32 %v6115_v37, %v1426_v50  ;;  %v6199_v29 = vsel %vm903_vm5, %v1725_v22, %v1727_v30  ;;  %v1726_v32 = vsel %vm903_vm5, %v1723_v14, %v1725_v22 }
 0x2db   : > { %6834 = vst [vmem:[#allocation41_spill] sm:$0xff] %v6175_v59  ;;  %v1774_v6 = vmul.f32 0.1, %v1761_v5  ;;  %v6184_v26 = vadd.f32 %v1720_v11, %v1690_v57  ;;  %v1762_v9 = vmul.f32 %v6173_v21, %v6001_v33  ;;  %v6190_v47 = vmul.f32 %v6175_v59, %v6018_v56  ;;  %v1432_v2 = vpop.f32.mrb[35].mxu1 }
 0x2dc   : > { %v1597_v15 = vsel %vm903_vm5, %v1594_v4, %v1596_v18  ;;  %v1598_v16 = vrot.slane %v1432_v2, 1  ;;  %v6207_v50 = vrot.slane %v1806_v27, 3  ;;  %v6838_v14 = vmov %v6836_v20 }
 0x2dd   : > { %6835 = vst [vmem:[#allocation42_spill] sm:$0xff] %v6184_v26  ;;  %v1764_v28 = vmul.f32 %v6184_v26, %v6027_v55  ;;  %v1775_v54 = vmul.f32 0.1, %v1762_v9  ;;  %v1776_v11 = vmul.f32 0.1, %v6190_v47  ;;  %v1627_v3 = vadd.f32 %v1597_v15, %v1566_v46 }
 0x2de   : > { %v1599_v1 = vsel %vm903_vm5, %v1596_v18, %v1598_v16  ;;  %v1787_v4 = vmax.f32 %v1761_v5, %v1774_v6  ;;  %v6205_v55 = vsel %vm903_vm5, %v1727_v30, %v6836_v20  ;;  %v6209_v46 = vrot.slane %v1809_v25, 4 }
 0x2df   : > { %v1777_v51 = vmul.f32 0.1, %v1764_v28  ;;  %v1788_v57 = vmax.f32 %v1762_v9, %v1775_v54  ;;  %v1628_v7 = vadd.f32 %v1599_v1, %v1567_v49  ;;  %v4844_v60 = vpop.f32.mrb[40].mxu0  ;;  %v6837_v18 = vrot.slane %v6181_v19, 1 }
 0x2e0   : > { %v1436_v2 = vpop.f32.mrb[36].mxu1  ;;  %v1525_v10 = vpop.f32.mrb[41].mxu0  ;;  %v1789_v5 = vmax.f32 %v6190_v47, %v1776_v11  ;;  %v1568_v6 = vadd.f32 %v6115_v37, %v1430_v61  ;;  %v1662_v27 = vrot.slane %v4844_v60, 2  ;;  %v6839_v8 = vrot.slane %v6150_v23, 2 }
 0x2e1   : > { %v6216_v22 = vsel %vm903_vm5, %v6838_v14, %v6837_v18  ;;  %v1438_v9 = vpop.f32.mrb[37].mxu1  ;;  %v1658_v15 = vrot.slane %v1525_v10, 2  ;;  %v4845_v54 = vpop.f32.mrb[42].mxu0  ;;  %v1799_v30 = vpack.c.bf16 %v1788_v57, %v1787_v4  ;;  %v1569_v20 = vadd.f32 %v6115_v37, %v1436_v2 }
 0x2e2   : > { %v1600_v25 = vrot.slane %v1438_v9, 1  ;;  %v1440_v49 = vpop.f32.mrb[38].mxu1  ;;  %v1664_v1 = vrot.slane %v4845_v54, 2  ;;  %v1528_v26 = vpop.f32.mrb[43].mxu0  ;;  %v1790_v11 = vmax.f32 %v1764_v28, %v1777_v51 }
 0x2e3   : > { %v1659_v18 = vsel %vm966_vm1, %v6839_v8, %v1658_v15  ;;  %v1442_v14 = vpop.f32.mrb[39].mxu1  ;;  %v1660_v56 = vrot.slane %v1528_v26, 2  ;;  %v1814_v47 = vshrl.u32 %v1799_v30, 16  ;;  %v1817_v59 = vshll.u32 %v1799_v30, 16 }
 0x2e4   : > { %v1601_v61 = vsel %vm903_vm5, %v1598_v16, %v1600_v25  ;;  %v1691_v10 = vadd.f32 %v1659_v18, %v1627_v3  ;;  %v1665_v4 = vsel %vm966_vm1, %v1662_v27, %v1664_v1  ;;  %v1602_v57 = vrot.slane %v1442_v14, 1 }
 0x2e5   : > { %v1629_v2 = vadd.f32 %v1601_v61, %v1568_v6  ;;  %v1661_v60 = vsel %vm966_vm1, %v1658_v15, %v1660_v56  ;;  %v1663_v9 = vsel %vm966_vm1, %v1660_v56, %v1662_v27  ;;  %v1816_v54 = vrot.slane %v1814_v47, 3 }
 0x2e6   : > { %v6229_v23 = vadd.f32 %v6167_v31, %v1691_v10  ;;  %v1603_v8 = vsel %vm903_vm5, %v1600_v25, %v1602_v57  ;;  %v1692_v26 = vadd.f32 %v1661_v60, %v1628_v7  ;;  %v1570_v28 = vadd.f32 %v6115_v37, %v1440_v49  ;;  %v5184_v60 = vld [vmem:[#allocation11 + $0xc0] ss:$12 sps:$4 sm:$0xff]  }
 0x2e7   : > { %v1630_v16 = vadd.f32 %v1603_v8, %v1569_v20  ;;  %v1693_v3 = vadd.f32 %v1663_v9, %v1629_v2  ;;  %v4848_v51 = vpop.f32.mrb[44].mxu0  ;;  %v1812_v6 = vor.u32 %v6209_v46, %v6207_v50  ;;  %v1819_v18 = vrot.slane %v1817_v59, 4 }
 0x2e8   : > { %v1765_v15 = vmul.f32 %v6229_v23, %v6044_v62  ;;  %v6238_v56 = vadd.f32 %v6179_v53, %v1692_v26  ;;  %v1446_v31 = vpop.f32.mrb[40].mxu1  ;;  %v1541_v27 = vpop.f32.mrb[45].mxu0  ;;  %v1800_v25 = vpack.c.bf16 %v1790_v11, %v1789_v5  ;;  %v1670_v49 = vrot.slane %v4848_v51, 2 }
 0x2e9   : > { %v1694_v7 = vadd.f32 %v1665_v4, %v1630_v16  ;;  %v6240_v30 = vadd.f32 %v1726_v32, %v1693_v3  ;;  %v1448_v20 = vpop.f32.mrb[41].mxu1  ;;  %v1666_v14 = vrot.slane %v1541_v27, 2  ;;  %v4849_v47 = vpop.f32.mrb[46].mxu0  ;;  %v1571_v46 = vadd.f32 %v6115_v37, %v1446_v31 }
 0x2ea   : > { %v1766_v50 = vmul.f32 %v6238_v56, %v6049_v63  ;;  %v1604_v61 = vrot.slane %v1448_v20, 1  ;;  %v1450_v10 = vpop.f32.mrb[42].mxu1  ;;  %v1820_v53 = vor.u32 %v1819_v18, %v1816_v54  ;;  %v1544_v2 = vpop.f32.mrb[47].mxu0  ;;  %v1778_v9 = vmul.f32 0.1, %v1765_v15 }
 0x2eb   : > { %v6246_v59 = vadd.f32 %v6199_v29, %v1694_v7  ;;  %v1767_v32 = vmul.f32 %v6240_v30, %v6062_v17  ;;  %v1667_v5 = vsel %vm966_vm1, %v1664_v1, %v1666_v14  ;;  %v1452_v11 = vpop.f32.mrb[43].mxu1  ;;  %v1572_v26 = vadd.f32 %v6115_v37, %v1450_v10 }
 0x2ec   : > { %v1779_v4 = vmul.f32 0.1, %v1766_v50  ;;  %v1605_v8 = vsel %vm903_vm5, %v1602_v57, %v1604_v61  ;;  %v1821_v16 = vsel %vm1112_vm2, %v1812_v6, %v1820_v53  ;;  %v1606_v29 = vrot.slane %v1452_v11, 1 }
 0x2ed   : > { %v1768_v54 = vmul.f32 %v6246_v59, %v6067_v58  ;;  %v1780_v3 = vmul.f32 0.1, %v1767_v32  ;;  %v1631_v51 = vadd.f32 %v1605_v8, %v1570_v28  ;;  %2088 = vmatmul.mubr.bf16.gmra.mrb[52].mxu0 %v1821_v16  ;;  %4867 = vmatmul.mubr.bf16.vlgmr.msra.gmra.mrb[48].mxu1 %v1821_v16  ;;  %v1668_v27 = vrot.slane %v1544_v2, 2 }
 0x2ee   : > { %v1792_v31 = vmax.f32 %v1766_v50, %v1779_v4  ;;  %v1823_v18 = vshrl.u32 %v1800_v25, 16  ;;  %v1826_v1 = vshll.u32 %v1800_v25, 16  ;;  %2097 = vmatprep.mubr.bf16.mxu0 %v6830_v24  ;;  %2720 = vmatpush1.bf16.msra.mxu1 %v5184_v60  ;;  %v1791_v57 = vmax.f32 %v1765_v15, %v1778_v9 }
 0x2ef   : > { %v1781_v7 = vmul.f32 0.1, %v1768_v54  ;;  %v1695_v37 = vadd.f32 %v1667_v5, %v1631_v51  ;;  %v1607_v6 = vsel %vm903_vm5, %v1604_v61, %v1606_v29  ;;  %v1633_v47 = vadd.f32 %v1606_v29, %v1572_v26 }
 0x2f0   : > { %v1632_v20 = vadd.f32 %v1607_v6, %v1571_v46  ;;  %v1669_v10 = vsel %vm966_vm1, %v1666_v14, %v1668_v27  ;;  %v1671_v28 = vsel %vm966_vm1, %v1668_v27, %v1670_v49  ;;  %v1456_v8 = vpop.f32.mrb[44].mxu1  ;;  %v1825_v2 = vrot.slane %v1823_v18, 3 }
 0x2f1   : > { %v6261_v50 = vadd.f32 %v6205_v55, %v1695_v37  ;;  %v1828_v25 = vrot.slane %v1826_v1, 4  ;;  %v1801_v11 = vpack.c.bf16 %v1792_v31, %v1791_v57  ;;  %v1457_v4 = vpop.f32.mrb[45].mxu1  ;;  %v1793_v60 = vmax.f32 %v1767_v32, %v1780_v3 }
 0x2f2   : > { %v1696_v15 = vadd.f32 %v1669_v10, %v1632_v20  ;;  %v1697_v9 = vadd.f32 %v1671_v28, %v1633_v47  ;;  %v1794_v5 = vmax.f32 %v1768_v54, %v1781_v7  ;;  %v1458_v16 = vpop.f32.mrb[46].mxu1  ;;  %v6840_v55 = vrot.slane %v6181_v19, 1 }
 0x2f3   : > { %v1769_v46 = vmul.f32 %v6261_v50, %v6083_v12  ;;  %v1829_v61 = vor.u32 %v1828_v25, %v1825_v2  ;;  %v1832_v14 = vshrl.u32 %v1801_v11, 16  ;;  %v1835_v26 = vshll.u32 %v1801_v11, 16  ;;  %v1459_v49 = vpop.f32.mrb[47].mxu1 }
 0x2f4   : > { %v6266_v51 = vadd.f32 %v6216_v22, %v1696_v15  ;;  %v6270_v29 = vadd.f32 %v6840_v55, %v1697_v9  ;;  %v1802_v31 = vpack.c.bf16 %v1794_v5, %v1793_v60 }
 0x2f5   : > { %v1782_v32 = vmul.f32 0.1, %v1769_v46  ;;  %v1830_v3 = vsel %vm1112_vm2, %v1820_v53, %v1829_v61  ;;  %v1834_v54 = vrot.slane %v1832_v14, 3  ;;  %v1837_v27 = vrot.slane %v1835_v26, 4 }
 0x2f6   : > { %v1770_v18 = vmul.f32 %v6266_v51, %v6090_v0  ;;  %v1771_v1 = vmul.f32 %v6270_v29, %v6078_v52  ;;  %4870 = vmatprep.mubr.bf16.mxu1 %v1830_v3  ;;  %2098 = vmatmul.mubr.bf16.gmra.mrb[56].mxu0 %v1830_v3  ;;  %v1841_v22 = vshrl.u32 %v1802_v31, 16  ;;  %v1844_v57 = vshll.u32 %v1802_v31, 16  ;;  %v2082_v31 = vpop.f32.mrb[48].mxu0 }
 0x2f7   : > { %2107 = vmatprep.mubr.bf16.mxu0 %v6830_v24  ;;  %v1838_v19 = vor.u32 %v1837_v27, %v1834_v54  ;;  %v1795_v47 = vmax.f32 %v1769_v46, %v1782_v32  ;;  %v2083_v32 = vpop.f32.mrb[49].mxu0  ;;  %v5190_v27 = vld [vmem:[#allocation11 + $0xdc] ss:$12 sps:$4 sm:$0xff]  }
 0x2f8   : > { %v1783_v7 = vmul.f32 0.1, %v1770_v18  ;;  %v1784_v37 = vmul.f32 0.1, %v1771_v1  ;;  %v1843_v6 = vrot.slane %v1841_v22, 3  ;;  %v1846_v20 = vrot.slane %v1844_v57, 4  ;;  %2721 = vmatprep.subr.bf16.mxu1 %v5190_v27 }
 0x2f9   : > { %v1839_v53 = vsel %vm1112_vm2, %v1829_v61, %v1838_v19  ;;  %v6290_v3 = vpop.f32.mrb[50].mxu0  ;;  %v5191_v22 = vld [vmem:[#allocation11 + $0xf0] ss:$12 sps:$4 sm:$0xff]   ;;  %v5197_v57 = vld [vmem:[#allocation11 + $0x10c] ss:$12 sps:$4 sm:$0xff]  }
 0x2fa   : > { %v1796_v10 = vmax.f32 %v1770_v18, %v1783_v7  ;;  %4871 = vmatmul.mubr.bf16.gmra.mrb[52].mxu1 %v1839_v53  ;;  %v1847_v28 = vor.u32 %v1846_v20, %v1843_v6  ;;  %v1797_v8 = vmax.f32 %v1771_v1, %v1784_v37  ;;  %v2086_v54 = vpop.f32.mrb[51].mxu0  ;;  %v5188_v18 = vld [vmem:[#allocation11 + $0xd8] ss:$12 sps:$4 sm:$0xff]   ;;  %v5193_v1 = vld [vmem:[#allocation11 + $0xf4] ss:$12 sps:$4 sm:$0xff]  }
 0x2fb   : > { %2722 = vmatpush1.bf16.msra.mxu1 %v5188_v18  ;;  %v5195_v7 = vld [vmem:[#allocation11 + $0x108] ss:$12 sps:$4 sm:$0xff]   ;;  %v5200_v37 = vld [vmem:[#allocation11 + $0x124] ss:$12 sps:$4 sm:$0xff]   ;;  %v5198_v20 = vld [vmem:[#allocation11 + $0x120] ss:$12 sps:$4 sm:$0xff]  }
 0x2fc   : > { %v1848_v2 = vsel %vm1112_vm2, %v1838_v19, %v1847_v28  ;;  %v1803_v25 = vpack.c.bf16 %v1796_v10, %v1795_v47  ;;  %v1804_v11 = vpack.c.bf16 %v1797_v8, %v1797_v8  ;;  %2723 = vmatprep.subr.bf16.mxu1 %v5193_v1  ;;  %v5194_v19 = vld [vmem:[#allocation11 + $0xf8] ss:$12 sps:$4 sm:$0xff]   ;;  %v5201_v6 = vld [vmem:[#allocation11 + $0x110] ss:$12 sps:$4 sm:$0xff]   ;;  %v5207_v10 = vld [vmem:[#allocation11 + $0x154] ss:$12 sps:$4 sm:$0xff]  }
 0x2fd   : > { %4874 = vmatprep.mubr.bf16.mxu1 %v1848_v2  ;;  %4886 = vmatprep.subr.bf16.mxu0 %v5194_v19  ;;  %v5202_v47 = vld [vmem:[#allocation11 + $0x138] ss:$12 sps:$4 sm:$0xff]   ;;  %v5208_v8 = vld [vmem:[#allocation11 + $0x128] ss:$12 sps:$4 sm:$0xff]  }
 0x2fe   : > { %2108 = vmatmul.mubr.bf16.gmra.mrb[60].mxu0 %v1839_v53  ;;  %v1850_v4 = vshrl.u32 %v1803_v25, 16  ;;  %v1853_v60 = vshll.u32 %v1803_v25, 16  ;;  %v1859_v15 = vshrl.u32 %v1804_v11, 16  ;;  %v1862_v9 = vshll.u32 %v1804_v11, 16  ;;  %v5204_v53 = vld [vmem:[#allocation11 + $0x13c] ss:$12 sps:$4 sm:$0xff]  }
 0x2ff   : > { %2117 = vmatprep.mubr.bf16.mxu0 %v6830_v24  ;;  %2724 = vmatpush1.bf16.msra.mxu1 %v5191_v22  ;;  %v5209_v25 = vld [vmem:[#allocation11 + $0x168] ss:$12 sps:$4 sm:$0xff]   ;;  %v5212_v11 = vld [vmem:[#allocation11 + $0x140] ss:$12 sps:$4 sm:$0xff]  }
 0x300   : > { %v1852_v5 = vrot.slane %v1850_v4, 3  ;;  %v1855_v16 = vrot.slane %v1853_v60, 4  ;;  %v1861_v61 = vrot.slane %v1859_v15, 3  ;;  %v1864_v46 = vrot.slane %v1862_v9, 4  ;;  %2725 = vmatprep.subr.bf16.mxu1 %v5197_v57  ;;  %4887 = vmatpush3.bf16.msra.mxu0 %v5194_v19  ;;  %v5213_v4 = vld [vmem:[#allocation11 + $0x158] ss:$12 sps:$4 sm:$0xff]  }
 0x301   : > { %4888 = vmatprep.subr.bf16.mxu0 %v5201_v6  ;;  %v5214_v60 = vld [vmem:[#allocation11 + $0x170] ss:$12 sps:$4 sm:$0xff]   ;;  %v5215_v15 = vld [vmem:[#allocation9 + $0x188] ss:$12 sps:$4 sm:$0xff]   ;;  %v5216_v9 = vld [vmem:[#allocation9 + $0x1a0] ss:$12 sps:$4 sm:$0xff]  }
 0x302   : > { %v1856_v14 = vor.u32 %v1855_v16, %v1852_v5  ;;  %v1865_v26 = vor.u32 %v1864_v46, %v1861_v61  ;;  %v5219_v5 = vld [vmem:[#allocation9 + $0x184] ss:$12 sps:$4 sm:$0xff]   ;;  %v6297_v16 = vld [vmem:[%s6758_s3 + $0x1] ss:$0 sm:$0xff]  ;;  %v2393_v57 = vrot.slane %v5890_v34, 3 }
 0x303   : > { %2726 = vmatpush1.bf16.msra.mxu1 %v5195_v7  ;;  %v2394_v7 = vrot.slane %v5894_v35, 3 }
 0x304   : > { %v1857_v49 = vsel %vm1112_vm2, %v1847_v28, %v1856_v14  ;;  %v1866_v55 = vsel %vm1112_vm2, %v1856_v14, %v1865_v26  ;;  %2727 = vmatprep.subr.bf16.mxu1 %v5200_v37  ;;  %4889 = vmatpush3.bf16.msra.mxu0 %v5201_v6  ;;  %v5205_v28 = vld [vmem:[#allocation11 + $0x150] ss:$12 sps:$4 sm:$0xff]  }
 0x305   : > { %4875 = vmatmul.mubr.bf16.gmra.mrb[56].mxu1 %v1857_v49  ;;  %4890 = vmatprep.subr.bf16.mxu0 %v5208_v8 }
 0x306   : > { %2118 = vmatmul.mubr.bf16.gmra.mrb[64].mxu0 %v1848_v2  ;;  %4878 = vmatprep.mubr.bf16.mxu1 %v1866_v55  ;;  %v5211_v2 = vld [vmem:[#allocation11 + $0x16c] ss:$12 sps:$4 sm:$0xff]  }
 0x307   : > { %2127 = vmatprep.mubr.bf16.mxu0 %v6830_v24  ;;  %2728 = vmatpush1.bf16.msra.mxu1 %v5198_v20 }
 0x308   : > { %2729 = vmatprep.subr.bf16.mxu1 %v5204_v53  ;;  %4891 = vmatpush3.bf16.msra.mxu0 %v5208_v8 }
 0x309   : > { %4892 = vmatprep.subr.bf16.mxu0 %v5212_v11 }
 0x30b   : > { %2730 = vmatpush1.bf16.msra.mxu1 %v5202_v47 }
 0x30c   : > { %2731 = vmatprep.subr.bf16.mxu1 %v5207_v10  ;;  %4893 = vmatpush3.bf16.msra.mxu0 %v5212_v11  ;;  %v2395_v10 = vsel %vm2278_vm7, %v2393_v57, %v2394_v7 }
 0x30d   : > { %4879 = vmatmul.mubr.bf16.gmra.mrb[60].mxu1 %v6830_v24  ;;  %4894 = vmatprep.subr.bf16.mxu0 %v5213_v4 }
 0x30e   : > { %2128 = vmatmul.mubr.bf16.gmra.mrb[68].mxu0 %v1857_v49  ;;  %2751 = vmatprep.mubr.bf16.mxu1 %v6830_v24  ;;  %v2253_v49 = vadd.f32 %v6297_v16, %v6290_v3 }
 0x30f   : > { %2137 = vmatprep.mubr.bf16.mxu0 %v6830_v24  ;;  %2732 = vmatpush1.bf16.msra.mxu1 %v5205_v28 }
 0x310   : > { %2733 = vmatprep.subr.bf16.mxu1 %v5211_v2  ;;  %4895 = vmatpush3.bf16.msra.mxu0 %v5213_v4 }
 0x311   : > { %4896 = vmatprep.subr.bf16.mxu0 %v5214_v60 }
 0x313   : > { %2734 = vmatpush1.bf16.msra.mxu1 %v5209_v25  ;;  %v2396_v25 = vrot.slane %v5896_v36, 3 }
 0x314   : > { %4897 = vmatpush3.bf16.msra.mxu0 %v5214_v60  ;;  %4914 = vmatprep.subr.bf16.mxu1 %v5215_v15 }
 0x315   : > { %3364 = vmatprep.subr.bf16.mxu0 %v5219_v5 }
 0x316   : > { %2138 = vmatmul.mubr.bf16.gmra.mrb[72].mxu0 %v1866_v55  ;;  %2752 = vmatmul.mubr.bf16.vlgmr.msra.gmra.mrb[64].mxu1 %v6830_v24 }
 0x317   : > { %2147 = vmatprep.mubr.bf16.mxu0 %v6830_v24  ;;  %2758 = vmatprep.mubr.bf16.mxu1 %v6830_v24 }
 0x318   : > { %4915 = vmatpush3.bf16.msra.mxu1 %v5215_v15 }
 0x319   : > { %4916 = vmatprep.subr.bf16.mxu1 %v5216_v9 }
 0x31c   : > { %4917 = vmatpush3.bf16.msra.mxu1 %v5216_v9 }
 0x31e   : > { %2148 = vmatmul.mubr.bf16.gmra.mrb[76].mxu0 %v6830_v24 }
 0x31f   : > { %4898 = vmatprep.mubr.bf16.mxu0 %v6830_v24 }
 0x3c0   : > { %v2089_v61 = vpop.f32.mrb[52].mxu0  ;;  %v4868_v46 = vpop.f32.mrb[48].mxu1 }
 0x3c1   : > { %v2091_v14 = vpop.f32.mrb[53].mxu0  ;;  %v2188_v26 = vpop.f32.mrb[49].mxu1  ;;  %v2342_v54 = vrot.slane %v4868_v46, 6  ;;  %v2254_v37 = vadd.f32 %v6297_v16, %v2089_v61 }
 0x3c2   : > { %v2279_v55 = vrot.slane %v2091_v14, 3  ;;  %v2093_v31 = vpop.f32.mrb[54].mxu0  ;;  %v4869_v32 = vpop.f32.mrb[50].mxu1 }
 0x3c3   : > { %v2343_v27 = vrot.slane %v4869_v32, 6  ;;  %v2095_v18 = vpop.f32.mrb[55].mxu0  ;;  %v2190_v1 = vpop.f32.mrb[51].mxu1  ;;  %v2255_v9 = vadd.f32 %v6297_v16, %v2093_v31 }
 0x3c4   : > { %v2315_v22 = vadd.f32 %v2279_v55, %v2253_v49  ;;  %v2280_v19 = vrot.slane %v2095_v18, 3  ;;  %v2398_v18 = vrot.slane %v5901_v38, 3 }
 0x3c5   : > { %v2344_v6 = vsel %vm2341_vm6, %v2342_v54, %v2343_v27 }
 0x3c6   : > { %v2380_v3 = vadd.f32 %v2342_v54, %v2315_v22  ;;  %v2281_v20 = vsel %vm2278_vm7, %v2279_v55, %v2280_v19  ;;  %v2397_v54 = vsel %vm2278_vm7, %v2394_v7, %v2396_v25  ;;  %v2400_v7 = vrot.slane %v5905_v39, 3 }
 0x3c7   : > { %v2316_v53 = vadd.f32 %v2281_v20, %v2254_v37  ;;  %v2402_v20 = vrot.slane %v5909_v40, 3 }
 0x3c8   : > { %v2429_v47 = vmul.f32 %v2393_v57, %v2380_v3 }
 0x3c9   : > { %v2381_v28 = vadd.f32 %v2344_v6, %v2316_v53  ;;  %v2099_v8 = vpop.f32.mrb[56].mxu0 }
 0x3ca   : > { %v2101_v2 = vpop.f32.mrb[57].mxu0  ;;  %v2442_v11 = vmul.f32 0.1, %v2429_v47  ;;  %v2256_v49 = vadd.f32 %v6297_v16, %v2099_v8 }
 0x3cb   : > { %v2430_v4 = vmul.f32 %v2395_v10, %v2381_v28  ;;  %v2282_v60 = vrot.slane %v2101_v2, 3  ;;  %v2103_v15 = vpop.f32.mrb[58].mxu0 }
 0x3cc   : > { %v2105_v5 = vpop.f32.mrb[59].mxu0  ;;  %v2455_v1 = vmax.f32 %v2429_v47, %v2442_v11 }
 0x3cd   : > { %v2443_v61 = vmul.f32 0.1, %v2430_v4  ;;  %v2283_v46 = vsel %vm2278_vm7, %v2280_v19, %v2282_v60  ;;  %v2284_v14 = vrot.slane %v2105_v5, 3  ;;  %v4872_v26 = vpop.f32.mrb[52].mxu1 }
 0x3ce   : > { %v2317_v55 = vadd.f32 %v2283_v46, %v2255_v9  ;;  %v2202_v32 = vpop.f32.mrb[53].mxu1  ;;  %v2349_v3 = vrot.slane %v4872_v26, 6  ;;  %v2404_v9 = vrot.slane %v5911_v41, 3  ;;  %v2406_v26 = vrot.slane %v5913_v42, 3 }
 0x3cf   : > { %v2456_v22 = vmax.f32 %v2430_v4, %v2443_v61  ;;  %v2285_v57 = vsel %vm2278_vm7, %v2282_v60, %v2284_v14  ;;  %v2345_v37 = vrot.slane %v2202_v32, 6  ;;  %v6314_v31 = vpop.f32.mrb[54].mxu1  ;;  %v2399_v60 = vsel %vm2278_vm7, %v2396_v25, %v2398_v18 }
 0x3d0   : > { %v2318_v6 = vadd.f32 %v2285_v57, %v2256_v49  ;;  %v6786_v19 = vrot.slane %v6314_v31, 6  ;;  %v2205_v53 = vpop.f32.mrb[55].mxu1  ;;  %v2257_v49 = vadd.f32 %v6297_v16, %v2103_v15  ;;  %v2401_v15 = vsel %vm2278_vm7, %v2398_v18, %v2400_v7 }
 0x3d1   : > { %v2109_v10 = vpop.f32.mrb[60].mxu0  ;;  %v2346_v28 = vsel %vm2341_vm6, %v2343_v27, %v2345_v37  ;;  %v2347_v8 = vrot.slane %v2205_v53, 6  ;;  %v2468_v47 = vpack.c.bf16 %v2456_v22, %v2455_v1  ;;  %v2403_v1 = vsel %vm2278_vm7, %v2400_v7, %v2402_v20 }
 0x3d2   : > { %v2111_v2 = vpop.f32.mrb[61].mxu0  ;;  %v2382_v11 = vadd.f32 %v2346_v28, %v2317_v55  ;;  %v2352_v4 = vsel %vm2341_vm6, %v2349_v3, %v6786_v19  ;;  %v2408_v53 = vrot.slane %v5915_v43, 3 }
 0x3d3   : > { %v2286_v5 = vrot.slane %v2111_v2, 3  ;;  %v2113_v61 = vpop.f32.mrb[62].mxu0  ;;  %v2348_v46 = vsel %vm2341_vm6, %v2345_v37, %v2347_v8  ;;  %v2350_v27 = vsel %vm2341_vm6, %v2347_v8, %v2349_v3  ;;  %v2477_v28 = vshrl.u32 %v2468_v47, 16 }
 0x3d4   : > { %v2431_v32 = vmul.f32 %v2397_v54, %v2382_v11  ;;  %v2115_v55 = vpop.f32.mrb[63].mxu0  ;;  %v2383_v22 = vadd.f32 %v2348_v46, %v2318_v6  ;;  %v2258_v2 = vadd.f32 %v6297_v16, %v2109_v10  ;;  %v2480_v3 = vshll.u32 %v2468_v47, 16 }
 0x3d5   : > { %v2287_v57 = vsel %vm2278_vm7, %v2284_v14, %v2286_v5  ;;  %v2288_v25 = vrot.slane %v2115_v55, 3  ;;  %v2405_v54 = vsel %vm2278_vm7, %v2402_v20, %v2404_v9  ;;  %v6337_v11 = vsel %vm2278_vm7, %v2404_v9, %v2406_v26 }
 0x3d6   : > { %v2319_v37 = vadd.f32 %v2287_v57, %v2257_v49  ;;  %v2432_v19 = vmul.f32 %v2399_v60, %v2383_v22  ;;  %v2444_v6 = vmul.f32 0.1, %v2431_v32  ;;  %v2259_v43 = vadd.f32 %v6297_v16, %v2113_v61 }
 0x3d7   : > { %v2289_v8 = vsel %vm2278_vm7, %v2286_v5, %v2288_v25  ;;  %v6341_v47 = vsel %vm2278_vm7, %v2406_v26, %v2408_v53  ;;  %v6344_v18 = vrot.slane %v2477_v28, 2  ;;  %v6346_v57 = vrot.slane %v2480_v3, 3 }
 0x3d8   : > { %v2320_v14 = vadd.f32 %v2289_v8, %v2258_v2  ;;  %v2384_v46 = vadd.f32 %v2350_v27, %v2319_v37  ;;  %v2445_v55 = vmul.f32 0.1, %v2432_v19  ;;  %v4876_v41 = vpop.f32.mrb[56].mxu1  ;;  %v2457_v40 = vmax.f32 %v2431_v32, %v2444_v6 }
 0x3d9   : > { %v2119_v10 = vpop.f32.mrb[64].mxu0  ;;  %v2218_v49 = vpop.f32.mrb[57].mxu1  ;;  %v2357_v5 = vrot.slane %v4876_v41, 6 }
 0x3da   : > { %v2385_v20 = vadd.f32 %v2352_v4, %v2320_v14  ;;  %v2433_v7 = vmul.f32 %v2401_v15, %v2384_v46  ;;  %v2121_v9 = vpop.f32.mrb[65].mxu0  ;;  %v4877_v22 = vpop.f32.mrb[58].mxu1  ;;  %v2458_v27 = vmax.f32 %v2432_v19, %v2445_v55  ;;  %v2353_v61 = vrot.slane %v2218_v49, 6 }
 0x3db   : > { %v2290_v2 = vrot.slane %v2121_v9, 3  ;;  %v2123_v37 = vpop.f32.mrb[66].mxu0  ;;  %v2359_v8 = vrot.slane %v4877_v22, 6  ;;  %v2221_v42 = vpop.f32.mrb[59].mxu1  ;;  %v6841_v15 = vrot.slane %v6314_v31, 6  ;;  %v2260_v14 = vadd.f32 %v6297_v16, %v2119_v10 }
 0x3dc   : > { %v2434_v26 = vmul.f32 %v2403_v1, %v2385_v20  ;;  %v2446_v36 = vmul.f32 0.1, %v2433_v7  ;;  %v2125_v39 = vpop.f32.mrb[67].mxu0  ;;  %v2355_v60 = vrot.slane %v2221_v42, 6  ;;  %v2469_v6 = vpack.c.bf16 %v2458_v27, %v2457_v40 }
 0x3dd   : > { %v2291_v28 = vsel %vm2278_vm7, %v2288_v25, %v2290_v2  ;;  %v2292_v4 = vrot.slane %v2125_v39, 3  ;;  %v2354_v41 = vsel %vm2341_vm6, %v6841_v15, %v2353_v61  ;;  %v6353_v3 = vsel %vm2341_vm6, %v2357_v5, %v2359_v8 }
 0x3de   : > { %v2447_v19 = vmul.f32 0.1, %v2434_v26  ;;  %v2321_v46 = vadd.f32 %v2291_v28, %v2259_v43  ;;  %v2356_v32 = vsel %vm2341_vm6, %v2353_v61, %v2355_v60  ;;  %v2358_v42 = vsel %vm2341_vm6, %v2355_v60, %v2357_v5 }
 0x3df   : > { %v2293_v1 = vsel %vm2278_vm7, %v2290_v2, %v2292_v4  ;;  %v6842_v49 = vrot.slane %v5917_v44, 3  ;;  %v2459_v9 = vmax.f32 %v2433_v7, %v2446_v36  ;;  %v2483_v43 = vor.u32 %v6346_v57, %v6344_v18 }
 0x3e0   : > { %v2460_v39 = vmax.f32 %v2434_v26, %v2447_v19  ;;  %v2322_v25 = vadd.f32 %v2293_v1, %v2260_v14  ;;  %v2386_v31 = vadd.f32 %v2354_v41, %v2321_v46  ;;  %v4880_v55 = vpop.f32.mrb[60].mxu1  ;;  %v2485_v61 = vshrl.u32 %v2469_v6, 16 }
 0x3e1   : > { %v2411_v20 = vsel %vm2278_vm7, %v2408_v53, %v6842_v49  ;;  %v2129_v22 = vpop.f32.mrb[68].mxu0  ;;  %v2234_v10 = vpop.f32.mrb[61].mxu1  ;;  %v2488_v2 = vshll.u32 %v2469_v6, 16  ;;  %v2261_v60 = vadd.f32 %v6297_v16, %v2123_v37  ;;  %v2365_v1 = vrot.slane %v4880_v55, 6 }
 0x3e2   : > { %v2435_v40 = vmul.f32 %v2405_v54, %v2386_v31  ;;  %v2387_v5 = vadd.f32 %v2356_v32, %v2322_v25  ;;  %v2131_v27 = vpop.f32.mrb[69].mxu0  ;;  %v2361_v26 = vrot.slane %v2234_v10, 6  ;;  %v4881_v28 = vpop.f32.mrb[62].mxu1  ;;  %v2487_v19 = vrot.slane %v2485_v61, 2  ;;  %v5217_v25 = vld [vmem:[#allocation9 + $0x180] ss:$12 sps:$4 sm:$0xff]  }
 0x3e3   : > { %v2294_v15 = vrot.slane %v2131_v27, 3  ;;  %v2133_v41 = vpop.f32.mrb[70].mxu0  ;;  %v2490_v14 = vrot.slane %v2488_v2, 3  ;;  %v2470_v53 = vpack.c.bf16 %v2460_v39, %v2459_v9  ;;  %v2237_v36 = vpop.f32.mrb[63].mxu1  ;;  %v2262_v49 = vadd.f32 %v6297_v16, %v2129_v22 }
 0x3e4   : > { %v2448_v7 = vmul.f32 0.1, %v2435_v40  ;;  %v2436_v46 = vmul.f32 %v6337_v11, %v2387_v5  ;;  %v2135_v18 = vpop.f32.mrb[71].mxu0  ;;  %v2362_v57 = vsel %vm2341_vm6, %v2359_v8, %v2361_v26  ;;  %v2363_v55 = vrot.slane %v2237_v36, 6 }
 0x3e5   : > { %v2295_v37 = vsel %vm2278_vm7, %v2292_v4, %v2294_v15  ;;  %v2296_v54 = vrot.slane %v2135_v18, 3  ;;  %v2491_v32 = vor.u32 %v2490_v14, %v2487_v19  ;;  %v2494_v6 = vshrl.u32 %v2470_v53, 16 }
 0x3e6   : > { %v2449_v31 = vmul.f32 0.1, %v2436_v46  ;;  %v2323_v10 = vadd.f32 %v2295_v37, %v2261_v60  ;;  %v2497_v61 = vshll.u32 %v2470_v53, 16  ;;  %v2461_v27 = vmax.f32 %v2435_v40, %v2448_v7  ;;  %v6843_v7 = vld [vmem:[#allocation34_spill] sm:$0xff] }
 0x3e7   : > { %v2297_v39 = vsel %vm2278_vm7, %v2294_v15, %v2296_v54  ;;  %v2492_v9 = vsel %vm2475_vm11, %v2483_v43, %v2491_v32  ;;  %v2496_v11 = vrot.slane %v2494_v6, 2  ;;  %v2364_v19 = vsel %vm2341_vm6, %v2361_v26, %v2363_v55 }
 0x3e8   : > { %v2462_v2 = vmax.f32 %v2436_v46, %v2449_v31  ;;  %v2388_v5 = vadd.f32 %v2358_v42, %v2323_v10  ;;  %v2324_v8 = vadd.f32 %v2297_v39, %v2262_v49  ;;  %2759 = vmatmul.mubr.bf16.gmra.mrb[68].mxu1 %v2492_v9  ;;  %4899 = vmatmul.mubr.bf16.vlgmr.msra.gmra.mrb[80].mxu0 %v2492_v9  ;;  %v2499_v4 = vrot.slane %v2497_v61, 3 }
 0x3e9   : > { %v2139_v28 = vpop.f32.mrb[72].mxu0  ;;  %v2366_v22 = vsel %vm2341_vm6, %v2363_v55, %v2365_v1  ;;  %2768 = vmatprep.mubr.bf16.mxu1 %v6830_v24  ;;  %3365 = vmatpush1.bf16.msra.mxu0 %v5217_v25  ;;  %v2412_v42 = vrot.slane %v5919_v45, 3  ;;  %v2263_v53 = vadd.f32 %v6297_v16, %v2133_v41  ;;  %v2414_v46 = vrot.slane %v6843_v7, 3 }
 0x3ea   : > { %v2437_v60 = vmul.f32 %v6341_v47, %v2388_v5  ;;  %v2389_v43 = vadd.f32 %v6353_v3, %v2324_v8  ;;  %v2141_v15 = vpop.f32.mrb[73].mxu0  ;;  %v2500_v14 = vor.u32 %v2499_v4, %v2496_v11  ;;  %v2471_v26 = vpack.c.bf16 %v2462_v2, %v2461_v27 }
 0x3eb   : > { %v2298_v36 = vrot.slane %v2141_v15, 3  ;;  %v2143_v40 = vpop.f32.mrb[74].mxu0  ;;  %v2264_v41 = vadd.f32 %v6297_v16, %v2139_v28  ;;  %v6844_v39 = vrot.slane %v5917_v44, 3  ;;  %v2415_v27 = vsel %vm2278_vm7, %v2412_v42, %v2414_v46 }
 0x3ec   : > { %v2450_v18 = vmul.f32 0.1, %v2437_v60  ;;  %v2438_v1 = vmul.f32 %v2411_v20, %v2389_v43  ;;  %v2265_v37 = vadd.f32 %v6297_v16, %v2143_v40  ;;  %v2501_v6 = vsel %vm2475_vm11, %v2491_v32, %v2500_v14  ;;  %v2145_v47 = vpop.f32.mrb[75].mxu0 }
 0x3ed   : > { %v2299_v3 = vsel %vm2278_vm7, %v2296_v54, %v2298_v36  ;;  %4902 = vmatprep.mubr.bf16.mxu0 %v2501_v6  ;;  %v2300_v25 = vrot.slane %v2145_v47, 3  ;;  %v2503_v31 = vshrl.u32 %v2471_v26, 16  ;;  %v2506_v49 = vshll.u32 %v2471_v26, 16 }
 0x3ee   : > { %v2451_v10 = vmul.f32 0.1, %v2438_v1  ;;  %v2325_v61 = vadd.f32 %v2299_v3, %v2263_v53  ;;  %v2413_v9 = vsel %vm2278_vm7, %v6844_v39, %v2412_v42  ;;  %v2463_v2 = vmax.f32 %v2437_v60, %v2450_v18 }
 0x3ef   : > { %v2301_v20 = vsel %vm2278_vm7, %v2298_v36, %v2300_v25  ;;  %v2327_v11 = vadd.f32 %v2300_v25, %v2265_v37  ;;  %v2505_v55 = vrot.slane %v2503_v31, 2  ;;  %v2508_v32 = vrot.slane %v2506_v49, 3 }
 0x3f0   : > { %v2464_v5 = vmax.f32 %v2438_v1, %v2451_v10  ;;  %v2390_v54 = vadd.f32 %v2362_v57, %v2325_v61  ;;  %v2326_v8 = vadd.f32 %v2301_v20, %v2264_v41  ;;  %2769 = vmatmul.mubr.bf16.gmra.mrb[72].mxu1 %v2501_v6 }
 0x3f1   : > { %v2392_v4 = vadd.f32 %v2366_v22, %v2327_v11  ;;  %v2509_v43 = vor.u32 %v2508_v32, %v2505_v55  ;;  %2778 = vmatprep.mubr.bf16.mxu1 %v6830_v24  ;;  %v2149_v16 = vpop.f32.mrb[76].mxu0 }
 0x3f2   : > { %v2439_v28 = vmul.f32 %v2413_v9, %v2390_v54  ;;  %v2391_v15 = vadd.f32 %v2364_v19, %v2326_v8  ;;  %v2472_v53 = vpack.c.bf16 %v2464_v5, %v2463_v2  ;;  %v2150_v40 = vpop.f32.mrb[77].mxu0 }
 0x3f3   : > { %v2441_v36 = vmul.f32 %v2414_v46, %v2392_v4  ;;  %v2510_v26 = vsel %vm2475_vm11, %v2500_v14, %v2509_v43  ;;  %v2151_v37 = vpop.f32.mrb[78].mxu0  ;;  %v2753_v4 = vpop.f32.mrb[64].mxu1  ;;  %v5224_v40 = vld [vmem:[#allocation9 + $0x1b0] ss:$12 sps:$4 sm:$0xff]  }
 0x3f4   : > { %v2452_v60 = vmul.f32 0.1, %v2439_v28  ;;  %v2440_v18 = vmul.f32 %v2415_v27, %v2391_v15  ;;  %4903 = vmatmul.mubr.bf16.gmra.mrb[84].mxu0 %v2510_v26  ;;  %v2512_v57 = vshrl.u32 %v2472_v53, 16  ;;  %v2515_v1 = vshll.u32 %v2472_v53, 16  ;;  %v2152_v22 = vpop.f32.mrb[79].mxu0  ;;  %v2754_v27 = vpop.f32.mrb[65].mxu1 }
 0x3f5   : > { %v2454_v6 = vmul.f32 0.1, %v2441_v36  ;;  %v5222_v15 = vld [vmem:[#allocation9 + $0x19c] ss:$12 sps:$4 sm:$0xff]   ;;  %v5226_v53 = vld [vmem:[#allocation9 + $0x1b4] ss:$12 sps:$4 sm:$0xff]  }
 0x3f6   : > { %v2453_v42 = vmul.f32 0.1, %v2440_v18  ;;  %v2514_v47 = vrot.slane %v2512_v57, 2  ;;  %v2517_v3 = vrot.slane %v2515_v1, 3  ;;  %v2465_v31 = vmax.f32 %v2439_v28, %v2452_v60  ;;  %v5220_v28 = vld [vmem:[#allocation9 + $0x198] ss:$12 sps:$4 sm:$0xff]   ;;  %3366 = vmatprep.subr.bf16.mxu0 %v5222_v15 }
 0x3f7   : > { %v2467_v25 = vmax.f32 %v2441_v36, %v2454_v6  ;;  %3367 = vmatpush1.bf16.msra.mxu0 %v5220_v28  ;;  %v5229_v36 = vld [vmem:[#allocation9 + $0x1cc] ss:$12 sps:$4 sm:$0xff]   ;;  %v5227_v37 = vld [vmem:[#allocation9 + $0x1c8] ss:$12 sps:$4 sm:$0xff]   ;;  %v5230_v60 = vld [vmem:[#allocation9 + $0x1d0] ss:$12 sps:$4 sm:$0xff]  }
 0x3f8   : > { %v2466_v49 = vmax.f32 %v2440_v18, %v2453_v42  ;;  %2779 = vmatmul.mubr.bf16.gmra.mrb[76].mxu1 %v2510_v26  ;;  %v2518_v19 = vor.u32 %v2517_v3, %v2514_v47  ;;  %3368 = vmatprep.subr.bf16.mxu0 %v5226_v53  ;;  %v5223_v26 = vld [vmem:[#allocation9 + $0x1b8] ss:$12 sps:$4 sm:$0xff]   ;;  %v5231_v57 = vld [vmem:[#allocation9 + $0x1e0] ss:$12 sps:$4 sm:$0xff]   ;;  %v5236_v1 = vld [vmem:[#allocation9 + $0x1fc] ss:$12 sps:$4 sm:$0xff]  }
 0x3f9   : > { %v2474_v10 = vpack.c.bf16 %v2467_v25, %v2467_v25  ;;  %2788 = vmatprep.mubr.bf16.mxu1 %v6830_v24  ;;  %4918 = vmatprep.subr.bf16.mxu1 %v5223_v26  ;;  %v5233_v18 = vld [vmem:[#allocation9 + $0x1e4] ss:$12 sps:$4 sm:$0xff]   ;;  %v5237_v6 = vld [vmem:[#allocation9 + $0x1e8] ss:$12 sps:$4 sm:$0xff]   ;;  %v5243_v3 = vld [vmem:[#allocation9 + $0x22c] ss:$12 sps:$4 sm:$0xff]  }
 0x3fa   : > { %v2519_v14 = vsel %vm2475_vm11, %v2509_v43, %v2518_v19  ;;  %v2473_v46 = vpack.c.bf16 %v2466_v49, %v2465_v31  ;;  %v2755_v43 = vpop.f32.mrb[66].mxu1  ;;  %4919 = vmatpush3.bf16.msra.mxu1 %v5223_v26  ;;  %v5234_v22 = vld [vmem:[#allocation9 + $0x1f8] ss:$12 sps:$4 sm:$0xff]   ;;  %v5240_v42 = vld [vmem:[#allocation9 + $0x214] ss:$12 sps:$4 sm:$0xff]  }
 0x3fb   : > { %4906 = vmatprep.mubr.bf16.mxu0 %v2519_v14  ;;  %v2530_v41 = vshrl.u32 %v2474_v10, 16  ;;  %v2533_v61 = vshll.u32 %v2474_v10, 16  ;;  %v2757_v16 = vpop.f32.mrb[67].mxu1  ;;  %3369 = vmatpush1.bf16.msra.mxu0 %v5224_v40  ;;  %v5238_v47 = vld [vmem:[#allocation9 + $0x210] ss:$12 sps:$4 sm:$0xff]  }
 0x3fc   : > { %v2521_v39 = vshrl.u32 %v2473_v46, 16  ;;  %v2524_v9 = vshll.u32 %v2473_v46, 16  ;;  %3370 = vmatprep.subr.bf16.mxu0 %v5229_v36  ;;  %4920 = vmatprep.subr.bf16.mxu1 %v5230_v60  ;;  %v5244_v25 = vld [vmem:[#allocation9 + $0x200] ss:$12 sps:$4 sm:$0xff]   ;;  %v5241_v31 = vld [vmem:[#allocation9 + $0x228] ss:$12 sps:$4 sm:$0xff]  }
 0x3fd   : > { %v2532_v20 = vrot.slane %v2530_v41, 2  ;;  %v2535_v11 = vrot.slane %v2533_v61, 3  ;;  %v5245_v49 = vld [vmem:[#allocation9 + $0x218] ss:$12 sps:$4 sm:$0xff]   ;;  %v5247_v10 = vld [vmem:[#allocation11 + $0x188] ss:$12 sps:$4 sm:$0xff]  }
 0x3fe   : > { %v2523_v55 = vrot.slane %v2521_v39, 2  ;;  %v2526_v32 = vrot.slane %v2524_v9, 3  ;;  %4921 = vmatpush3.bf16.msra.mxu1 %v5230_v60  ;;  %v6845_v40 = vld [vmem:[#allocation39_spill] sm:$0xff] }
 0x3ff   : > { %v2536_v2 = vor.u32 %v2535_v11, %v2532_v20  ;;  %3371 = vmatpush1.bf16.msra.mxu0 %v5227_v37  ;;  %4922 = vmatprep.subr.bf16.mxu1 %v5237_v6  ;;  %v6846_v60 = vld [vmem:[#allocation35_spill] sm:$0xff] }
 0x400   : > { %2789 = vmatmul.mubr.bf16.gmra.mrb[80].mxu1 %v2519_v14  ;;  %v2527_v5 = vor.u32 %v2526_v32, %v2523_v55  ;;  %3372 = vmatprep.subr.bf16.mxu0 %v5233_v18  ;;  %v6406_v14 = vld [vmem:[%s6831_s10 + $0x1] ss:$0 sm:$0xff] }
 0x401   : > { %2798 = vmatprep.mubr.bf16.mxu1 %v6830_v24  ;;  %v2924_v9 = vadd.f32 %v6406_v14, %v2755_v43 }
 0x402   : > { %v2528_v54 = vsel %vm2475_vm11, %v2518_v19, %v2527_v5  ;;  %v2537_v8 = vsel %vm2475_vm11, %v2527_v5, %v2536_v2  ;;  %4923 = vmatpush3.bf16.msra.mxu1 %v5237_v6  ;;  %v5246_v19 = vld [vmem:[#allocation9 + $0x230] ss:$12 sps:$4 sm:$0xff]   ;;  %v6847_v6 = vld [vmem:[#allocation40_spill] sm:$0xff] }
 0x403   : > { %4907 = vmatmul.mubr.bf16.gmra.mrb[88].mxu0 %v2528_v54  ;;  %4924 = vmatprep.subr.bf16.mxu1 %v5244_v25 }
 0x404   : > { %4910 = vmatprep.mubr.bf16.mxu0 %v2537_v8  ;;  %3373 = vmatpush1.bf16.msra.mxu0 %v5231_v57 }
 0x405   : > { %3374 = vmatprep.subr.bf16.mxu0 %v5236_v1 }
 0x406   : > { %4925 = vmatpush3.bf16.msra.mxu1 %v5244_v25 }
 0x407   : > { %4926 = vmatprep.subr.bf16.mxu1 %v5245_v49 }
 0x408   : > { %2799 = vmatmul.mubr.bf16.gmra.mrb[84].mxu1 %v2528_v54  ;;  %3375 = vmatpush1.bf16.msra.mxu0 %v5234_v22 }
 0x409   : > { %2808 = vmatprep.mubr.bf16.mxu1 %v6830_v24  ;;  %3376 = vmatprep.subr.bf16.mxu0 %v5240_v42 }
 0x40a   : > { %4927 = vmatpush3.bf16.msra.mxu1 %v5245_v49 }
 0x40b   : > { %4911 = vmatmul.mubr.bf16.gmra.mrb[92].mxu0 %v6830_v24  ;;  %4928 = vmatprep.subr.bf16.mxu1 %v5246_v19 }
 0x40c   : > { %3396 = vmatprep.mubr.bf16.mxu0 %v6830_v24  ;;  %3377 = vmatpush1.bf16.msra.mxu0 %v5238_v47 }
 0x40d   : > { %3378 = vmatprep.subr.bf16.mxu0 %v5243_v3 }
 0x40e   : > { %4929 = vmatpush3.bf16.msra.mxu1 %v5246_v19  ;;  %v6848_v19 = vld [vmem:[#allocation36_spill] sm:$0xff] }
 0x410   : > { %2809 = vmatmul.mubr.bf16.gmra.mrb[88].mxu1 %v2537_v8  ;;  %3379 = vmatpush1.bf16.msra.mxu0 %v5241_v31 }
 0x411   : > { %2818 = vmatprep.mubr.bf16.mxu1 %v6830_v24  ;;  %4946 = vmatprep.subr.bf16.mxu0 %v5247_v10 }
 0x413   : > { %3397 = vmatmul.mubr.bf16.vlgmr.msra.gmra.mrb[96].mxu0 %v6830_v24 }
 0x414   : > { %3403 = vmatprep.mubr.bf16.mxu0 %v6830_v24  ;;  %4947 = vmatpush3.bf16.msra.mxu0 %v5247_v10 }
 0x418   : > { %2819 = vmatmul.mubr.bf16.gmra.mrb[92].mxu1 %v6830_v24 }
 0x419   : > { %4930 = vmatprep.mubr.bf16.mxu1 %v6830_v24 }
 0x4bb   : > { %v2760_v46 = vpop.f32.mrb[68].mxu1  ;;  %v4900_v41 = vpop.f32.mrb[80].mxu0 }
 0x4bc   : > { %v2762_v61 = vpop.f32.mrb[69].mxu1  ;;  %v2859_v39 = vpop.f32.mrb[81].mxu0  ;;  %v3011_v32 = vrot.slane %v4900_v41, 2  ;;  %v2925_v27 = vadd.f32 %v6406_v14, %v2760_v46 }
 0x4bd   : > { %v2949_v20 = vrot.slane %v2762_v61, 1  ;;  %v2764_v11 = vpop.f32.mrb[70].mxu1  ;;  %v4901_v55 = vpop.f32.mrb[82].mxu0 }
 0x4be   : > { %v3012_v2 = vrot.slane %v4901_v55, 2  ;;  %v2766_v5 = vpop.f32.mrb[71].mxu1  ;;  %v2861_v54 = vpop.f32.mrb[83].mxu0  ;;  %v2926_v22 = vadd.f32 %v6406_v14, %v2764_v11 }
 0x4bf   : > { %v2985_v8 = vadd.f32 %v2949_v20, %v2924_v9  ;;  %v2950_v4 = vrot.slane %v2766_v5, 1 }
 0x4c0   : > { %v3013_v16 = vsel %vm966_vm1, %v3011_v32, %v3012_v2 }
 0x4c1   : > { %v3049_v28 = vadd.f32 %v3011_v32, %v2985_v8  ;;  %v2951_v15 = vsel %vm903_vm5, %v2949_v20, %v2950_v4 }
 0x4c2   : > { %v2986_v53 = vadd.f32 %v2951_v15, %v2925_v27 }
 0x4c3   : > { %v3062_v36 = vadd.f32 %v3049_v28, %v6845_v40  ;;  %v2770_v43 = vpop.f32.mrb[72].mxu1 }
 0x4c4   : > { %v3050_v26 = vadd.f32 %v3013_v16, %v2986_v53  ;;  %v2772_v37 = vpop.f32.mrb[73].mxu1  ;;  %v2927_v46 = vadd.f32 %v6406_v14, %v2770_v43 }
 0x4c5   : > { %v3075_v18 = vmul.f32 %v3062_v36, %v6846_v60  ;;  %v2952_v57 = vrot.slane %v2772_v37, 1  ;;  %v2774_v1 = vpop.f32.mrb[74].mxu1 }
 0x4c6   : > { %v3063_v42 = vadd.f32 %v3050_v26, %v6847_v6  ;;  %v2776_v47 = vpop.f32.mrb[75].mxu1  ;;  %v2928_v60 = vadd.f32 %v6406_v14, %v2774_v1 }
 0x4c7   : > { %v2953_v3 = vsel %vm903_vm5, %v2950_v4, %v2952_v57  ;;  %v4904_v25 = vpop.f32.mrb[84].mxu0  ;;  %v2954_v31 = vrot.slane %v2776_v47, 1  ;;  %v3088_v49 = vmul.f32 0.1, %v3075_v18 }
 0x4c8   : > { %v3076_v10 = vmul.f32 %v3063_v42, %v6848_v19  ;;  %v2987_v41 = vadd.f32 %v2953_v3, %v2926_v22  ;;  %v2873_v61 = vpop.f32.mrb[85].mxu0  ;;  %v3018_v55 = vrot.slane %v4904_v25, 2 }
 0x4c9   : > { %v2955_v39 = vsel %vm903_vm5, %v2952_v57, %v2954_v31  ;;  %v3014_v9 = vrot.slane %v2873_v61, 2  ;;  %v6420_v20 = vpop.f32.mrb[86].mxu0  ;;  %v3101_v16 = vmax.f32 %v3075_v18, %v3088_v49 }
 0x4ca   : > { %v3089_v11 = vmul.f32 0.1, %v3076_v10  ;;  %v2988_v32 = vadd.f32 %v2955_v39, %v2927_v46  ;;  %v3020_v5 = vrot.slane %v6420_v20, 2  ;;  %v2876_v54 = vpop.f32.mrb[87].mxu0 }
 0x4cb   : > { %v3015_v8 = vsel %vm966_vm1, %v3012_v2, %v3014_v9  ;;  %v3016_v4 = vrot.slane %v2876_v54, 2  ;;  %v2780_v27 = vpop.f32.mrb[76].mxu1 }
 0x4cc   : > { %v3051_v28 = vadd.f32 %v3015_v8, %v2987_v41  ;;  %v3021_v15 = vsel %vm966_vm1, %v3018_v55, %v3020_v5  ;;  %v2782_v53 = vpop.f32.mrb[77].mxu1  ;;  %v3102_v40 = vmax.f32 %v3076_v10, %v3089_v11  ;;  %v2929_v25 = vadd.f32 %v6406_v14, %v2780_v27  ;;  %v6850_v27 = vld [vmem:[#allocation37_spill] sm:$0xff] }
 0x4cd   : > { %v3017_v36 = vsel %vm966_vm1, %v3014_v9, %v3016_v4  ;;  %v3019_v43 = vsel %vm966_vm1, %v3016_v4, %v3018_v55  ;;  %v2956_v26 = vrot.slane %v2782_v53, 1  ;;  %v2784_v37 = vpop.f32.mrb[78].mxu1  ;;  %v6849_v9 = vld [vmem:[#allocation41_spill] sm:$0xff] }
 0x4ce   : > { %v6431_v2 = vadd.f32 %v3051_v28, %v6164_v48  ;;  %v3052_v57 = vadd.f32 %v3017_v36, %v2988_v32  ;;  %v2786_v18 = vpop.f32.mrb[79].mxu1  ;;  %v3114_v22 = vpack.c.bf16 %v3102_v40, %v3101_v16  ;;  %v2930_v55 = vadd.f32 %v6406_v14, %v2784_v37  ;;  %v6851_v16 = vld [vmem:[#allocation42_spill] sm:$0xff] }
 0x4cf   : > { %v2957_v6 = vsel %vm903_vm5, %v2954_v31, %v2956_v26  ;;  %v2958_v42 = vrot.slane %v2786_v18, 1 }
 0x4d0   : > { %v3077_v47 = vmul.f32 %v6431_v2, %v5994_v13  ;;  %v6437_v3 = vadd.f32 %v3052_v57, %v6173_v21  ;;  %v2989_v49 = vadd.f32 %v2957_v6, %v2928_v60  ;;  %v3122_v19 = vshrl.u32 %v3114_v22, 16  ;;  %v6852_v57 = vld [vmem:[#allocation38_spill] sm:$0xff] }
 0x4d1   : > { %v2959_v1 = vsel %vm903_vm5, %v2956_v26, %v2958_v42  ;;  %v3125_v41 = vshll.u32 %v3114_v22, 16 }
 0x4d2   : > { %v3078_v48 = vmul.f32 %v6437_v3, %v6001_v33  ;;  %v3053_v10 = vadd.f32 %v3019_v43, %v2989_v49  ;;  %v2990_v46 = vadd.f32 %v2959_v1, %v2929_v25  ;;  %v3090_v31 = vmul.f32 0.1, %v3077_v47 }
 0x4d3   : > { %v2790_v61 = vpop.f32.mrb[80].mxu1  ;;  %v6447_v8 = vrot.slane %v3122_v19, 3  ;;  %v3127_v36 = vrot.slane %v3125_v41, 4 }
 0x4d4   : > { %v3091_v39 = vmul.f32 0.1, %v3078_v48  ;;  %v6444_v13 = vadd.f32 %v3053_v10, %v6849_v9  ;;  %v3054_v21 = vadd.f32 %v3021_v15, %v2990_v46  ;;  %v2792_v11 = vpop.f32.mrb[81].mxu1  ;;  %v3103_v43 = vmax.f32 %v3077_v47, %v3090_v31 }
 0x4d5   : > { %v2960_v32 = vrot.slane %v2792_v11, 1  ;;  %v2794_v54 = vpop.f32.mrb[82].mxu1  ;;  %v2931_v15 = vadd.f32 %v6406_v14, %v2790_v61 }
 0x4d6   : > { %v3104_v4 = vmax.f32 %v3078_v48, %v3091_v39  ;;  %v3079_v33 = vmul.f32 %v6444_v13, %v6850_v27  ;;  %v6452_v28 = vadd.f32 %v3054_v21, %v6851_v16  ;;  %v4908_v53 = vpop.f32.mrb[88].mxu0  ;;  %v2796_v40 = vpop.f32.mrb[83].mxu1 }
 0x4d7   : > { %v2961_v26 = vsel %vm903_vm5, %v2958_v42, %v2960_v32  ;;  %v2962_v37 = vrot.slane %v2796_v40, 1  ;;  %v2889_v60 = vpop.f32.mrb[89].mxu0  ;;  %v3026_v6 = vrot.slane %v4908_v53, 2 }
 0x4d8   : > { %v3080_v18 = vmul.f32 %v6452_v28, %v6852_v57  ;;  %v2991_v22 = vadd.f32 %v2961_v26, %v2930_v55  ;;  %v3022_v25 = vrot.slane %v2889_v60, 2  ;;  %v4909_v49 = vpop.f32.mrb[90].mxu0  ;;  %v3092_v1 = vmul.f32 0.1, %v3079_v33 }
 0x4d9   : > { %v2963_v19 = vsel %vm903_vm5, %v2960_v32, %v2962_v37  ;;  %v3028_v48 = vrot.slane %v4909_v49, 2  ;;  %v2892_v10 = vpop.f32.mrb[91].mxu0  ;;  %v3115_v46 = vpack.c.bf16 %v3104_v4, %v3103_v43  ;;  %v3128_v4 = vor.u32 %v3127_v36, %v6447_v8 }
 0x4da   : > { %v3093_v47 = vmul.f32 0.1, %v3080_v18  ;;  %v2992_v41 = vadd.f32 %v2963_v19, %v2931_v15  ;;  %v3023_v42 = vsel %vm966_vm1, %v3020_v5, %v3022_v25  ;;  %v3024_v31 = vrot.slane %v2892_v10, 2 }
 0x4db   : > { %v3055_v61 = vadd.f32 %v3023_v42, %v2991_v22  ;;  %v3029_v39 = vsel %vm966_vm1, %v3026_v6, %v3028_v48  ;;  %v2800_v9 = vpop.f32.mrb[84].mxu1  ;;  %v3130_v21 = vshrl.u32 %v3115_v46, 16  ;;  %v3133_v11 = vshll.u32 %v3115_v46, 16 }
 0x4dc   : > { %v3025_v55 = vsel %vm966_vm1, %v3022_v25, %v3024_v31  ;;  %v3027_v32 = vsel %vm966_vm1, %v3024_v31, %v3026_v6  ;;  %v2802_v27 = vpop.f32.mrb[85].mxu1  ;;  %v2932_v43 = vadd.f32 %v6406_v14, %v2794_v54  ;;  %v2933_v15 = vadd.f32 %v6406_v14, %v2800_v9 }
 0x4dd   : > { %v6467_v16 = vadd.f32 %v3055_v61, %v6229_v23  ;;  %v3056_v20 = vadd.f32 %v3025_v55, %v2992_v41  ;;  %v2964_v53 = vrot.slane %v2802_v27, 1  ;;  %v2804_v5 = vpop.f32.mrb[86].mxu1  ;;  %v3132_v40 = vrot.slane %v3130_v21, 3 }
 0x4de   : > { %v4912_v26 = vpop.f32.mrb[92].mxu0  ;;  %v2806_v60 = vpop.f32.mrb[87].mxu1  ;;  %v3135_v57 = vrot.slane %v3133_v11, 4  ;;  %v3106_v22 = vmax.f32 %v3080_v18, %v3093_v47  ;;  %v3105_v25 = vmax.f32 %v3079_v33, %v3092_v1  ;;  %v2934_v1 = vadd.f32 %v6406_v14, %v2804_v5 }
 0x4df   : > { %v3081_v6 = vmul.f32 %v6467_v16, %v6044_v62  ;;  %v6474_v8 = vadd.f32 %v3056_v20, %v6238_v56  ;;  %v2965_v23 = vsel %vm903_vm5, %v2962_v37, %v2964_v53  ;;  %v2905_v36 = vpop.f32.mrb[93].mxu0  ;;  %v2966_v19 = vrot.slane %v2806_v60, 1 }
 0x4e0   : > { %v2993_v49 = vadd.f32 %v2965_v23, %v2932_v43  ;;  %v3030_v10 = vrot.slane %v2905_v36, 2  ;;  %v3136_v54 = vor.u32 %v3135_v57, %v3132_v40  ;;  %v4913_v46 = vpop.f32.mrb[94].mxu0  ;;  %v3034_v18 = vrot.slane %v4912_v26, 2 }
 0x4e1   : > { %v3094_v41 = vmul.f32 0.1, %v3081_v6  ;;  %v3082_v42 = vmul.f32 %v6474_v8, %v6049_v63  ;;  %v2908_v47 = vpop.f32.mrb[95].mxu0  ;;  %v3116_v31 = vpack.c.bf16 %v3106_v22, %v3105_v25  ;;  %v2967_v56 = vsel %vm903_vm5, %v2964_v53, %v2966_v19 }
 0x4e2   : > { %v3057_v62 = vadd.f32 %v3027_v32, %v2993_v49  ;;  %v3031_v61 = vsel %vm966_vm1, %v3028_v48, %v3030_v10  ;;  %v3137_v37 = vsel %vm1112_vm2, %v3128_v4, %v3136_v54  ;;  %v2994_v9 = vadd.f32 %v2967_v56, %v2933_v15 }
 0x4e3   : > { %v3095_v33 = vmul.f32 0.1, %v3082_v42  ;;  %3404 = vmatmul.mubr.bf16.gmra.mrb[100].mxu0 %v3137_v37  ;;  %4931 = vmatmul.mubr.bf16.vlgmr.msra.gmra.mrb[96].mxu1 %v3137_v37  ;;  %v2810_v21 = vpop.f32.mrb[88].mxu1  ;;  %v3032_v11 = vrot.slane %v2908_v47, 2  ;;  %v3107_v55 = vmax.f32 %v3081_v6, %v3094_v41  ;;  %v3139_v32 = vshrl.u32 %v3116_v31, 16 }
 0x4e4   : > { %v6484_v63 = vadd.f32 %v3057_v62, %v6240_v30  ;;  %v2812_v27 = vpop.f32.mrb[89].mxu1  ;;  %3413 = vmatprep.mubr.bf16.mxu0 %v6830_v24  ;;  %v3142_v20 = vshll.u32 %v3116_v31, 16  ;;  %v3058_v53 = vadd.f32 %v3029_v39, %v2994_v9  ;;  %v2935_v36 = vadd.f32 %v6406_v14, %v2810_v21 }
 0x4e5   : > { %v3108_v48 = vmax.f32 %v3082_v42, %v3095_v33  ;;  %v2968_v4 = vrot.slane %v2812_v27, 1  ;;  %v2814_v40 = vpop.f32.mrb[90].mxu1  ;;  %v3033_v5 = vsel %vm966_vm1, %v3030_v10, %v3032_v11  ;;  %v3035_v26 = vsel %vm966_vm1, %v3032_v11, %v3034_v18 }
 0x4e6   : > { %v3083_v43 = vmul.f32 %v6484_v63, %v6062_v17  ;;  %v2936_v15 = vadd.f32 %v6406_v14, %v2814_v40  ;;  %v2816_v30 = vpop.f32.mrb[91].mxu1  ;;  %v3141_v60 = vrot.slane %v3139_v32, 3  ;;  %v6493_v57 = vadd.f32 %v3058_v53, %v6246_v59 }
 0x4e7   : > { %v2969_v22 = vsel %vm903_vm5, %v2966_v19, %v2968_v4  ;;  %v2970_v6 = vrot.slane %v2816_v30, 1  ;;  %v3144_v39 = vrot.slane %v3142_v20, 4  ;;  %v3117_v49 = vpack.c.bf16 %v3108_v48, %v3107_v55 }
 0x4e8   : > { %v3096_v23 = vmul.f32 0.1, %v3083_v43  ;;  %v2995_v25 = vadd.f32 %v2969_v22, %v2934_v1  ;;  %v3084_v17 = vmul.f32 %v6493_v57, %v6067_v58 }
 0x4e9   : > { %v2971_v10 = vsel %vm903_vm5, %v2968_v4, %v2970_v6  ;;  %v2997_v46 = vadd.f32 %v2970_v6, %v2936_v15  ;;  %v3145_v41 = vor.u32 %v3144_v39, %v3141_v60  ;;  %v3148_v59 = vshrl.u32 %v3117_v49, 16 }
 0x4ea   : > { %v3059_v42 = vadd.f32 %v3031_v61, %v2995_v25  ;;  %v2996_v18 = vadd.f32 %v2971_v10, %v2935_v36  ;;  %v3151_v47 = vshll.u32 %v3117_v49, 16  ;;  %v3097_v31 = vmul.f32 0.1, %v3084_v17 }
 0x4eb   : > { %v3061_v19 = vadd.f32 %v3035_v26, %v2997_v46  ;;  %v3146_v62 = vsel %vm1112_vm2, %v3136_v54, %v3145_v41  ;;  %v2820_v56 = vpop.f32.mrb[92].mxu1  ;;  %v3150_v58 = vrot.slane %v3148_v59, 3  ;;  %v3109_v61 = vmax.f32 %v3083_v43, %v3096_v23  ;;  %v3398_v59 = vpop.f32.mrb[96].mxu0 }
 0x4ec   : > { %v6502_v14 = vadd.f32 %v3059_v42, %v6261_v50  ;;  %v3060_v37 = vadd.f32 %v3033_v5, %v2996_v18  ;;  %3414 = vmatmul.mubr.bf16.gmra.mrb[104].mxu0 %v3146_v62  ;;  %4934 = vmatprep.mubr.bf16.mxu1 %v3146_v62  ;;  %v3153_v33 = vrot.slane %v3151_v47, 4  ;;  %v2821_v1 = vpop.f32.mrb[93].mxu1  ;;  %v3110_v21 = vmax.f32 %v3084_v17, %v3097_v31  ;;  %v3399_v47 = vpop.f32.mrb[97].mxu0  ;;  %v5248_v62 = vld [vmem:[#allocation11 + $0x180] ss:$12 sps:$4 sm:$0xff]  }
 0x4ed   : > { %v3074_v9 = vadd.f32 %v3061_v19, %v6270_v29  ;;  %3423 = vmatprep.mubr.bf16.mxu0 %v6830_v24  ;;  %v2822_v11 = vpop.f32.mrb[94].mxu1  ;;  %v3400_v31 = vpop.f32.mrb[98].mxu0  ;;  %v5250_v56 = vld [vmem:[#allocation11 + $0x184] ss:$12 sps:$4 sm:$0xff]  }
 0x4ee   : > { %v3085_v54 = vmul.f32 %v6502_v14, %v6083_v12  ;;  %v3073_v55 = vadd.f32 %v3060_v37, %v6266_v51  ;;  %v3154_v50 = vor.u32 %v3153_v33, %v3150_v58  ;;  %v2823_v27 = vpop.f32.mrb[95].mxu1  ;;  %v3118_v20 = vpack.c.bf16 %v3110_v21, %v3109_v61  ;;  %v3402_v19 = vpop.f32.mrb[99].mxu0  ;;  %4034 = vmatprep.subr.bf16.mxu1 %v5250_v56  ;;  %v5253_v37 = vld [vmem:[#allocation11 + $0x19c] ss:$12 sps:$4 sm:$0xff]   ;;  %v5251_v58 = vld [vmem:[#allocation11 + $0x198] ss:$12 sps:$4 sm:$0xff]  }
 0x4ef   : > { %v3087_v32 = vmul.f32 %v3074_v9, %v6078_v52  ;;  %4035 = vmatpush1.bf16.msra.mxu1 %v5248_v62  ;;  %v5257_v33 = vld [vmem:[#allocation11 + $0x1b4] ss:$12 sps:$4 sm:$0xff]   ;;  %v5255_v1 = vld [vmem:[#allocation11 + $0x1b0] ss:$12 sps:$4 sm:$0xff]   ;;  %v5260_v61 = vld [vmem:[#allocation11 + $0x1cc] ss:$12 sps:$4 sm:$0xff]  }
 0x4f0   : > { %v3098_v48 = vmul.f32 0.1, %v3085_v54  ;;  %v3086_v53 = vmul.f32 %v3073_v55, %v6090_v0  ;;  %v3155_v29 = vsel %vm1112_vm2, %v3145_v41, %v3154_v50  ;;  %v3157_v40 = vshrl.u32 %v3118_v20, 16  ;;  %4036 = vmatprep.subr.bf16.mxu1 %v5253_v37  ;;  %v5254_v9 = vld [vmem:[#allocation11 + $0x1a0] ss:$12 sps:$4 sm:$0xff]  }
 0x4f1   : > { %v3100_v4 = vmul.f32 0.1, %v3087_v32  ;;  %4935 = vmatmul.mubr.bf16.gmra.mrb[100].mxu1 %v3155_v29  ;;  %v3160_v5 = vshll.u32 %v3118_v20, 16  ;;  %4948 = vmatprep.subr.bf16.mxu0 %v5254_v9  ;;  %v5258_v21 = vld [vmem:[#allocation11 + $0x1c8] ss:$12 sps:$4 sm:$0xff]   ;;  %v3709_v19 = vrot.slane %v5894_v35, 5 }
 0x4f2   : > { %v3099_v43 = vmul.f32 0.1, %v3086_v53  ;;  %v3159_v26 = vrot.slane %v3157_v40, 3  ;;  %v3111_v51 = vmax.f32 %v3085_v54, %v3098_v48  ;;  %4949 = vmatpush3.bf16.msra.mxu0 %v5254_v9  ;;  %v5261_v11 = vld [vmem:[#allocation11 + $0x1b8] ss:$12 sps:$4 sm:$0xff]   ;;  %v3708_v56 = vrot.slane %v5890_v34, 5 }
 0x4f3   : > { %v3113_v15 = vmax.f32 %v3087_v32, %v3100_v4  ;;  %v3162_v12 = vrot.slane %v3160_v5, 4  ;;  %4037 = vmatpush1.bf16.msra.mxu1 %v5251_v58  ;;  %v5264_v54 = vld [vmem:[#allocation11 + $0x1e4] ss:$12 sps:$4 sm:$0xff]   ;;  %4950 = vmatprep.subr.bf16.mxu0 %v5261_v11  ;;  %v5262_v55 = vld [vmem:[#allocation11 + $0x1e0] ss:$12 sps:$4 sm:$0xff]   ;;  %v3713_v58 = vrot.slane %v5901_v38, 5 }
 0x4f4   : > { %3424 = vmatmul.mubr.bf16.gmra.mrb[108].mxu0 %v3155_v29  ;;  %v3112_v30 = vmax.f32 %v3086_v53, %v3099_v43  ;;  %4038 = vmatprep.subr.bf16.mxu1 %v5257_v33  ;;  %v5268_v27 = vld [vmem:[#allocation11 + $0x1d0] ss:$12 sps:$4 sm:$0xff]   ;;  %v5265_v32 = vld [vmem:[#allocation11 + $0x1f8] ss:$12 sps:$4 sm:$0xff]   ;;  %v5271_v20 = vld [vmem:[#allocation11 + $0x214] ss:$12 sps:$4 sm:$0xff]   ;;  %v3710_v34 = vsel %vm3594_vm0, %v3708_v56, %v3709_v19 }
 0x4f5   : > { %3433 = vmatprep.mubr.bf16.mxu0 %v6830_v24  ;;  %v3163_v52 = vor.u32 %v3162_v12, %v3159_v26  ;;  %v3120_v60 = vpack.c.bf16 %v3113_v15, %v3113_v15  ;;  %v5269_v48 = vld [vmem:[#allocation11 + $0x210] ss:$12 sps:$4 sm:$0xff]   ;;  %v5272_v53 = vld [vmem:[#allocation11 + $0x1e8] ss:$12 sps:$4 sm:$0xff]   ;;  %v5275_v29 = vld [vmem:[#allocation11 + $0x22c] ss:$12 sps:$4 sm:$0xff]  }
 0x4f6   : > { %v3119_v22 = vpack.c.bf16 %v3112_v30, %v3111_v51  ;;  %4951 = vmatpush3.bf16.msra.mxu0 %v5261_v11  ;;  %v5276_v4 = vld [vmem:[#allocation11 + $0x200] ss:$12 sps:$4 sm:$0xff]   ;;  %v5273_v40 = vld [vmem:[#allocation11 + $0x228] ss:$12 sps:$4 sm:$0xff]   ;;  %v5277_v5 = vld [vmem:[#allocation11 + $0x218] ss:$12 sps:$4 sm:$0xff]  }
 0x4f7   : > { %v3164_v0 = vsel %vm1112_vm2, %v3154_v50, %v3163_v52  ;;  %v3175_v6 = vshrl.u32 %v3120_v60, 16  ;;  %v3178_v39 = vshll.u32 %v3120_v60, 16  ;;  %4039 = vmatpush1.bf16.msra.mxu1 %v5255_v1  ;;  %v5267_v50 = vld [vmem:[#allocation11 + $0x1fc] ss:$12 sps:$4 sm:$0xff]   ;;  %4952 = vmatprep.subr.bf16.mxu0 %v5268_v27  ;;  %v6528_v15 = vld [vmem:[%s6758_s3 + $0x2] ss:$0 sm:$0xff] }
 0x4f8   : > { %4938 = vmatprep.mubr.bf16.mxu1 %v3164_v0  ;;  %v3166_v23 = vshrl.u32 %v3119_v22, 16  ;;  %v3169_v36 = vshll.u32 %v3119_v22, 16  ;;  %4040 = vmatprep.subr.bf16.mxu1 %v5260_v61  ;;  %v5278_v43 = vld [vmem:[#allocation11 + $0x230] ss:$12 sps:$4 sm:$0xff]   ;;  %v3569_v26 = vadd.f32 %v6528_v15, %v3400_v31  ;;  %v6853_v33 = vld [vmem:[#allocation29_spill] sm:$0xff] }
 0x4f9   : > { %v3177_v25 = vrot.slane %v3175_v6, 3  ;;  %v3180_v49 = vrot.slane %v3178_v39, 4  ;;  %v3715_v1 = vrot.slane %v6853_v33, 5 }
 0x4fa   : > { %v3168_v17 = vrot.slane %v3166_v23, 3  ;;  %v3171_v10 = vrot.slane %v3169_v36, 4  ;;  %4953 = vmatpush3.bf16.msra.mxu0 %v5268_v27  ;;  %v6855_v27 = vld [vmem:[#allocation30_spill] sm:$0xff] }
 0x4fb   : > { %v3181_v46 = vor.u32 %v3180_v49, %v3177_v25  ;;  %4041 = vmatpush1.bf16.msra.mxu1 %v5258_v21  ;;  %4954 = vmatprep.subr.bf16.mxu0 %v5272_v53  ;;  %v6854_v21 = vld [vmem:[#allocation28_spill] sm:$0xff]  ;;  %v3717_v35 = vrot.slane %v6855_v27, 5 }
 0x4fc   : > { %3434 = vmatmul.mubr.bf16.gmra.mrb[112].mxu0 %v3164_v0  ;;  %v3172_v41 = vor.u32 %v3171_v10, %v3168_v17  ;;  %4042 = vmatprep.subr.bf16.mxu1 %v5264_v54  ;;  %v3711_v11 = vrot.slane %v6854_v21, 5  ;;  %v3725_v21 = vrot.slane %v5917_v44, 5 }
 0x4fd   : > { %3443 = vmatprep.mubr.bf16.mxu0 %v6830_v24 }
 0x4fe   : > { %v3173_v42 = vsel %vm1112_vm2, %v3163_v52, %v3172_v41  ;;  %v3182_v18 = vsel %vm1112_vm2, %v3172_v41, %v3181_v46  ;;  %4955 = vmatpush3.bf16.msra.mxu0 %v5272_v53  ;;  %v6857_v53 = vld [vmem:[#allocation33_spill] sm:$0xff] }
 0x4ff   : > { %4939 = vmatmul.mubr.bf16.gmra.mrb[104].mxu1 %v3173_v42  ;;  %4956 = vmatprep.subr.bf16.mxu0 %v5276_v4 }
 0x500   : > { %4942 = vmatprep.mubr.bf16.mxu1 %v3182_v18  ;;  %4043 = vmatpush1.bf16.msra.mxu1 %v5262_v55 }
 0x501   : > { %4044 = vmatprep.subr.bf16.mxu1 %v5267_v50 }
 0x502   : > { %4957 = vmatpush3.bf16.msra.mxu0 %v5276_v4 }
 0x503   : > { %4958 = vmatprep.subr.bf16.mxu0 %v5277_v5 }
 0x504   : > { %3444 = vmatmul.mubr.bf16.gmra.mrb[116].mxu0 %v3173_v42  ;;  %4045 = vmatpush1.bf16.msra.mxu1 %v5265_v32 }
 0x505   : > { %3453 = vmatprep.mubr.bf16.mxu0 %v6830_v24  ;;  %4046 = vmatprep.subr.bf16.mxu1 %v5271_v20 }
 0x506   : > { %4959 = vmatpush3.bf16.msra.mxu0 %v5277_v5 }
 0x507   : > { %4943 = vmatmul.mubr.bf16.gmra.mrb[108].mxu1 %v6830_v24  ;;  %4960 = vmatprep.subr.bf16.mxu0 %v5278_v43 }
 0x508   : > { %4066 = vmatprep.mubr.bf16.mxu1 %v6830_v24  ;;  %4047 = vmatpush1.bf16.msra.mxu1 %v5269_v48  ;;  %v6856_v48 = vld [vmem:[#allocation32_spill] sm:$0xff] }
 0x509   : > { %4048 = vmatprep.subr.bf16.mxu1 %v5275_v29  ;;  %v3721_v38 = vrot.slane %v6856_v48, 5  ;;  %v3723_v29 = vrot.slane %v6857_v53, 5 }
 0x50a   : > { %4961 = vmatpush3.bf16.msra.mxu0 %v5278_v43 }
 0x50c   : > { %3454 = vmatmul.mubr.bf16.gmra.mrb[120].mxu0 %v3182_v18  ;;  %4049 = vmatpush1.bf16.msra.mxu1 %v5273_v40 }
 0x50d   : > { %3463 = vmatprep.mubr.bf16.mxu0 %v6830_v24 }
 0x50f   : > { %4067 = vmatmul.mubr.bf16.vlgmr.msra.gmra.mrb[112].mxu1 %v6830_v24 }
 0x510   : > { %4072 = vmatprep.mubr.bf16.mxu1 %v6830_v24 }
 0x514   : > { %3464 = vmatmul.mubr.bf16.gmra.mrb[124].mxu0 %v6830_v24 }
 0x515   : > { %4962 = vmatprep.mubr.bf16.mxu0 %v6830_v24 }
 0x5b6   : > { %v3405_v12 = vpop.f32.mrb[100].mxu0  ;;  %v4932_v51 = vpop.f32.mrb[96].mxu1 }
 0x5b7   : > { %v3407_v30 = vpop.f32.mrb[101].mxu0  ;;  %v3504_v52 = vpop.f32.mrb[97].mxu1  ;;  %v3657_v6 = vrot.slane %v4932_v51, 2  ;;  %v3570_v17 = vadd.f32 %v6528_v15, %v3405_v12 }
 0x5b8   : > { %v3595_v60 = vrot.slane %v3407_v30, 5  ;;  %v3409_v22 = vpop.f32.mrb[102].mxu0  ;;  %v4933_v0 = vpop.f32.mrb[98].mxu1 }
 0x5b9   : > { %v3658_v39 = vrot.slane %v4933_v0, 2  ;;  %v3411_v23 = vpop.f32.mrb[103].mxu0  ;;  %v3506_v36 = vpop.f32.mrb[99].mxu1  ;;  %v3571_v62 = vadd.f32 %v6528_v15, %v3409_v22  ;;  %v3714_v22 = vsel %vm3594_vm0, %v3711_v11, %v3713_v58 }
 0x5ba   : > { %v3631_v25 = vadd.f32 %v3595_v60, %v3569_v26  ;;  %v3596_v49 = vrot.slane %v3411_v23, 5  ;;  %v3716_v26 = vsel %vm3594_vm0, %v3713_v58, %v3715_v1  ;;  %v6555_v36 = vsel %vm3594_vm0, %v3715_v1, %v3717_v35 }
 0x5bb   : > { %v3659_v10 = vsel %vm966_vm1, %v3657_v6, %v3658_v39 }
 0x5bc   : > { %v3695_v46 = vadd.f32 %v3659_v10, %v3631_v25  ;;  %v3597_v41 = vsel %vm3594_vm0, %v3595_v60, %v3596_v49  ;;  %v3712_v60 = vsel %vm3594_vm0, %v3709_v19, %v3711_v11  ;;  %v6858_v25 = vld [vmem:[#allocation31_spill] sm:$0xff] }
 0x5bd   : > { %v3632_v42 = vadd.f32 %v3597_v41, %v3570_v17 }
 0x5be   : > { %v3744_v4 = vmul.f32 %v3708_v56, %v3695_v46 }
 0x5bf   : > { %v3415_v18 = vpop.f32.mrb[104].mxu0 }
 0x5c0   : > { %v3417_v59 = vpop.f32.mrb[105].mxu0  ;;  %v3572_v54 = vadd.f32 %v6528_v15, %v3415_v18  ;;  %v6562_v18 = vsel %vm3594_vm0, %v3721_v38, %v3723_v29 }
 0x5c1   : > { %v3598_v47 = vrot.slane %v3417_v59, 5  ;;  %v3419_v31 = vpop.f32.mrb[106].mxu0  ;;  %v3757_v59 = vmul.f32 0.1, %v3744_v4 }
 0x5c2   : > { %v3421_v37 = vpop.f32.mrb[107].mxu0 }
 0x5c3   : > { %v3599_v9 = vsel %vm3594_vm0, %v3596_v49, %v3598_v47  ;;  %v3600_v61 = vrot.slane %v3421_v37, 5  ;;  %v3719_v49 = vrot.slane %v6858_v25, 5 }
 0x5c4   : > { %v3633_v55 = vadd.f32 %v3599_v9, %v3571_v62  ;;  %v4936_v50 = vpop.f32.mrb[100].mxu1 }
 0x5c5   : > { %v3601_v32 = vsel %vm3594_vm0, %v3598_v47, %v3600_v61  ;;  %v3518_v20 = vpop.f32.mrb[101].mxu1  ;;  %v3664_v51 = vrot.slane %v4936_v50, 2  ;;  %v3573_v47 = vadd.f32 %v6528_v15, %v3419_v31  ;;  %v3727_v50 = vrot.slane %v5919_v45, 5 }
 0x5c6   : > { %v3634_v40 = vadd.f32 %v3601_v32, %v3572_v54  ;;  %v3660_v5 = vrot.slane %v3518_v20, 2  ;;  %v6547_v43 = vpop.f32.mrb[102].mxu1 }
 0x5c7   : > { %v3425_v12 = vpop.f32.mrb[108].mxu0  ;;  %v3666_v30 = vrot.slane %v6547_v43, 2  ;;  %v3521_v52 = vpop.f32.mrb[103].mxu1 }
 0x5c8   : > { %v3427_v0 = vpop.f32.mrb[109].mxu0  ;;  %v3661_v6 = vsel %vm966_vm1, %v3658_v39, %v3660_v5  ;;  %v3662_v23 = vrot.slane %v3521_v52, 2  ;;  %v3574_v33 = vadd.f32 %v6528_v15, %v3425_v12  ;;  %v3729_v52 = vrot.slane %v6843_v7, 5 }
 0x5c9   : > { %v3602_v17 = vrot.slane %v3427_v0, 5  ;;  %v3696_v10 = vadd.f32 %v3661_v6, %v3632_v42  ;;  %v3429_v46 = vpop.f32.mrb[110].mxu0  ;;  %v3667_v41 = vsel %vm966_vm1, %v3664_v51, %v3666_v30 }
 0x5ca   : > { %v3431_v39 = vpop.f32.mrb[111].mxu0  ;;  %v3663_v19 = vsel %vm966_vm1, %v3660_v5, %v3662_v23  ;;  %v3665_v62 = vsel %vm966_vm1, %v3662_v23, %v3664_v51  ;;  %v6581_v51 = vsel %vm3594_vm0, %v3723_v29, %v3725_v21 }
 0x5cb   : > { %v3603_v56 = vsel %vm3594_vm0, %v3600_v61, %v3602_v17  ;;  %v3745_v37 = vmul.f32 %v3710_v34, %v3696_v10  ;;  %v3604_v42 = vrot.slane %v3431_v39, 5  ;;  %v3697_v58 = vadd.f32 %v3663_v19, %v3633_v55 }
 0x5cc   : > { %v3635_v1 = vadd.f32 %v3603_v56, %v3573_v47  ;;  %v3698_v9 = vadd.f32 %v3665_v62, %v3634_v40  ;;  %v6573_v61 = vsel %vm3594_vm0, %v3717_v35, %v3719_v49  ;;  %v3770_v34 = vmax.f32 %v3744_v4, %v3757_v59 }
 0x5cd   : > { %v3758_v11 = vmul.f32 0.1, %v3745_v37  ;;  %v3605_v54 = vsel %vm3594_vm0, %v3602_v17, %v3604_v42  ;;  %v3746_v31 = vmul.f32 %v3712_v60, %v3697_v58  ;;  %v6576_v40 = vsel %vm3594_vm0, %v3719_v49, %v3721_v38 }
 0x5ce   : > { %v3699_v27 = vadd.f32 %v3667_v41, %v3635_v1  ;;  %v3636_v32 = vadd.f32 %v3605_v54, %v3574_v33  ;;  %v3747_v20 = vmul.f32 %v3714_v22, %v3698_v9  ;;  %v6587_v4 = vsel %vm3594_vm0, %v3725_v21, %v3727_v50 }
 0x5cf   : > { %v3771_v55 = vmax.f32 %v3745_v37, %v3758_v11  ;;  %v3759_v48 = vmul.f32 0.1, %v3746_v31  ;;  %v3435_v53 = vpop.f32.mrb[112].mxu0  ;;  %v3575_v38 = vadd.f32 %v6528_v15, %v3429_v46 }
 0x5d0   : > { %v6578_v44 = vmul.f32 %v3716_v26, %v3699_v27  ;;  %v3760_v5 = vmul.f32 0.1, %v3747_v20  ;;  %v3437_v12 = vpop.f32.mrb[113].mxu0  ;;  %v3576_v29 = vadd.f32 %v6528_v15, %v3435_v53 }
 0x5d1   : > { %v3772_v60 = vmax.f32 %v3746_v31, %v3759_v48  ;;  %v3606_v22 = vrot.slane %v3437_v12, 5  ;;  %v3439_v35 = vpop.f32.mrb[114].mxu0  ;;  %v3783_v0 = vpack.c.bf16 %v3771_v55, %v3770_v34 }
 0x5d2   : > { %v6591_v26 = vmul.f32 0.1, %v6578_v44  ;;  %v3773_v6 = vmax.f32 %v3747_v20, %v3760_v5  ;;  %v3441_v23 = vpop.f32.mrb[115].mxu0  ;;  %v4940_v25 = vpop.f32.mrb[104].mxu1  ;;  %v3577_v17 = vadd.f32 %v6528_v15, %v3439_v35 }
 0x5d3   : > { %v3607_v49 = vsel %vm3594_vm0, %v3604_v42, %v3606_v22  ;;  %v3608_v10 = vrot.slane %v3441_v23, 5  ;;  %v3534_v41 = vpop.f32.mrb[105].mxu1  ;;  %v3792_v59 = vshrl.u32 %v3783_v0, 16  ;;  %v3672_v39 = vrot.slane %v4940_v25, 2 }
 0x5d4   : > { %v3637_v47 = vadd.f32 %v3607_v49, %v3575_v38  ;;  %v3668_v19 = vrot.slane %v3534_v41, 2  ;;  %v4941_v46 = vpop.f32.mrb[106].mxu1  ;;  %v3784_v62 = vpack.c.bf16 %v3773_v6, %v3772_v60  ;;  %v3795_v1 = vshll.u32 %v3783_v0, 16 }
 0x5d5   : > { %v3609_v56 = vsel %vm3594_vm0, %v3606_v22, %v3608_v10  ;;  %v3674_v37 = vrot.slane %v4941_v46, 2  ;;  %v3537_v58 = vpop.f32.mrb[107].mxu1  ;;  %v3794_v33 = vrot.slane %v3792_v59, 1  ;;  %v3774_v55 = vmax.f32 %v6578_v44, %v6591_v26 }
 0x5d6   : > { %v3638_v9 = vadd.f32 %v3609_v56, %v3576_v29  ;;  %v3669_v42 = vsel %vm966_vm1, %v3666_v30, %v3668_v19  ;;  %v3670_v21 = vrot.slane %v3537_v58, 2  ;;  %v3800_v11 = vshrl.u32 %v3784_v62, 16 }
 0x5d7   : > { %v3445_v54 = vpop.f32.mrb[116].mxu0  ;;  %v3700_v31 = vadd.f32 %v3669_v42, %v3636_v32  ;;  %v3675_v27 = vsel %vm966_vm1, %v3672_v39, %v3674_v37  ;;  %v3797_v20 = vrot.slane %v3795_v1, 2  ;;  %v3803_v34 = vshll.u32 %v3784_v62, 16 }
 0x5d8   : > { %v3447_v48 = vpop.f32.mrb[117].mxu0  ;;  %v3671_v53 = vsel %vm966_vm1, %v3668_v19, %v3670_v21  ;;  %v3673_v5 = vsel %vm966_vm1, %v3670_v21, %v3672_v39  ;;  %v3802_v12 = vrot.slane %v3800_v11, 1  ;;  %v3578_v32 = vadd.f32 %v6528_v15, %v3445_v54 }
 0x5d9   : > { %v3610_v43 = vrot.slane %v3447_v48, 5  ;;  %v3749_v30 = vmul.f32 %v6555_v36, %v3700_v31  ;;  %v3449_v60 = vpop.f32.mrb[118].mxu0  ;;  %v3701_v22 = vadd.f32 %v3671_v53, %v3637_v47  ;;  %v3702_v35 = vadd.f32 %v3673_v5, %v3638_v9 }
 0x5da   : > { %v3579_v0 = vadd.f32 %v6528_v15, %v3449_v60  ;;  %v3451_v38 = vpop.f32.mrb[119].mxu0  ;;  %v4944_v6 = vpop.f32.mrb[108].mxu1  ;;  %v3798_v29 = vor.u32 %v3797_v20, %v3794_v33  ;;  %v3805_v44 = vrot.slane %v3803_v34, 2 }
 0x5db   : > { %v3611_v26 = vsel %vm3594_vm0, %v3608_v10, %v3610_v43  ;;  %v3762_v23 = vmul.f32 0.1, %v3749_v30  ;;  %v3612_v25 = vrot.slane %v3451_v38, 5  ;;  %v3750_v49 = vmul.f32 %v6573_v61, %v3701_v22  ;;  %v3550_v41 = vpop.f32.mrb[109].mxu1 }
 0x5dc   : > { %v3639_v59 = vadd.f32 %v3611_v26, %v3577_v17  ;;  %v3751_v36 = vmul.f32 %v6576_v40, %v3702_v35  ;;  %v3680_v47 = vrot.slane %v4944_v6, 2  ;;  %v3806_v39 = vor.u32 %v3805_v44, %v3802_v12  ;;  %v4945_v19 = vpop.f32.mrb[110].mxu1 }
 0x5dd   : > { %v3775_v46 = vmax.f32 %v3749_v30, %v3762_v23  ;;  %v3613_v62 = vsel %vm3594_vm0, %v3610_v43, %v3612_v25  ;;  %v3763_v56 = vmul.f32 0.1, %v3750_v49  ;;  %v3676_v58 = vrot.slane %v3550_v41, 2  ;;  %v3553_v33 = vpop.f32.mrb[111].mxu1 }
 0x5de   : > { %v3703_v1 = vadd.f32 %v3675_v27, %v3639_v59  ;;  %v3640_v9 = vadd.f32 %v3613_v62, %v3578_v32  ;;  %v3764_v10 = vmul.f32 0.1, %v3751_v36  ;;  %v3807_v42 = vsel %vm3790_vm9, %v3798_v29, %v3806_v39 }
 0x5df   : > { %v3776_v21 = vmax.f32 %v3750_v49, %v3763_v56  ;;  %v3455_v61 = vpop.f32.mrb[120].mxu0  ;;  %4073 = vmatmul.mubr.bf16.gmra.mrb[116].mxu1 %v3807_v42  ;;  %4963 = vmatmul.mubr.bf16.vlgmr.msra.gmra.mrb[128].mxu0 %v3807_v42  ;;  %v3677_v40 = vsel %vm966_vm1, %v3674_v37, %v3676_v58  ;;  %v3678_v17 = vrot.slane %v3553_v33, 2  ;;  %v3785_v11 = vpack.c.bf16 %v3775_v46, %v3774_v55 }
 0x5e0   : > { %v3752_v54 = vmul.f32 %v6562_v18, %v3703_v1  ;;  %v3777_v31 = vmax.f32 %v3751_v36, %v3764_v10  ;;  %v3580_v20 = vadd.f32 %v6528_v15, %v3455_v61  ;;  %v3457_v34 = vpop.f32.mrb[121].mxu0  ;;  %v3704_v48 = vadd.f32 %v3677_v40, %v3640_v9  ;;  %4080 = vmatprep.mubr.bf16.mxu1 %v6830_v24 }
 0x5e1   : > { %v3614_v27 = vrot.slane %v3457_v34, 5  ;;  %v3459_v53 = vpop.f32.mrb[122].mxu0  ;;  %v3679_v5 = vsel %vm966_vm1, %v3676_v58, %v3678_v17  ;;  %v3681_v12 = vsel %vm966_vm1, %v3678_v17, %v3680_v47  ;;  %v3809_v43 = vshrl.u32 %v3785_v11, 16 }
 0x5e2   : > { %v3765_v30 = vmul.f32 0.1, %v3752_v54  ;;  %v3753_v37 = vmul.f32 %v6581_v51, %v3704_v48  ;;  %v3581_v55 = vadd.f32 %v6528_v15, %v3459_v53  ;;  %v3461_v18 = vpop.f32.mrb[123].mxu0  ;;  %v3812_v60 = vshll.u32 %v3785_v11, 16 }
 0x5e3   : > { %v3615_v22 = vsel %vm3594_vm0, %v3612_v25, %v3614_v27  ;;  %v3616_v35 = vrot.slane %v3461_v18, 5  ;;  %v3811_v32 = vrot.slane %v3809_v43, 1  ;;  %v3786_v38 = vpack.c.bf16 %v3777_v31, %v3776_v21 }
 0x5e4   : > { %v3778_v6 = vmax.f32 %v3752_v54, %v3765_v30  ;;  %v3641_v29 = vadd.f32 %v3615_v22, %v3579_v0  ;;  %v3766_v44 = vmul.f32 0.1, %v3753_v37  ;;  %v3814_v26 = vrot.slane %v3812_v60, 2 }
 0x5e5   : > { %v3617_v23 = vsel %vm3594_vm0, %v3614_v27, %v3616_v35  ;;  %v3643_v49 = vadd.f32 %v3616_v35, %v3581_v55  ;;  %v3818_v41 = vshrl.u32 %v3786_v38, 16  ;;  %v3821_v59 = vshll.u32 %v3786_v38, 16 }
 0x5e6   : > { %v3779_v36 = vmax.f32 %v3753_v37, %v3766_v44  ;;  %v3642_v51 = vadd.f32 %v3617_v23, %v3580_v20  ;;  %v3705_v19 = vadd.f32 %v3679_v5, %v3641_v29  ;;  %v3815_v15 = vor.u32 %v3814_v26, %v3811_v32 }
 0x5e7   : > { %v3707_v46 = vadd.f32 %v3680_v47, %v3643_v49  ;;  %v3730_v25 = vsel %vm3594_vm0, %v3727_v50, %v3729_v52  ;;  %v3820_v62 = vrot.slane %v3818_v41, 1  ;;  %v3823_v0 = vrot.slane %v3821_v59, 2  ;;  %v3465_v56 = vpop.f32.mrb[124].mxu0 }
 0x5e8   : > { %v3706_v58 = vadd.f32 %v3681_v12, %v3642_v51  ;;  %v3754_v33 = vmul.f32 %v6587_v4, %v3705_v19  ;;  %v3816_v1 = vsel %vm3790_vm9, %v3806_v39, %v3815_v15  ;;  %v3787_v9 = vpack.c.bf16 %v3779_v36, %v3778_v6  ;;  %v3466_v10 = vpop.f32.mrb[125].mxu0  ;;  %v4068_v6 = vpop.f32.mrb[112].mxu1 }
 0x5e9   : > { %v3756_v42 = vmul.f32 %v3729_v52, %v3707_v46  ;;  %4081 = vmatmul.mubr.bf16.gmra.mrb[120].mxu1 %v3816_v1  ;;  %4966 = vmatprep.mubr.bf16.mxu0 %v3816_v1  ;;  %v3824_v47 = vor.u32 %v3823_v0, %v3820_v62  ;;  %v3467_v21 = vpop.f32.mrb[126].mxu0  ;;  %v4069_v29 = vpop.f32.mrb[113].mxu1  ;;  %v6646_v46 = vld [vmem:[%s6831_s10 + $0x2] ss:$0 sm:$0xff] }
 0x5ea   : > { %v3755_v45 = vmul.f32 %v3730_v25, %v3706_v58  ;;  %v3767_v61 = vmul.f32 0.1, %v3754_v33  ;;  %4090 = vmatprep.mubr.bf16.mxu1 %v6830_v24  ;;  %v3827_v50 = vshrl.u32 %v3787_v9, 16  ;;  %v3830_v40 = vshll.u32 %v3787_v9, 16  ;;  %v3468_v17 = vpop.f32.mrb[127].mxu0  ;;  %v4070_v44 = vpop.f32.mrb[114].mxu1 }
 0x5eb   : > { %v3769_v11 = vmul.f32 0.1, %v3756_v42  ;;  %v3825_v4 = vsel %vm3790_vm9, %v3815_v15, %v3824_v47  ;;  %v4071_v26 = vpop.f32.mrb[115].mxu1 }
 0x5ec   : > { %v3768_v39 = vmul.f32 0.1, %v3755_v45  ;;  %4967 = vmatmul.mubr.bf16.gmra.mrb[132].mxu0 %v3825_v4  ;;  %v3829_v54 = vrot.slane %v3827_v50, 1  ;;  %v3832_v31 = vrot.slane %v3830_v40, 2  ;;  %v3780_v52 = vmax.f32 %v3754_v33, %v3767_v61 }
 0x5ed   : > { %v3782_v7 = vmax.f32 %v3756_v42, %v3769_v11 }
 0x5ee   : > { %v3781_v20 = vmax.f32 %v3755_v45, %v3768_v39  ;;  %v3833_v34 = vor.u32 %v3832_v31, %v3829_v54 }
 0x5ef   : > { %v3789_v48 = vpack.c.bf16 %v3782_v7, %v3782_v7 }
 0x5f0   : > { %v3834_v27 = vsel %vm3790_vm9, %v3824_v47, %v3833_v34  ;;  %v3788_v53 = vpack.c.bf16 %v3781_v20, %v3780_v52 }
 0x5f1   : > { %4091 = vmatmul.mubr.bf16.gmra.mrb[124].mxu1 %v3825_v4  ;;  %4970 = vmatprep.mubr.bf16.mxu0 %v3834_v27  ;;  %v3845_v5 = vshrl.u32 %v3789_v48, 16  ;;  %v3848_v12 = vshll.u32 %v3789_v48, 16 }
 0x5f2   : > { %v3836_v43 = vshrl.u32 %v3788_v53, 16  ;;  %v3839_v30 = vshll.u32 %v3788_v53, 16  ;;  %4100 = vmatprep.mubr.bf16.mxu1 %v6830_v24 }
 0x5f3   : > { %v3847_v37 = vrot.slane %v3845_v5, 1  ;;  %v3850_v55 = vrot.slane %v3848_v12, 2 }
 0x5f4   : > { %v3838_v18 = vrot.slane %v3836_v43, 1  ;;  %v3841_v60 = vrot.slane %v3839_v30, 2 }
 0x5f5   : > { %v3851_v22 = vor.u32 %v3850_v55, %v3847_v37 }
 0x5f6   : > { %v3842_v35 = vor.u32 %v3841_v60, %v3838_v18 }
 0x5f8   : > { %v3843_v32 = vsel %vm3790_vm9, %v3833_v34, %v3842_v35  ;;  %v3852_v38 = vsel %vm3790_vm9, %v3842_v35, %v3851_v22 }
 0x5f9   : > { %4971 = vmatmul.mubr.bf16.gmra.mrb[136].mxu0 %v3843_v32  ;;  %4101 = vmatmul.mubr.bf16.gmra.mrb[128].mxu1 %v3834_v27 }
 0x5fa   : > { %4974 = vmatprep.mubr.bf16.mxu0 %v3852_v38  ;;  %4110 = vmatprep.mubr.bf16.mxu1 %v6830_v24 }
 0x601   : > { %4975 = vmatmul.mubr.bf16.gmra.mrb[140].mxu0 %v6830_v24  ;;  %4111 = vmatmul.mubr.bf16.gmra.mrb[132].mxu1 %v3843_v32 }
 0x602   : > { %4120 = vmatprep.mubr.bf16.mxu1 %v6830_v24 }
 0x609   : > { %4121 = vmatmul.mubr.bf16.gmra.mrb[136].mxu1 %v3852_v38 }
 0x60a   : > { %4127 = vmatprep.mubr.bf16.mxu1 %v6830_v24 }
 0x611   : > { %4128 = vmatmul.mubr.bf16.gmra.mrb[140].mxu1 %v6830_v24 }
 0x6b2   : > { %v4074_v23 = vpop.f32.mrb[116].mxu1  ;;  %v4964_v49 = vpop.f32.mrb[128].mxu0 }
 0x6b3   : > { %v4075_v41 = vpop.f32.mrb[117].mxu1  ;;  %v4168_v59 = vpop.f32.mrb[129].mxu0 }
 0x6b4   : > { %v4076_v36 = vpop.f32.mrb[118].mxu1  ;;  %v4965_v51 = vpop.f32.mrb[130].mxu0 }
 0x6b5   : > { %v4078_v19 = vpop.f32.mrb[119].mxu1  ;;  %v4170_v15 = vpop.f32.mrb[131].mxu0  ;;  %v4230_v58 = vadd.f32 %v6646_v46, %v4076_v36  ;;  %v4296_v47 = vrot.slane %v4965_v51, 2 }
 0x6b6   : > { %v4249_v24 = vrot.slane %v4078_v19, 1 }
 0x6bc   : > { %v4082_v25 = vpop.f32.mrb[120].mxu1 }
 0x6bd   : > { %v4084_v62 = vpop.f32.mrb[121].mxu1  ;;  %v4231_v21 = vadd.f32 %v6646_v46, %v4082_v25 }
 0x6be   : > { %v4250_v0 = vrot.slane %v4084_v62, 1  ;;  %v4086_v56 = vpop.f32.mrb[122].mxu1 }
 0x6bf   : > { %v4968_v33 = vpop.f32.mrb[132].mxu0  ;;  %v4088_v1 = vpop.f32.mrb[123].mxu1  ;;  %v4232_v30 = vadd.f32 %v6646_v46, %v4086_v56 }
 0x6c0   : > { %v4251_v9 = vsel %vm903_vm5, %v4249_v24, %v4250_v0  ;;  %v4252_v10 = vrot.slane %v4088_v1, 1  ;;  %v4181_v42 = vpop.f32.mrb[133].mxu0  ;;  %v4301_v40 = vrot.slane %v4968_v33, 2 }
 0x6c1   : > { %v4277_v45 = vadd.f32 %v4251_v9, %v4230_v58  ;;  %v4297_v61 = vrot.slane %v4181_v42, 2  ;;  %v4969_v50 = vpop.f32.mrb[134].mxu0 }
 0x6c2   : > { %v4253_v17 = vsel %vm903_vm5, %v4250_v0, %v4252_v10  ;;  %v4303_v11 = vrot.slane %v4969_v50, 2  ;;  %v4184_v4 = vpop.f32.mrb[135].mxu0 }
 0x6c3   : > { %v4278_v39 = vadd.f32 %v4253_v17, %v4231_v21  ;;  %v4298_v54 = vsel %vm966_vm1, %v4296_v47, %v4297_v61  ;;  %v4299_v31 = vrot.slane %v4184_v4, 2 }
 0x6c4   : > { %v4324_v7 = vadd.f32 %v4298_v54, %v4277_v45  ;;  %v4304_v52 = vsel %vm966_vm1, %v4301_v40, %v4303_v11  ;;  %v4092_v20 = vpop.f32.mrb[124].mxu1 }
 0x6c5   : > { %v4300_v34 = vsel %vm966_vm1, %v4297_v61, %v4299_v31  ;;  %v4302_v48 = vsel %vm966_vm1, %v4299_v31, %v4301_v40  ;;  %v4094_v27 = vpop.f32.mrb[125].mxu1  ;;  %v4233_v22 = vadd.f32 %v6646_v46, %v4092_v20 }
 0x6c6   : > { %v4333_v53 = vadd.f32 %v4324_v7, %v6431_v2  ;;  %v4325_v5 = vadd.f32 %v4300_v34, %v4278_v39  ;;  %v4254_v12 = vrot.slane %v4094_v27, 1  ;;  %v4096_v43 = vpop.f32.mrb[126].mxu1 }
 0x6c7   : > { %v4098_v37 = vpop.f32.mrb[127].mxu1  ;;  %v4234_v51 = vadd.f32 %v6646_v46, %v4096_v43 }
 0x6c8   : > { %4342 = vst [vmem:[%s5925_s29 - $0x7] sm:$0x80] %v4333_v53  ;;  %v4334_v55 = vadd.f32 %v4325_v5, %v6437_v3  ;;  %v4255_v18 = vsel %vm903_vm5, %v4252_v10, %v4254_v12  ;;  %v4256_v60 = vrot.slane %v4098_v37, 1 }
 0x6c9   : > { %v4279_v35 = vadd.f32 %v4255_v18, %v4232_v30 }
 0x6ca   : > { %4343 = vst [vmem:[%s5925_s29 + $0x1] sm:$0xff] %v4334_v55  ;;  %v4257_v32 = vsel %vm903_vm5, %v4254_v12, %v4256_v60 }
 0x6cb   : > { %v4326_v2 = vadd.f32 %v4302_v48, %v4279_v35  ;;  %v4280_v38 = vadd.f32 %v4257_v32, %v4233_v22 }
 0x6cc   : > { %v4972_v6 = vpop.f32.mrb[136].mxu0  ;;  %v4102_v29 = vpop.f32.mrb[128].mxu1 }
 0x6cd   : > { %v4335_v44 = vadd.f32 %v4326_v2, %v6444_v13  ;;  %v4327_v26 = vadd.f32 %v4304_v52, %v4280_v38  ;;  %v4197_v23 = vpop.f32.mrb[137].mxu0  ;;  %v4104_v49 = vpop.f32.mrb[129].mxu1  ;;  %v4309_v15 = vrot.slane %v4972_v6, 2  ;;  %v4235_v1 = vadd.f32 %v6646_v46, %v4102_v29 }
 0x6ce   : > { %v4305_v3 = vrot.slane %v4197_v23, 2  ;;  %v4973_v41 = vpop.f32.mrb[138].mxu0  ;;  %v4258_v59 = vrot.slane %v4104_v49, 1  ;;  %v4106_v36 = vpop.f32.mrb[130].mxu1 }
 0x6cf   : > { %4344 = vst [vmem:[%s5925_s29 + $0x9] sm:$0xff] %v4335_v44  ;;  %v4336_v19 = vadd.f32 %v4327_v26, %v6452_v28  ;;  %v4311_v25 = vrot.slane %v4973_v41, 2  ;;  %v4200_v62 = vpop.f32.mrb[139].mxu0  ;;  %v4108_v24 = vpop.f32.mrb[131].mxu1  ;;  %v4236_v7 = vadd.f32 %v6646_v46, %v4106_v36 }
 0x6d0   : > { %v4306_v0 = vsel %vm966_vm1, %v4303_v11, %v4305_v3  ;;  %v4307_v13 = vrot.slane %v4200_v62, 2  ;;  %v4259_v56 = vsel %vm903_vm5, %v4256_v60, %v4258_v59  ;;  %v4260_v58 = vrot.slane %v4108_v24, 1 }
 0x6d1   : > { %4345 = vst [vmem:[%s5925_s29 + $0x11] sm:$0xff] %v4336_v19  ;;  %v4312_v33 = vsel %vm966_vm1, %v4309_v15, %v4311_v25  ;;  %v4281_v9 = vadd.f32 %v4259_v56, %v4234_v51 }
 0x6d2   : > { %v4308_v10 = vsel %vm966_vm1, %v4305_v3, %v4307_v13  ;;  %v4310_v28 = vsel %vm966_vm1, %v4307_v13, %v4309_v15  ;;  %v4261_v42 = vsel %vm903_vm5, %v4258_v59, %v4260_v58 }
 0x6d3   : > { %v4328_v47 = vadd.f32 %v4306_v0, %v4281_v9  ;;  %v4282_v21 = vadd.f32 %v4261_v42, %v4235_v1 }
 0x6d4   : > { %v4976_v45 = vpop.f32.mrb[140].mxu0  ;;  %v4112_v61 = vpop.f32.mrb[132].mxu1 }
 0x6d5   : > { %v4337_v50 = vadd.f32 %v4328_v47, %v6467_v16  ;;  %v4329_v40 = vadd.f32 %v4308_v10, %v4282_v21  ;;  %v4213_v17 = vpop.f32.mrb[141].mxu0  ;;  %v4114_v11 = vpop.f32.mrb[133].mxu1  ;;  %v4237_v53 = vadd.f32 %v6646_v46, %v4112_v61 }
 0x6d6   : > { %v4313_v4 = vrot.slane %v4213_v17, 2  ;;  %v4262_v39 = vrot.slane %v4114_v11, 1  ;;  %v4116_v54 = vpop.f32.mrb[134].mxu1  ;;  %v4977_v31 = vpop.f32.mrb[142].mxu0 }
 0x6d7   : > { %4346 = vst [vmem:[%s5925_s29 + $0x19] sm:$0xff] %v4337_v50  ;;  %v4338_v52 = vadd.f32 %v4329_v40, %v6474_v8  ;;  %v4118_v20 = vpop.f32.mrb[135].mxu1  ;;  %v4216_v34 = vpop.f32.mrb[143].mxu0  ;;  %v4238_v35 = vadd.f32 %v6646_v46, %v4116_v54 }
 0x6d8   : > { %v4314_v48 = vsel %vm966_vm1, %v4311_v25, %v4313_v4  ;;  %v4263_v16 = vsel %vm903_vm5, %v4260_v58, %v4262_v39  ;;  %v4264_v27 = vrot.slane %v4118_v20, 1 }
 0x6d9   : > { %4347 = vst [vmem:[%s5925_s29 + $0x21] sm:$0xff] %v4338_v52  ;;  %v4283_v5 = vadd.f32 %v4263_v16, %v4236_v7 }
 0x6da   : > { %v4265_v12 = vsel %vm903_vm5, %v4262_v39, %v4264_v27 }
 0x6db   : > { %v4330_v43 = vadd.f32 %v4310_v28, %v4283_v5  ;;  %v4284_v30 = vadd.f32 %v4265_v12, %v4237_v53 }
 0x6dc   : > { %v4122_v37 = vpop.f32.mrb[136].mxu1 }
 0x6dd   : > { %v4339_v8 = vadd.f32 %v4330_v43, %v6484_v63  ;;  %v4331_v55 = vadd.f32 %v4312_v33, %v4284_v30  ;;  %v4123_v18 = vpop.f32.mrb[137].mxu1 }
 0x6de   : > { %v4266_v60 = vrot.slane %v4123_v18, 1  ;;  %v4125_v22 = vpop.f32.mrb[138].mxu1 }
 0x6df   : > { %4348 = vst [vmem:[%s5925_s29 + $0x29] sm:$0xff] %v4339_v8  ;;  %v4340_v32 = vadd.f32 %v4331_v55, %v6493_v57  ;;  %v4126_v2 = vpop.f32.mrb[139].mxu1 }
 0x6e0   : > { %v4267_v38 = vsel %vm903_vm5, %v4264_v27, %v4266_v60 }
 0x6e1   : > { %4349 = vst [vmem:[%s5925_s29 + $0x31] sm:$0xff] %v4340_v32  ;;  %v4285_v6 = vadd.f32 %v4267_v38, %v4238_v35 }
 0x6e3   : > { %v4332_v63 = vadd.f32 %v4314_v48, %v4285_v6 }
 0x6e4   : > { %v4129_v29 = vpop.f32.mrb[140].mxu1 }
 0x6e5   : > { %v4341_v46 = vadd.f32 %v4332_v63, %v6502_v14  ;;  %v4130_v57 = vpop.f32.mrb[141].mxu1 }
 0x6e6   : > { %v4131_v44 = vpop.f32.mrb[142].mxu1 }
 0x6e7   : > { %4350 = vst [vmem:[%s5925_s29 + $0x39] sm:$0x7f] %v4341_v46  ;;  %v4132_v26 = vpop.f32.mrb[143].mxu1 }
 0x6e8   : > { %5431 = shalt.err (!%p5428_p13)
}
 0x6e9   : > { %s5432_s29 = scalar_lea.hbm %s6700_s15, 1024  ;;  %s5436_s12 = scalar_lea.hbm %s6860_s17, 8192 }
 0x6ea   : > { %p5433_p3 = scmp.ne.s32.totalorder %s6700_s15, %s5432_s29  ;;  %p5437_p11 = scmp.lt.u32.totalorder %s6700_s15, %s6860_s17 }
 0x6eb   : > { %p5438_p1 = scmp.lt.u32.totalorder %s5436_s12, %s5432_s29  ;;  %p5440_p9 = scmp.lt.u32.totalorder %s5432_s29, %s6700_s15 }
 0x6ec   : > { %p5434_p7 = pnand %p5433_p3, %p5717_p6 }
 0x6ed   : > { %p5439_p5 = por %p5438_p1, %p5437_p11 }
 0x6ee   : > { %p5435_p12 = pneg %p5434_p7 }
 0x6ef   : > { %p5441_p0 = por %p5440_p9, %p5439_p5 }
 0x6f1   : > { %p5442_p2 = pnand %p5441_p0, %p5435_p12 }
 0x6f3   : > { %5445 = shalt.err (!%p5442_p2)
}
 0x6f4   : > { %s5538_s21 = smov 128   ;;  %s5539_s5 = smov 8  }
 0x6f5   : > { %4988 = dma.vmem_to_hbm [thread:$0]  (%p5717_p6), %s6694_s25, 1024, %s6700_s15, %s4352_s11, %s5538_s21, %s5538_s21, %s5539_s5  }
 0x6f6 PF: > { %s6861_s4 = sld [smem:[#allocation24_spill]]  ;;  %s6862_s20 = sld [smem:[#allocation25_spill]] }
 0x6f7   : > { %p5010_p10 = scmp.ge.s32.totalorder %s5524_s28, 2 }
 0x6fc   : > { %s4382_s8 = sand.u32 1, %s6861_s4   ;;  %p6863_p4 = scmp.ne.s32.totalorder %s6862_s20, 0 }
 0x6fd   : > { %s4383_s14 = scalar_lea.sflag [#allocation8], %s4382_s8 }
 0x6fe   : > { %p5002_p8 = pnand %p5010_p10, %p6863_p4 }
 0x700   : > { %5491 = dma.done.wait (!%p5002_p8), %s4383_s14, 1024  }
 0x701   : > { %5493 = vsyncadd (!%p5002_p8), %s4383_s14, 4294966272  ;;  %s23_s28 = sadd.s32 1, %s5524_s28   ;;  %s6864_s18 = sld [smem:[#allocation26_spill]] }
 0x702   : > { %p20_p13 = scmp.ge.s32.totalorder %s23_s28, 10   ;;  %s6865_s21 = smov %s5500_s22 }
 0x703   : > { %s6866_s22 = smov %s5504_s23  ;;  %s6867_s23 = smov %s5730_s2 }
 0x704   : > { %s6868_s24 = smov %s5516_s26  ;;  %s6869_s25 = smov %s5520_s27 }
 0x705   : > { %s6871_s27 = smov %s6877_s19  ;;  %22 = sbr.rel (!%p20_p13) target bundleno = 13 (0xd), region = 110 }
 0x707   : > { %s6870_s26 = smov %s6864_s18 }
 0x70c   :  { %4388 = vsyncpa [#allocation7], 1 }
 0x70d   :  { %4390 = vsyncpa [#allocation7 + $0x1], 1 }
 0x70e   :  { %4391 = vsyncpa [#allocation10], 1 }
 0x70f   :  { %4392 = vsyncpa [#allocation8], 1 }
 0x710   :  { %4394 = vsyncpa [#allocation8 + $0x1], 1 }
 0x711   :  { %4395 = vsyncmov [#allocation5] }
 0x714   :  { %s4396_s15 = vpop.sfrf %4395 }
 0x715   :  { %p4688_p6 = scmp.ne.s32.totalorder %s4396_s15, 0 }
 0x717   :  { %4400 = shalt.err (%p4688_p6)  }
 0x718   :  { %4402 = vsyncmov [#allocation5 + $0x1] }
 0x71b   :  { %s4403_s2 = vpop.sfrf %4402 }
 0x71c   :  { %p4689_p3 = scmp.ne.s32.totalorder %s4403_s2, 0 }
 0x71e   :  { %4407 = shalt.err (%p4689_p3)  }

</bundles_post_ra>
